<compile_context>
chip_gen: v6e
topology: v6e:2x2x1
jax: 0.10.0
libtpu: 0.0.40
codegen_flags: <defaults>
</compile_context>

<pallas_src>
import functools

import jax
import jax.numpy as jnp
from jax.experimental import pallas as pl
from jax.experimental.pallas import tpu as pltpu

C_PAD = 128            # lane-dense padded channel width for every layer
TM_STREAM = 512        # dst tile rows for the streaming (large-graph) path
_MIB = 1024 * 1024


# ------------------------------ small helpers ------------------------------- #

def _round_up(x, m):
    return (x + m - 1) // m * m


def _pad2(a, rows, cols):
    return jnp.pad(a, ((0, rows - a.shape[0]), (0, cols - a.shape[1])))


def _vmem_capacity_bytes():
    """Generation-aware VMEM budget (v5e/v6e: 128 MiB, v7x: 64 MiB)."""
    try:
        info = pltpu.get_tpu_info()
        for attr in ("vmem_capacity_bytes", "vmem_bytes", "vmem_size_bytes"):
            v = getattr(info, attr, None)
            if v:
                return int(v)
    except Exception:
        pass
    return 64 * _MIB   # conservative: assume v7x when the query is unavailable


def _fused_tile_m(n_pad):
    for t in (512, 256, 128):
        if n_pad % t == 0:
            return t
    return 128


def _fused_fits(n_pad, num_layers, vmem_cap):
    """Can the whole network run with A resident in VMEM (with headroom)?"""
    need = (n_pad * n_pad * 2                       # A (bf16), resident
            + 3 * n_pad * C_PAD * 2                 # X + two ping-pong H (bf16)
            + n_pad * C_PAD * 4                     # f32 output
            + (num_layers + 1) * C_PAD * C_PAD * 2  # stacked weights + final W
            + (num_layers + 1) * 8 * C_PAD * 4)     # biases (sublane padded)
    # 16 MiB headroom for f32 working tiles / compiler scratch:
    #   cutoff ~4.5-4.9k nodes on v7x (64 MiB), ~6.5-7k on v5e/v6e (128 MiB).
    return need <= vmem_cap - 16 * _MIB, need


# ----------------------------- Pallas kernels ------------------------------ #

def _xw_kernel(x_ref, w_ref, o_ref):
    # H0 = X @ W0  (bf16 operands, f32 accumulate on the MXU, bf16 store)
    o_ref[...] = jnp.dot(x_ref[...], w_ref[...],
                         preferred_element_type=jnp.float32).astype(o_ref.dtype)


def _agg_kernel(a_ref, h_ref, b_ref, wp_ref, bp_ref, o_ref, acc_ref,
                *, apply_relu, has_post):
    """Streaming GCN layer: out = A @ H + b, tiled over (dst, src) grid.

    H is given as a constant-index full-array block, i.e. it is fetched from
    HBM once per layer and stays VMEM-resident; only the A tiles stream.
    The last-k epilogue fuses bias + ReLU + (next-layer X@W | final projection),
    staged through the f32 VMEM accumulator to keep vreg pressure low.
    """
    k = pl.program_id(1)
    tk = a_ref.shape[1]

    @pl.when(k == 0)
    def _():
        acc_ref[...] = jnp.zeros_like(acc_ref)

    start = pl.multiple_of(k * tk, tk)
    h_blk = h_ref[pl.ds(start, tk), :]                 # VMEM slice, no HBM refetch
    acc_ref[...] += jnp.dot(a_ref[...], h_blk, preferred_element_type=jnp.float32)

    @pl.when(k == pl.num_programs(1) - 1)
    def _():
        out = acc_ref[...] + b_ref[...]                # f32 bias add (VPU)
        if apply_relu:
            out = jnp.maximum(out, 0.0)                # f32 ReLU before any cast
        if has_post:
            acc_ref[...] = out                         # stage through VMEM scratch
            out = jnp.dot(acc_ref[...].astype(jnp.bfloat16), wp_ref[...],
                          preferred_element_type=jnp.float32) + bp_ref[...]
        o_ref[...] = out.astype(o_ref.dtype)


def _fused_kernel(a_ref, x_ref, w_ref, b_ref, wf_ref, bf_ref, o_ref,
                  h0_ref, h1_ref, *, num_layers, final_proj, relu_last, tm):
    """All GCN layers in one invocation with A resident in VMEM.

    A, X, the stacked layer weights and the final projection stay in VMEM for
    the whole call; H ping-pongs between two VMEM scratches, so each layer's
    input transform is computed exactly once.  A @ H is evaluated per dst-row
    tile (static loop, static slices) to bound the live f32 working set.
    """
    n_pad = a_ref.shape[0]
    n_tiles = n_pad // tm
    h_cur, h_nxt = h0_ref, h1_ref

    # H_0 = X @ W_0 (once)
    for r in range(n_tiles):
        rows = slice(r * tm, (r + 1) * tm)
        h_cur[rows, :] = jnp.dot(
            x_ref[rows, :], w_ref[0],
            preferred_element_type=jnp.float32).astype(jnp.bfloat16)

    for l in range(num_layers):
        is_last = l == num_layers - 1
        for r in range(n_tiles):
            rows = slice(r * tm, (r + 1) * tm)
            out = jnp.dot(a_ref[rows, :], h_cur[...],
                          preferred_element_type=jnp.float32) + b_ref[l]
            if (not is_last) or relu_last:
                out = jnp.maximum(out, 0.0)
            if not is_last:
                # Fuse next layer's X @ W: H_{l+1} produced once, kept in VMEM.
                h_nxt[rows, :] = jnp.dot(
                    out.astype(jnp.bfloat16), w_ref[l + 1],
                    preferred_element_type=jnp.float32).astype(jnp.bfloat16)
            elif final_proj:
                o_ref[rows, :] = (jnp.dot(out.astype(jnp.bfloat16), wf_ref[...],
                                          preferred_element_type=jnp.float32)
                                  + bf_ref[...])
            else:
                o_ref[rows, :] = out
        h_cur, h_nxt = h_nxt, h_cur


# ------------------------------ kernel wrappers ------------------------------ #

def _input_transform(x_bf, w0_bf, *, tm, vmem_limit):
    n_pad, c_in = x_bf.shape
    c_out = w0_bf.shape[1]
    return pl.pallas_call(
        _xw_kernel,
        out_shape=jax.ShapeDtypeStruct((n_pad, c_out), jnp.bfloat16),
        grid=(n_pad // tm,),
        in_specs=[
            pl.BlockSpec((tm, c_in), lambda i: (i, 0)),
            pl.BlockSpec((c_in, c_out), lambda i: (0, 0)),
        ],
        out_specs=pl.BlockSpec((tm, c_out), lambda i: (i, 0)),
        compiler_params=pltpu.CompilerParams(
            dimension_semantics=("parallel",),
            vmem_limit_bytes=vmem_limit),
        cost_estimate=pl.CostEstimate(
            flops=2 * n_pad * c_in * c_out, transcendentals=0,
            bytes_accessed=2 * (x_bf.size + w0_bf.size + n_pad * c_out)),
    )(x_bf, w0_bf)


def _agg_layer(a_bf, h_bf, b_f32, w_post_bf, b_post_f32, *,
               apply_relu, has_post, out_dtype, tm, tk, vmem_limit):
    n_pad = a_bf.shape[0]
    c = h_bf.shape[1]
    grid = (n_pad // tm, n_pad // tk)
    flops = 2 * n_pad * n_pad * c + (2 * n_pad * c * c if has_post else 0)
    bytes_accessed = (a_bf.size * 2 + h_bf.size * 2 + w_post_bf.size * 2
                      + b_f32.size * 4 + b_post_f32.size * 4
                      + n_pad * c * jnp.dtype(out_dtype).itemsize)
    kern = functools.partial(_agg_kernel, apply_relu=apply_relu, has_post=has_post)
    return pl.pallas_call(
        kern,
        out_shape=jax.ShapeDtypeStruct((n_pad, c), out_dtype),
        grid=grid,
        in_specs=[
            pl.BlockSpec((tm, tk), lambda i, k: (i, k)),     # A tile, streamed (bf16)
            pl.BlockSpec((n_pad, c), lambda i, k: (0, 0)),   # H, VMEM-resident
            pl.BlockSpec((1, c), lambda i, k: (0, 0)),       # layer bias (f32)
            pl.BlockSpec((c, c), lambda i, k: (0, 0)),       # next-layer / final weight
            pl.BlockSpec((1, c), lambda i, k: (0, 0)),       # final bias (zeros mid-net)
        ],
        out_specs=pl.BlockSpec((tm, c), lambda i, k: (i, 0)),
        scratch_shapes=[pltpu.VMEM((tm, c), jnp.float32)],
        compiler_params=pltpu.CompilerParams(
            dimension_semantics=("parallel", "arbitrary"),
            vmem_limit_bytes=vmem_limit),
        cost_estimate=pl.CostEstimate(flops=flops, transcendentals=0,
                                      bytes_accessed=bytes_accessed),
    )(a_bf, h_bf, b_f32, w_post_bf, b_post_f32)


def _fused_forward(a_bf, x_bf, w_stack, b_stack, wf, bf_, *,
                   num_layers, final_proj, relu_last, tm, vmem_limit):
    n_pad = a_bf.shape[0]
    c = C_PAD
    kern = functools.partial(_fused_kernel, num_layers=num_layers,
                             final_proj=final_proj, relu_last=relu_last, tm=tm)
    flops = (2 * n_pad * c * c
             + num_layers * 2 * n_pad * n_pad * c
             + (num_layers - 1 + int(final_proj)) * 2 * n_pad * c * c)
    bytes_accessed = (a_bf.size * 2 + x_bf.size * 2 + w_stack.size * 2
                      + b_stack.size * 4 + wf.size * 2 + bf_.size * 4
                      + n_pad * c * 4)
    return pl.pallas_call(
        kern,
        out_shape=jax.ShapeDtypeStruct((n_pad, c), jnp.float32),
        in_specs=[pl.BlockSpec(memory_space=pltpu.MemorySpace.VMEM)
                  for _ in range(6)],
        out_specs=pl.BlockSpec(memory_space=pltpu.MemorySpace.VMEM),
        scratch_shapes=[pltpu.VMEM((n_pad, c), jnp.bfloat16),
                        pltpu.VMEM((n_pad, c), jnp.bfloat16)],
        compiler_params=pltpu.CompilerParams(vmem_limit_bytes=vmem_limit),
        cost_estimate=pl.CostEstimate(flops=flops, transcendentals=0,
                                      bytes_accessed=bytes_accessed),
    )(a_bf, x_bf, w_stack, b_stack, wf, bf_)


# ------------------------------ plain-JAX glue ------------------------------ #

def build_norm_adj(edge_index, n_pad):
    """Dense symmetric ('sm') normalized adjacency, scattered directly as bf16."""
    src, dst = edge_index[0], edge_index[1]
    deg = jnp.zeros((n_pad,), jnp.float32).at[src].add(1.0)
    safe = jnp.where(deg > 0, deg, 1.0)
    deg_inv_sqrt = jnp.where(deg > 0, jax.lax.rsqrt(safe), 0.0)      # inf -> 0
    norm_e = (deg_inv_sqrt[src] * deg_inv_sqrt[dst]).astype(jnp.bfloat16)
    # One N^2 bf16 pass instead of f32 zeros + f32 scatter + bf16 cast (~3x N^2*4 B).
    return jnp.zeros((n_pad, n_pad), jnp.bfloat16).at[dst, src].add(norm_e)


def init_params(key, in_channels, enc_sizes, num_classes, final_type):
    """Deterministic synthetic parameters (glorot-like weights, zero GCN biases)."""
    sizes = [in_channels, *enc_sizes]
    layers = []
    for c_in, c_out in zip(sizes[:-1], sizes[1:]):
        key, kw = jax.random.split(key)
        lim = (6.0 / (c_in + c_out)) ** 0.5
        w = jax.random.uniform(kw, (c_in, c_out), jnp.float32, -lim, lim)
        b = jnp.zeros((1, c_out), jnp.float32)
        layers.append((w, b))
    params = {"layers": layers}
    if final_type == "proj":
        key, kw, kb = jax.random.split(key, 3)
        lim = (1.0 / sizes[-1]) ** 0.5
        params["final_w"] = jax.random.uniform(kw, (sizes[-1], num_classes),
                                               jnp.float32, -lim, lim)
        params["final_b"] = jax.random.uniform(kb, (1, num_classes),
                                               jnp.float32, -lim, lim)
    return params


def gcn_model_forward(params, x, edge_index, *, final_type="proj",
                      force_tiled=False):
    """Mirrors GCNModel.forward for residual_hop=None, dropout=0, pred_on='node'."""
    n = x.shape[0]
    c = C_PAD
    layers = params["layers"]
    num_layers = len(layers)
    vmem_cap = _vmem_capacity_bytes()

    w_pad = [_pad2(w, c, c).astype(jnp.bfloat16) for (w, _) in layers]
    b_pad = [_pad2(b, 1, c) for (_, b) in layers]
    if final_type == "proj":
        wf = _pad2(params["final_w"], c, c).astype(jnp.bfloat16)
        bf_ = _pad2(params["final_b"], 1, c)
    else:
        wf = jnp.zeros((c, c), jnp.bfloat16)
        bf_ = jnp.zeros((1, c), jnp.float32)
    relu_last = final_type != "none"   # non_linear applied after last layer iff final != none

    # ---- Path A: fully fused, A resident in VMEM (A read from HBM once). ----
    n_pad_f = _round_up(n, 128)
    fits, need = _fused_fits(n_pad_f, num_layers, vmem_cap)
    if fits and not force_tiled:
        a_bf = build_norm_adj(edge_index, n_pad_f)
        x_bf = _pad2(x, n_pad_f, c).astype(jnp.bfloat16)
        w_stack = jnp.stack(w_pad)            # (L, 128, 128) bf16
        b_stack = jnp.stack(b_pad)            # (L, 1, 128) f32
        out = _fused_forward(
            a_bf, x_bf, w_stack, b_stack, wf, bf_,
            num_layers=num_layers, final_proj=(final_type == "proj"),
            relu_last=relu_last, tm=_fused_tile_m(n_pad_f),
            vmem_limit=int(min(vmem_cap - 2 * _MIB, need + 32 * _MIB)))
    else:
        # ---- Path B: streamed A, per-layer kernels with fused epilogues. ----
        # Pad to a multiple of 2*tm: keeps tiles in the large (>=512) regime and
        # gives an even dst-tile count for v7x megacore splitting.
        n_pad = _round_up(n, 2 * TM_STREAM)
        tm = TM_STREAM
        tk = 2048 if n_pad % 2048 == 0 else 1024
        vmem_limit = int(min(vmem_cap - 4 * _MIB, 48 * _MIB))
        a_bf = build_norm_adj(edge_index, n_pad)
        x_bf = _pad2(x, n_pad, c).astype(jnp.bfloat16)
        zeros_b = jnp.zeros((1, c), jnp.float32)

        # H_0 = X @ W_0 once; every later H is produced by the previous layer's
        # fused epilogue, so X @ W is never recomputed per dst tile.
        h = _input_transform(x_bf, w_pad[0], tm=tm, vmem_limit=vmem_limit)
        for l in range(num_layers):
            is_last = l == num_layers - 1
            apply_relu = (not is_last) or relu_last
            if not is_last:
                w_post, b_post, has_post, out_dtype = (w_pad[l + 1], zeros_b,
                                                       True, jnp.bfloat16)
            elif final_type == "proj":
                w_post, b_post, has_post, out_dtype = wf, bf_, True, jnp.float32
            else:
                w_post, b_post, has_post, out_dtype = wf, zeros_b, False, jnp.float32
            h = _agg_layer(a_bf, h, b_pad[l], w_post, b_post,
                           apply_relu=apply_relu, has_post=has_post,
                           out_dtype=out_dtype, tm=tm, tk=tk,
                           vmem_limit=vmem_limit)
        out = h

    out_cols = (params["final_w"].shape[1] if final_type == "proj"
                else layers[-1][0].shape[1])
    return out[:n, :out_cols]
    # TODO(synk): pred_on='graph' mean-pool, residual_hop connections, edge
    # gating and the mlp/attention node models are not needed for this config.


# ------------------------------- references ---------------------------------- #

def gcn_model_reference_quantized(params, x, edge_index, *, final_type="proj"):
    """Plain-JAX mirror of the kernel math (same bf16 casts, f32 accumulation)."""
    n = x.shape[0]
    n_pad = _round_up(n, 128)
    c = C_PAD
    a = build_norm_adj(edge_index, n_pad)
    layers = params["layers"]
    num_layers = len(layers)
    w_pad = [_pad2(w, c, c).astype(jnp.bfloat16) for (w, _) in layers]
    b_pad = [_pad2(b, 1, c) for (_, b) in layers]
    x_pad = _pad2(x, n_pad, c).astype(jnp.bfloat16)
    h = jnp.dot(x_pad, w_pad[0], preferred_element_type=jnp.float32).astype(jnp.bfloat16)
    for l in range(num_layers):
        out = jnp.dot(a, h, preferred_element_type=jnp.float32) + b_pad[l]
        is_last = l == num_layers - 1
        if (not is_last) or final_type != "none":
            out = jnp.maximum(out, 0.0)
        if not is_last:
            h = jnp.dot(out.astype(jnp.bfloat16), w_pad[l + 1],
                        preferred_element_type=jnp.float32).astype(jnp.bfloat16)
        elif final_type == "proj":
            wf = _pad2(params["final_w"], c, c).astype(jnp.bfloat16)
            bf_ = _pad2(params["final_b"], 1, c)
            h = jnp.dot(out.astype(jnp.bfloat16), wf,
                        preferred_element_type=jnp.float32) + bf_
        else:
            h = out
    out_cols = (params["final_w"].shape[1] if final_type == "proj"
                else layers[-1][0].shape[1])
    return h[:n, :out_cols]


def gcn_model_reference_f32(params, x, edge_index, *, final_type="proj"):
    """Pure-f32 scatter/gather reference matching NodeModelAdditive semantics."""
    src, dst = edge_index[0], edge_index[1]
    n = x.shape[0]
    deg = jnp.zeros((n,), jnp.float32).at[src].add(1.0)
    dis = jnp.where(deg > 0, jax.lax.rsqrt(jnp.where(deg > 0, deg, 1.0)), 0.0)
    norm_e = dis[src] * dis[dst]
    num_layers = len(params["layers"])
    for l, (w, b) in enumerate(params["layers"]):
        h = x @ w
        out = jnp.zeros((n, w.shape[1]), jnp.float32).at[dst].add(
            h[src] * norm_e[:, None]) + b
        if l < num_layers - 1 or final_type != "none":
            out = jnp.maximum(out, 0.0)
        x = out
    if final_type == "proj":
        x = x @ params["final_w"] + params["final_b"]
    return x


# --------------------------------- main -------------------------------------- #

if __name__ == "__main__":
    key = jax.random.PRNGKey(0)

    # Small synthetic graph.
    N, E = 300, 1500
    in_channels = 16
    enc_sizes = [32, 64, 32]
    num_classes = 8
    final_type = "proj"

    key, kx, ke_s, ke_d, kp = jax.random.split(key, 5)
    x = jax.random.normal(kx, (N, in_channels), jnp.float32)
    edge_index = jnp.stack([
        jax.random.randint(ke_s, (E,), 0, N),
        jax.random.randint(ke_d, (E,), 0, N),
    ]).astype(jnp.int32)

    params = init_params(kp, in_channels, enc_sizes, num_classes, final_type)

    ref_q = gcn_model_reference_quantized(params, x, edge_index, final_type=final_type)
    ref_f = gcn_model_reference_f32(params, x, edge_index, final_type=final_type)

    # Path A: fused A-resident kernel (auto-selected for this small graph).
    forward = jax.jit(functools.partial(gcn_model_forward, final_type=final_type))
    out = jax.block_until_ready(forward(params, x, edge_index))
    assert out.shape == (N, num_classes), out.shape
    err_q = float(jnp.max(jnp.abs(out - ref_q)))
    assert jnp.allclose(out, ref_q, atol=3e-3, rtol=3e-3), err_q
    err_f = float(jnp.max(jnp.abs(out - ref_f)))
    assert jnp.allclose(out, ref_f, atol=5e-2, rtol=5e-2), err_f

    # Path B: streamed-A large-graph path, forced here to verify it as well.
    forward_tiled = jax.jit(functools.partial(
        gcn_model_forward, final_type=final_type, force_tiled=True))
    out_t = jax.block_until_ready(forward_tiled(params, x, edge_index))
    assert out_t.shape == (N, num_classes), out_t.shape
    err_qt = float(jnp.max(jnp.abs(out_t - ref_q)))
    assert jnp.allclose(out_t, ref_q, atol=3e-3, rtol=3e-3), err_qt
    err_ft = float(jnp.max(jnp.abs(out_t - ref_f)))
    assert jnp.allclose(out_t, ref_f, atol=5e-2, rtol=5e-2), err_ft

    print("KERNEL_OK")
</pallas_src>

<mosaic_0001>
module attributes {stable_mosaic.version = 11 : i64} {
  func.func @_fused_kernel(%arg0: memref<384x384xbf16, #tpu.memory_space<vmem>>, %arg1: memref<384x128xbf16, #tpu.memory_space<vmem>>, %arg2: memref<3x128x128xbf16, #tpu.memory_space<vmem>>, %arg3: memref<3x1x128xf32, #tpu.memory_space<vmem>>, %arg4: memref<128x128xbf16, #tpu.memory_space<vmem>>, %arg5: memref<1x128xf32, #tpu.memory_space<vmem>>, %arg6: memref<384x128xf32, #tpu.memory_space<vmem>>, %arg7: memref<384x128xbf16, #tpu.memory_space<vmem>>, %arg8: memref<384x128xbf16, #tpu.memory_space<vmem>>) attributes {dimension_semantics = [], scalar_prefetch = 0 : i64, scratch_operands = 2 : i64, tpu.core_type = #tpu.core_type<tc>} {
    %c0 = arith.constant 0 : index
    %c0_0 = arith.constant 0 : index
    %0 = vector.load %arg1[%c0, %c0_0] : memref<384x128xbf16, #tpu.memory_space<vmem>>, vector<128x128xbf16>
    %c0_1 = arith.constant 0 : index
    %c0_2 = arith.constant 0 : index
    %c0_3 = arith.constant 0 : index
    %1 = vector.load %arg2[%c0_1, %c0_2, %c0_3] : memref<3x128x128xbf16, #tpu.memory_space<vmem>>, vector<1x128x128xbf16>
    %2 = vector.shape_cast %1 : vector<1x128x128xbf16> to vector<128x128xbf16>
    %cst = arith.constant dense<0.000000e+00> : vector<128x128xf32>
    %3 = tpu.matmul %0, %2, %cst {dimension_numbers = #tpu.dot_dimension_numbers<[1], [0], [0], [1], [0, 0, 1, 1], [], []>} : vector<128x128xbf16>, vector<128x128xbf16>, vector<128x128xf32> -> vector<128x128xf32>
    %4 = arith.truncf %3 : vector<128x128xf32> to vector<128x128xbf16>
    %c0_4 = arith.constant 0 : index
    %c0_5 = arith.constant 0 : index
    %5 = vector.load %arg7[%c0_4, %c0_5] : memref<384x128xbf16, #tpu.memory_space<vmem>>, vector<128x128xbf16>
    tpu.vector_store %arg7[%c0_4, %c0_5], %4 {strides = array<i32>} : memref<384x128xbf16, #tpu.memory_space<vmem>>, vector<128x128xbf16>,
    %c128 = arith.constant 128 : index
    %c0_6 = arith.constant 0 : index
    %6 = vector.load %arg1[%c128, %c0_6] : memref<384x128xbf16, #tpu.memory_space<vmem>>, vector<128x128xbf16>
    %c0_7 = arith.constant 0 : index
    %c0_8 = arith.constant 0 : index
    %c0_9 = arith.constant 0 : index
    %7 = vector.load %arg2[%c0_7, %c0_8, %c0_9] : memref<3x128x128xbf16, #tpu.memory_space<vmem>>, vector<1x128x128xbf16>
    %8 = vector.shape_cast %7 : vector<1x128x128xbf16> to vector<128x128xbf16>
    %cst_10 = arith.constant dense<0.000000e+00> : vector<128x128xf32>
    %9 = tpu.matmul %6, %8, %cst_10 {dimension_numbers = #tpu.dot_dimension_numbers<[1], [0], [0], [1], [0, 0, 1, 1], [], []>} : vector<128x128xbf16>, vector<128x128xbf16>, vector<128x128xf32> -> vector<128x128xf32>
    %10 = arith.truncf %9 : vector<128x128xf32> to vector<128x128xbf16>
    %c128_11 = arith.constant 128 : index
    %c0_12 = arith.constant 0 : index
    %11 = vector.load %arg7[%c128_11, %c0_12] : memref<384x128xbf16, #tpu.memory_space<vmem>>, vector<128x128xbf16>
    tpu.vector_store %arg7[%c128_11, %c0_12], %10 {strides = array<i32>} : memref<384x128xbf16, #tpu.memory_space<vmem>>, vector<128x128xbf16>,
    %c256 = arith.constant 256 : index
    %c0_13 = arith.constant 0 : index
    %12 = vector.load %arg1[%c256, %c0_13] : memref<384x128xbf16, #tpu.memory_space<vmem>>, vector<128x128xbf16>
    %c0_14 = arith.constant 0 : index
    %c0_15 = arith.constant 0 : index
    %c0_16 = arith.constant 0 : index
    %13 = vector.load %arg2[%c0_14, %c0_15, %c0_16] : memref<3x128x128xbf16, #tpu.memory_space<vmem>>, vector<1x128x128xbf16>
    %14 = vector.shape_cast %13 : vector<1x128x128xbf16> to vector<128x128xbf16>
    %cst_17 = arith.constant dense<0.000000e+00> : vector<128x128xf32>
    %15 = tpu.matmul %12, %14, %cst_17 {dimension_numbers = #tpu.dot_dimension_numbers<[1], [0], [0], [1], [0, 0, 1, 1], [], []>} : vector<128x128xbf16>, vector<128x128xbf16>, vector<128x128xf32> -> vector<128x128xf32>
    %16 = arith.truncf %15 : vector<128x128xf32> to vector<128x128xbf16>
    %c256_18 = arith.constant 256 : index
    %c0_19 = arith.constant 0 : index
    %17 = vector.load %arg7[%c256_18, %c0_19] : memref<384x128xbf16, #tpu.memory_space<vmem>>, vector<128x128xbf16>
    tpu.vector_store %arg7[%c256_18, %c0_19], %16 {strides = array<i32>} : memref<384x128xbf16, #tpu.memory_space<vmem>>, vector<128x128xbf16>,
    %c0_20 = arith.constant 0 : index
    %c0_21 = arith.constant 0 : index
    %18 = vector.load %arg0[%c0_20, %c0_21] : memref<384x384xbf16, #tpu.memory_space<vmem>>, vector<128x384xbf16>
    %c0_22 = arith.constant 0 : index
    %c0_23 = arith.constant 0 : index
    %19 = vector.load %arg7[%c0_22, %c0_23] : memref<384x128xbf16, #tpu.memory_space<vmem>>, vector<384x128xbf16>
    %cst_24 = arith.constant dense<0.000000e+00> : vector<128x128xf32>
    %20 = tpu.matmul %18, %19, %cst_24 {dimension_numbers = #tpu.dot_dimension_numbers<[1], [0], [0], [1], [0, 0, 1, 1], [], []>} : vector<128x384xbf16>, vector<384x128xbf16>, vector<128x128xf32> -> vector<128x128xf32>
    %c0_25 = arith.constant 0 : index
    %c0_26 = arith.constant 0 : index
    %c0_27 = arith.constant 0 : index
    %21 = vector.load %arg3[%c0_25, %c0_26, %c0_27] : memref<3x1x128xf32, #tpu.memory_space<vmem>>, vector<1x1x128xf32>
    %22 = vector.shape_cast %21 : vector<1x1x128xf32> to vector<1x128xf32>
    %23 = vector.broadcast %22 : vector<1x128xf32> to vector<128x128xf32>
    %24 = arith.addf %20, %23 : vector<128x128xf32>
    %cst_28 = arith.constant 0.000000e+00 : f32
    %25 = vector.broadcast %cst_28 : f32 to vector<128x128xf32>
    %26 = arith.maximumf %24, %25 : vector<128x128xf32>
    %27 = arith.truncf %26 : vector<128x128xf32> to vector<128x128xbf16>
    %c1 = arith.constant 1 : index
    %c0_29 = arith.constant 0 : index
    %c0_30 = arith.constant 0 : index
    %28 = vector.load %arg2[%c1, %c0_29, %c0_30] : memref<3x128x128xbf16, #tpu.memory_space<vmem>>, vector<1x128x128xbf16>
    %29 = vector.shape_cast %28 : vector<1x128x128xbf16> to vector<128x128xbf16>
    %cst_31 = arith.constant dense<0.000000e+00> : vector<128x128xf32>
    %30 = tpu.matmul %27, %29, %cst_31 {dimension_numbers = #tpu.dot_dimension_numbers<[1], [0], [0], [1], [0, 0, 1, 1], [], []>} : vector<128x128xbf16>, vector<128x128xbf16>, vector<128x128xf32> -> vector<128x128xf32>
    %31 = arith.truncf %30 : vector<128x128xf32> to vector<128x128xbf16>
    %c0_32 = arith.constant 0 : index
    %c0_33 = arith.constant 0 : index
    %32 = vector.load %arg8[%c0_32, %c0_33] : memref<384x128xbf16, #tpu.memory_space<vmem>>, vector<128x128xbf16>
    tpu.vector_store %arg8[%c0_32, %c0_33], %31 {strides = array<i32>} : memref<384x128xbf16, #tpu.memory_space<vmem>>, vector<128x128xbf16>,
    %c128_34 = arith.constant 128 : index
    %c0_35 = arith.constant 0 : index
    %33 = vector.load %arg0[%c128_34, %c0_35] : memref<384x384xbf16, #tpu.memory_space<vmem>>, vector<128x384xbf16>
    %c0_36 = arith.constant 0 : index
    %c0_37 = arith.constant 0 : index
    %34 = vector.load %arg7[%c0_36, %c0_37] : memref<384x128xbf16, #tpu.memory_space<vmem>>, vector<384x128xbf16>
    %cst_38 = arith.constant dense<0.000000e+00> : vector<128x128xf32>
    %35 = tpu.matmul %33, %34, %cst_38 {dimension_numbers = #tpu.dot_dimension_numbers<[1], [0], [0], [1], [0, 0, 1, 1], [], []>} : vector<128x384xbf16>, vector<384x128xbf16>, vector<128x128xf32> -> vector<128x128xf32>
    %c0_39 = arith.constant 0 : index
    %c0_40 = arith.constant 0 : index
    %c0_41 = arith.constant 0 : index
    %36 = vector.load %arg3[%c0_39, %c0_40, %c0_41] : memref<3x1x128xf32, #tpu.memory_space<vmem>>, vector<1x1x128xf32>
    %37 = vector.shape_cast %36 : vector<1x1x128xf32> to vector<1x128xf32>
    %38 = vector.broadcast %37 : vector<1x128xf32> to vector<128x128xf32>
    %39 = arith.addf %35, %38 : vector<128x128xf32>
    %cst_42 = arith.constant 0.000000e+00 : f32
    %40 = vector.broadcast %cst_42 : f32 to vector<128x128xf32>
    %41 = arith.maximumf %39, %40 : vector<128x128xf32>
    %42 = arith.truncf %41 : vector<128x128xf32> to vector<128x128xbf16>
    %c1_43 = arith.constant 1 : index
    %c0_44 = arith.constant 0 : index
    %c0_45 = arith.constant 0 : index
    %43 = vector.load %arg2[%c1_43, %c0_44, %c0_45] : memref<3x128x128xbf16, #tpu.memory_space<vmem>>, vector<1x128x128xbf16>
    %44 = vector.shape_cast %43 : vector<1x128x128xbf16> to vector<128x128xbf16>
    %cst_46 = arith.constant dense<0.000000e+00> : vector<128x128xf32>
    %45 = tpu.matmul %42, %44, %cst_46 {dimension_numbers = #tpu.dot_dimension_numbers<[1], [0], [0], [1], [0, 0, 1, 1], [], []>} : vector<128x128xbf16>, vector<128x128xbf16>, vector<128x128xf32> -> vector<128x128xf32>
    %46 = arith.truncf %45 : vector<128x128xf32> to vector<128x128xbf16>
    %c128_47 = arith.constant 128 : index
    %c0_48 = arith.constant 0 : index
    %47 = vector.load %arg8[%c128_47, %c0_48] : memref<384x128xbf16, #tpu.memory_space<vmem>>, vector<128x128xbf16>
    tpu.vector_store %arg8[%c128_47, %c0_48], %46 {strides = array<i32>} : memref<384x128xbf16, #tpu.memory_space<vmem>>, vector<128x128xbf16>,
    %c256_49 = arith.constant 256 : index
    %c0_50 = arith.constant 0 : index
    %48 = vector.load %arg0[%c256_49, %c0_50] : memref<384x384xbf16, #tpu.memory_space<vmem>>, vector<128x384xbf16>
    %c0_51 = arith.constant 0 : index
    %c0_52 = arith.constant 0 : index
    %49 = vector.load %arg7[%c0_51, %c0_52] : memref<384x128xbf16, #tpu.memory_space<vmem>>, vector<384x128xbf16>
    %cst_53 = arith.constant dense<0.000000e+00> : vector<128x128xf32>
    %50 = tpu.matmul %48, %49, %cst_53 {dimension_numbers = #tpu.dot_dimension_numbers<[1], [0], [0], [1], [0, 0, 1, 1], [], []>} : vector<128x384xbf16>, vector<384x128xbf16>, vector<128x128xf32> -> vector<128x128xf32>
    %c0_54 = arith.constant 0 : index
    %c0_55 = arith.constant 0 : index
    %c0_56 = arith.constant 0 : index
    %51 = vector.load %arg3[%c0_54, %c0_55, %c0_56] : memref<3x1x128xf32, #tpu.memory_space<vmem>>, vector<1x1x128xf32>
    %52 = vector.shape_cast %51 : vector<1x1x128xf32> to vector<1x128xf32>
    %53 = vector.broadcast %52 : vector<1x128xf32> to vector<128x128xf32>
    %54 = arith.addf %50, %53 : vector<128x128xf32>
    %cst_57 = arith.constant 0.000000e+00 : f32
    %55 = vector.broadcast %cst_57 : f32 to vector<128x128xf32>
    %56 = arith.maximumf %54, %55 : vector<128x128xf32>
    %57 = arith.truncf %56 : vector<128x128xf32> to vector<128x128xbf16>
    %c1_58 = arith.constant 1 : index
    %c0_59 = arith.constant 0 : index
    %c0_60 = arith.constant 0 : index
    %58 = vector.load %arg2[%c1_58, %c0_59, %c0_60] : memref<3x128x128xbf16, #tpu.memory_space<vmem>>, vector<1x128x128xbf16>
    %59 = vector.shape_cast %58 : vector<1x128x128xbf16> to vector<128x128xbf16>
    %cst_61 = arith.constant dense<0.000000e+00> : vector<128x128xf32>
    %60 = tpu.matmul %57, %59, %cst_61 {dimension_numbers = #tpu.dot_dimension_numbers<[1], [0], [0], [1], [0, 0, 1, 1], [], []>} : vector<128x128xbf16>, vector<128x128xbf16>, vector<128x128xf32> -> vector<128x128xf32>
    %61 = arith.truncf %60 : vector<128x128xf32> to vector<128x128xbf16>
    %c256_62 = arith.constant 256 : index
    %c0_63 = arith.constant 0 : index
    %62 = vector.load %arg8[%c256_62, %c0_63] : memref<384x128xbf16, #tpu.memory_space<vmem>>, vector<128x128xbf16>
    tpu.vector_store %arg8[%c256_62, %c0_63], %61 {strides = array<i32>} : memref<384x128xbf16, #tpu.memory_space<vmem>>, vector<128x128xbf16>,
    %c0_64 = arith.constant 0 : index
    %c0_65 = arith.constant 0 : index
    %63 = vector.load %arg0[%c0_64, %c0_65] : memref<384x384xbf16, #tpu.memory_space<vmem>>, vector<128x384xbf16>
    %c0_66 = arith.constant 0 : index
    %c0_67 = arith.constant 0 : index
    %64 = vector.load %arg8[%c0_66, %c0_67] : memref<384x128xbf16, #tpu.memory_space<vmem>>, vector<384x128xbf16>
    %cst_68 = arith.constant dense<0.000000e+00> : vector<128x128xf32>
    %65 = tpu.matmul %63, %64, %cst_68 {dimension_numbers = #tpu.dot_dimension_numbers<[1], [0], [0], [1], [0, 0, 1, 1], [], []>} : vector<128x384xbf16>, vector<384x128xbf16>, vector<128x128xf32> -> vector<128x128xf32>
    %c1_69 = arith.constant 1 : index
    %c0_70 = arith.constant 0 : index
    %c0_71 = arith.constant 0 : index
    %66 = vector.load %arg3[%c1_69, %c0_70, %c0_71] : memref<3x1x128xf32, #tpu.memory_space<vmem>>, vector<1x1x128xf32>
    %67 = vector.shape_cast %66 : vector<1x1x128xf32> to vector<1x128xf32>
    %68 = vector.broadcast %67 : vector<1x128xf32> to vector<128x128xf32>
    %69 = arith.addf %65, %68 : vector<128x128xf32>
    %cst_72 = arith.constant 0.000000e+00 : f32
    %70 = vector.broadcast %cst_72 : f32 to vector<128x128xf32>
    %71 = arith.maximumf %69, %70 : vector<128x128xf32>
    %72 = arith.truncf %71 : vector<128x128xf32> to vector<128x128xbf16>
    %c2 = arith.constant 2 : index
    %c0_73 = arith.constant 0 : index
    %c0_74 = arith.constant 0 : index
    %73 = vector.load %arg2[%c2, %c0_73, %c0_74] : memref<3x128x128xbf16, #tpu.memory_space<vmem>>, vector<1x128x128xbf16>
    %74 = vector.shape_cast %73 : vector<1x128x128xbf16> to vector<128x128xbf16>
    %cst_75 = arith.constant dense<0.000000e+00> : vector<128x128xf32>
    %75 = tpu.matmul %72, %74, %cst_75 {dimension_numbers = #tpu.dot_dimension_numbers<[1], [0], [0], [1], [0, 0, 1, 1], [], []>} : vector<128x128xbf16>, vector<128x128xbf16>, vector<128x128xf32> -> vector<128x128xf32>
    %76 = arith.truncf %75 : vector<128x128xf32> to vector<128x128xbf16>
    %c0_76 = arith.constant 0 : index
    %c0_77 = arith.constant 0 : index
    %77 = vector.load %arg7[%c0_76, %c0_77] : memref<384x128xbf16, #tpu.memory_space<vmem>>, vector<128x128xbf16>
    tpu.vector_store %arg7[%c0_76, %c0_77], %76 {strides = array<i32>} : memref<384x128xbf16, #tpu.memory_space<vmem>>, vector<128x128xbf16>,
    %c128_78 = arith.constant 128 : index
    %c0_79 = arith.constant 0 : index
    %78 = vector.load %arg0[%c128_78, %c0_79] : memref<384x384xbf16, #tpu.memory_space<vmem>>, vector<128x384xbf16>
    %c0_80 = arith.constant 0 : index
    %c0_81 = arith.constant 0 : index
    %79 = vector.load %arg8[%c0_80, %c0_81] : memref<384x128xbf16, #tpu.memory_space<vmem>>, vector<384x128xbf16>
    %cst_82 = arith.constant dense<0.000000e+00> : vector<128x128xf32>
    %80 = tpu.matmul %78, %79, %cst_82 {dimension_numbers = #tpu.dot_dimension_numbers<[1], [0], [0], [1], [0, 0, 1, 1], [], []>} : vector<128x384xbf16>, vector<384x128xbf16>, vector<128x128xf32> -> vector<128x128xf32>
    %c1_83 = arith.constant 1 : index
    %c0_84 = arith.constant 0 : index
    %c0_85 = arith.constant 0 : index
    %81 = vector.load %arg3[%c1_83, %c0_84, %c0_85] : memref<3x1x128xf32, #tpu.memory_space<vmem>>, vector<1x1x128xf32>
    %82 = vector.shape_cast %81 : vector<1x1x128xf32> to vector<1x128xf32>
    %83 = vector.broadcast %82 : vector<1x128xf32> to vector<128x128xf32>
    %84 = arith.addf %80, %83 : vector<128x128xf32>
    %cst_86 = arith.constant 0.000000e+00 : f32
    %85 = vector.broadcast %cst_86 : f32 to vector<128x128xf32>
    %86 = arith.maximumf %84, %85 : vector<128x128xf32>
    %87 = arith.truncf %86 : vector<128x128xf32> to vector<128x128xbf16>
    %c2_87 = arith.constant 2 : index
    %c0_88 = arith.constant 0 : index
    %c0_89 = arith.constant 0 : index
    %88 = vector.load %arg2[%c2_87, %c0_88, %c0_89] : memref<3x128x128xbf16, #tpu.memory_space<vmem>>, vector<1x128x128xbf16>
    %89 = vector.shape_cast %88 : vector<1x128x128xbf16> to vector<128x128xbf16>
    %cst_90 = arith.constant dense<0.000000e+00> : vector<128x128xf32>
    %90 = tpu.matmul %87, %89, %cst_90 {dimension_numbers = #tpu.dot_dimension_numbers<[1], [0], [0], [1], [0, 0, 1, 1], [], []>} : vector<128x128xbf16>, vector<128x128xbf16>, vector<128x128xf32> -> vector<128x128xf32>
    %91 = arith.truncf %90 : vector<128x128xf32> to vector<128x128xbf16>
    %c128_91 = arith.constant 128 : index
    %c0_92 = arith.constant 0 : index
    %92 = vector.load %arg7[%c128_91, %c0_92] : memref<384x128xbf16, #tpu.memory_space<vmem>>, vector<128x128xbf16>
    tpu.vector_store %arg7[%c128_91, %c0_92], %91 {strides = array<i32>} : memref<384x128xbf16, #tpu.memory_space<vmem>>, vector<128x128xbf16>,
    %c256_93 = arith.constant 256 : index
    %c0_94 = arith.constant 0 : index
    %93 = vector.load %arg0[%c256_93, %c0_94] : memref<384x384xbf16, #tpu.memory_space<vmem>>, vector<128x384xbf16>
    %c0_95 = arith.constant 0 : index
    %c0_96 = arith.constant 0 : index
    %94 = vector.load %arg8[%c0_95, %c0_96] : memref<384x128xbf16, #tpu.memory_space<vmem>>, vector<384x128xbf16>
    %cst_97 = arith.constant dense<0.000000e+00> : vector<128x128xf32>
    %95 = tpu.matmul %93, %94, %cst_97 {dimension_numbers = #tpu.dot_dimension_numbers<[1], [0], [0], [1], [0, 0, 1, 1], [], []>} : vector<128x384xbf16>, vector<384x128xbf16>, vector<128x128xf32> -> vector<128x128xf32>
    %c1_98 = arith.constant 1 : index
    %c0_99 = arith.constant 0 : index
    %c0_100 = arith.constant 0 : index
    %96 = vector.load %arg3[%c1_98, %c0_99, %c0_100] : memref<3x1x128xf32, #tpu.memory_space<vmem>>, vector<1x1x128xf32>
    %97 = vector.shape_cast %96 : vector<1x1x128xf32> to vector<1x128xf32>
    %98 = vector.broadcast %97 : vector<1x128xf32> to vector<128x128xf32>
    %99 = arith.addf %95, %98 : vector<128x128xf32>
    %cst_101 = arith.constant 0.000000e+00 : f32
    %100 = vector.broadcast %cst_101 : f32 to vector<128x128xf32>
    %101 = arith.maximumf %99, %100 : vector<128x128xf32>
    %102 = arith.truncf %101 : vector<128x128xf32> to vector<128x128xbf16>
    %c2_102 = arith.constant 2 : index
    %c0_103 = arith.constant 0 : index
    %c0_104 = arith.constant 0 : index
    %103 = vector.load %arg2[%c2_102, %c0_103, %c0_104] : memref<3x128x128xbf16, #tpu.memory_space<vmem>>, vector<1x128x128xbf16>
    %104 = vector.shape_cast %103 : vector<1x128x128xbf16> to vector<128x128xbf16>
    %cst_105 = arith.constant dense<0.000000e+00> : vector<128x128xf32>
    %105 = tpu.matmul %102, %104, %cst_105 {dimension_numbers = #tpu.dot_dimension_numbers<[1], [0], [0], [1], [0, 0, 1, 1], [], []>} : vector<128x128xbf16>, vector<128x128xbf16>, vector<128x128xf32> -> vector<128x128xf32>
    %106 = arith.truncf %105 : vector<128x128xf32> to vector<128x128xbf16>
    %c256_106 = arith.constant 256 : index
    %c0_107 = arith.constant 0 : index
    %107 = vector.load %arg7[%c256_106, %c0_107] : memref<384x128xbf16, #tpu.memory_space<vmem>>, vector<128x128xbf16>
    tpu.vector_store %arg7[%c256_106, %c0_107], %106 {strides = array<i32>} : memref<384x128xbf16, #tpu.memory_space<vmem>>, vector<128x128xbf16>,
    %c0_108 = arith.constant 0 : index
    %c0_109 = arith.constant 0 : index
    %108 = vector.load %arg0[%c0_108, %c0_109] : memref<384x384xbf16, #tpu.memory_space<vmem>>, vector<128x384xbf16>
    %c0_110 = arith.constant 0 : index
    %c0_111 = arith.constant 0 : index
    %109 = vector.load %arg7[%c0_110, %c0_111] : memref<384x128xbf16, #tpu.memory_space<vmem>>, vector<384x128xbf16>
    %cst_112 = arith.constant dense<0.000000e+00> : vector<128x128xf32>
    %110 = tpu.matmul %108, %109, %cst_112 {dimension_numbers = #tpu.dot_dimension_numbers<[1], [0], [0], [1], [0, 0, 1, 1], [], []>} : vector<128x384xbf16>, vector<384x128xbf16>, vector<128x128xf32> -> vector<128x128xf32>
    %c2_113 = arith.constant 2 : index
    %c0_114 = arith.constant 0 : index
    %c0_115 = arith.constant 0 : index
    %111 = vector.load %arg3[%c2_113, %c0_114, %c0_115] : memref<3x1x128xf32, #tpu.memory_space<vmem>>, vector<1x1x128xf32>
    %112 = vector.shape_cast %111 : vector<1x1x128xf32> to vector<1x128xf32>
    %113 = vector.broadcast %112 : vector<1x128xf32> to vector<128x128xf32>
    %114 = arith.addf %110, %113 : vector<128x128xf32>
    %cst_116 = arith.constant 0.000000e+00 : f32
    %115 = vector.broadcast %cst_116 : f32 to vector<128x128xf32>
    %116 = arith.maximumf %114, %115 : vector<128x128xf32>
    %117 = arith.truncf %116 : vector<128x128xf32> to vector<128x128xbf16>
    %c0_117 = arith.constant 0 : index
    %c0_118 = arith.constant 0 : index
    %118 = vector.load %arg4[%c0_117, %c0_118] : memref<128x128xbf16, #tpu.memory_space<vmem>>, vector<128x128xbf16>
    %cst_119 = arith.constant dense<0.000000e+00> : vector<128x128xf32>
    %119 = tpu.matmul %117, %118, %cst_119 {dimension_numbers = #tpu.dot_dimension_numbers<[1], [0], [0], [1], [0, 0, 1, 1], [], []>} : vector<128x128xbf16>, vector<128x128xbf16>, vector<128x128xf32> -> vector<128x128xf32>
    %c0_120 = arith.constant 0 : index
    %c0_121 = arith.constant 0 : index
    %120 = vector.load %arg5[%c0_120, %c0_121] : memref<1x128xf32, #tpu.memory_space<vmem>>, vector<1x128xf32>
    %121 = vector.broadcast %120 : vector<1x128xf32> to vector<128x128xf32>
    %122 = arith.addf %119, %121 : vector<128x128xf32>
    %c0_122 = arith.constant 0 : index
    %c0_123 = arith.constant 0 : index
    %123 = vector.load %arg6[%c0_122, %c0_123] : memref<384x128xf32, #tpu.memory_space<vmem>>, vector<128x128xf32>
    tpu.vector_store %arg6[%c0_122, %c0_123], %122 {strides = array<i32>} : memref<384x128xf32, #tpu.memory_space<vmem>>, vector<128x128xf32>,
    %c128_124 = arith.constant 128 : index
    %c0_125 = arith.constant 0 : index
    %124 = vector.load %arg0[%c128_124, %c0_125] : memref<384x384xbf16, #tpu.memory_space<vmem>>, vector<128x384xbf16>
    %c0_126 = arith.constant 0 : index
    %c0_127 = arith.constant 0 : index
    %125 = vector.load %arg7[%c0_126, %c0_127] : memref<384x128xbf16, #tpu.memory_space<vmem>>, vector<384x128xbf16>
    %cst_128 = arith.constant dense<0.000000e+00> : vector<128x128xf32>
    %126 = tpu.matmul %124, %125, %cst_128 {dimension_numbers = #tpu.dot_dimension_numbers<[1], [0], [0], [1], [0, 0, 1, 1], [], []>} : vector<128x384xbf16>, vector<384x128xbf16>, vector<128x128xf32> -> vector<128x128xf32>
    %c2_129 = arith.constant 2 : index
    %c0_130 = arith.constant 0 : index
    %c0_131 = arith.constant 0 : index
    %127 = vector.load %arg3[%c2_129, %c0_130, %c0_131] : memref<3x1x128xf32, #tpu.memory_space<vmem>>, vector<1x1x128xf32>
    %128 = vector.shape_cast %127 : vector<1x1x128xf32> to vector<1x128xf32>
    %129 = vector.broadcast %128 : vector<1x128xf32> to vector<128x128xf32>
    %130 = arith.addf %126, %129 : vector<128x128xf32>
    %cst_132 = arith.constant 0.000000e+00 : f32
    %131 = vector.broadcast %cst_132 : f32 to vector<128x128xf32>
    %132 = arith.maximumf %130, %131 : vector<128x128xf32>
    %133 = arith.truncf %132 : vector<128x128xf32> to vector<128x128xbf16>
    %c0_133 = arith.constant 0 : index
    %c0_134 = arith.constant 0 : index
    %134 = vector.load %arg4[%c0_133, %c0_134] : memref<128x128xbf16, #tpu.memory_space<vmem>>, vector<128x128xbf16>
    %cst_135 = arith.constant dense<0.000000e+00> : vector<128x128xf32>
    %135 = tpu.matmul %133, %134, %cst_135 {dimension_numbers = #tpu.dot_dimension_numbers<[1], [0], [0], [1], [0, 0, 1, 1], [], []>} : vector<128x128xbf16>, vector<128x128xbf16>, vector<128x128xf32> -> vector<128x128xf32>
    %c0_136 = arith.constant 0 : index
    %c0_137 = arith.constant 0 : index
    %136 = vector.load %arg5[%c0_136, %c0_137] : memref<1x128xf32, #tpu.memory_space<vmem>>, vector<1x128xf32>
    %137 = vector.broadcast %136 : vector<1x128xf32> to vector<128x128xf32>
    %138 = arith.addf %135, %137 : vector<128x128xf32>
    %c128_138 = arith.constant 128 : index
    %c0_139 = arith.constant 0 : index
    %139 = vector.load %arg6[%c128_138, %c0_139] : memref<384x128xf32, #tpu.memory_space<vmem>>, vector<128x128xf32>
    tpu.vector_store %arg6[%c128_138, %c0_139], %138 {strides = array<i32>} : memref<384x128xf32, #tpu.memory_space<vmem>>, vector<128x128xf32>,
    %c256_140 = arith.constant 256 : index
    %c0_141 = arith.constant 0 : index
    %140 = vector.load %arg0[%c256_140, %c0_141] : memref<384x384xbf16, #tpu.memory_space<vmem>>, vector<128x384xbf16>
    %c0_142 = arith.constant 0 : index
    %c0_143 = arith.constant 0 : index
    %141 = vector.load %arg7[%c0_142, %c0_143] : memref<384x128xbf16, #tpu.memory_space<vmem>>, vector<384x128xbf16>
    %cst_144 = arith.constant dense<0.000000e+00> : vector<128x128xf32>
    %142 = tpu.matmul %140, %141, %cst_144 {dimension_numbers = #tpu.dot_dimension_numbers<[1], [0], [0], [1], [0, 0, 1, 1], [], []>} : vector<128x384xbf16>, vector<384x128xbf16>, vector<128x128xf32> -> vector<128x128xf32>
    %c2_145 = arith.constant 2 : index
    %c0_146 = arith.constant 0 : index
    %c0_147 = arith.constant 0 : index
    %143 = vector.load %arg3[%c2_145, %c0_146, %c0_147] : memref<3x1x128xf32, #tpu.memory_space<vmem>>, vector<1x1x128xf32>
    %144 = vector.shape_cast %143 : vector<1x1x128xf32> to vector<1x128xf32>
    %145 = vector.broadcast %144 : vector<1x128xf32> to vector<128x128xf32>
    %146 = arith.addf %142, %145 : vector<128x128xf32>
    %cst_148 = arith.constant 0.000000e+00 : f32
    %147 = vector.broadcast %cst_148 : f32 to vector<128x128xf32>
    %148 = arith.maximumf %146, %147 : vector<128x128xf32>
    %149 = arith.truncf %148 : vector<128x128xf32> to vector<128x128xbf16>
    %c0_149 = arith.constant 0 : index
    %c0_150 = arith.constant 0 : index
    %150 = vector.load %arg4[%c0_149, %c0_150] : memref<128x128xbf16, #tpu.memory_space<vmem>>, vector<128x128xbf16>
    %cst_151 = arith.constant dense<0.000000e+00> : vector<128x128xf32>
    %151 = tpu.matmul %149, %150, %cst_151 {dimension_numbers = #tpu.dot_dimension_numbers<[1], [0], [0], [1], [0, 0, 1, 1], [], []>} : vector<128x128xbf16>, vector<128x128xbf16>, vector<128x128xf32> -> vector<128x128xf32>
    %c0_152 = arith.constant 0 : index
    %c0_153 = arith.constant 0 : index
    %152 = vector.load %arg5[%c0_152, %c0_153] : memref<1x128xf32, #tpu.memory_space<vmem>>, vector<1x128xf32>
    %153 = vector.broadcast %152 : vector<1x128xf32> to vector<128x128xf32>
    %154 = arith.addf %151, %153 : vector<128x128xf32>
    %c256_154 = arith.constant 256 : index
    %c0_155 = arith.constant 0 : index
    %155 = vector.load %arg6[%c256_154, %c0_155] : memref<384x128xf32, #tpu.memory_space<vmem>>, vector<128x128xf32>
    tpu.vector_store %arg6[%c256_154, %c0_155], %154 {strides = array<i32>} : memref<384x128xf32, #tpu.memory_space<vmem>>, vector<128x128xf32>,
    return
  }
}

</mosaic_0001>

<bundles_post_ra>
// kernel: gcn_model_forward.1
= control target key start
LH: loop header
LB: loop body
LE: loop exit
PB: predicated region body
PF: predicated region fallthrough
CT: control target
= control target key end

     0   :  { %s13629_s2 = inlined_call_operand.vmem [shape: bf16[3,128,128], index: 2, kind: input, shape index: {}]   ;;  %s13630_s1 = inlined_call_operand.vmem [shape: bf16[384,128], index: 1, kind: input, shape index: {}]   ;;  %s13631_s0 = inlined_call_operand.vmem [shape: bf16[384,384], index: 0, kind: input, shape index: {}]   ;;  %s13632_s3 = inlined_call_operand.vmem [shape: f32[3,1,128], index: 3, kind: input, shape index: {}]   ;;  %s13633_s4 = inlined_call_operand.vmem [shape: bf16[128,128], index: 4, kind: input, shape index: {}]   ;;  %s13634_s5 = inlined_call_operand.vmem [shape: f32[1,128], index: 5, kind: input, shape index: {}]   ;;  %s13635_s6 = inlined_call_operand.vmem [shape: f32[384,128], index: 6, kind: output, shape index: {}]  }
   0x1   :  { %v11121_v0 = vld [vmem:[%s13629_s2 + $0x38] sm:$0xff]   ;;  %v11123_v2 = vld [vmem:[%s13629_s2 + $0x30] sm:$0xff]   ;;  %v11125_v4 = vld [vmem:[%s13629_s2 + $0x28] sm:$0xff]  }
   0x2   :  { %v11122_v1 = vld [vmem:[%s13629_s2 + $0x38] sm:$0xff]   ;;  %10433 = vmatprep.subr.bf16.mxu0 %v11121_v0  ;;  %v11124_v3 = vld [vmem:[%s13629_s2 + $0x30] sm:$0xff]   ;;  %v11126_v5 = vld [vmem:[%s13629_s2 + $0x28] sm:$0xff]  }
   0x3   :  { %10465 = vmatprep.subr.bf16.mxu1 %v11122_v1  ;;  %10434 = vmatpush3.bf16.msra.mxu0 %v11121_v0  ;;  %v11127_v6 = vld [vmem:[%s13629_s2 + $0x20] sm:$0xff]   ;;  %v11129_v8 = vld [vmem:[%s13629_s2 + $0x18] sm:$0xff]   ;;  %v11131_v10 = vld [vmem:[%s13629_s2 + $0x10] sm:$0xff]  }
   0x4   :  { %10466 = vmatpush3.bf16.msra.mxu1 %v11122_v1  ;;  %10435 = vmatprep.subr.bf16.mxu0 %v11123_v2  ;;  %v11128_v7 = vld [vmem:[%s13629_s2 + $0x20] sm:$0xff]   ;;  %v11130_v9 = vld [vmem:[%s13629_s2 + $0x18] sm:$0xff]   ;;  %v11132_v11 = vld [vmem:[%s13629_s2 + $0x10] sm:$0xff]  }
   0x5   :  { %10467 = vmatprep.subr.bf16.mxu1 %v11124_v3  ;;  %v11137_v12 = vld [vmem:[%s13630_s1] sm:$0xff]   ;;  %v11133_v14 = vld [vmem:[%s13629_s2 + $0x8] sm:$0xff]   ;;  %v11141_v18 = vld [vmem:[%s13629_s2 + $0x38] sm:$0xff]  }
   0x6   :  { %v11138_v13 = vld [vmem:[%s13630_s1 + $0x40] sm:$0xff]   ;;  %10449 = vmatprep.mubr.bf16.mxu0 %v11137_v12  ;;  %v11134_v15 = vld [vmem:[%s13629_s2 + $0x8] sm:$0xff]   ;;  %v11142_v21 = vld [vmem:[%s13629_s2 + $0x30] sm:$0xff]  }
   0x7   :  { %10436 = vmatpush3.bf16.msra.mxu0 %v11123_v2  ;;  %10481 = vmatprep.mubr.bf16.mxu1 %v11138_v13  ;;  %v11135_v16 = vld [vmem:[%s13629_s2] sm:$0xff]   ;;  %v11139_v19 = vld [vmem:[%s13630_s1 + $0x8] sm:$0xff]   ;;  %v11143_v22 = vld [vmem:[%s13630_s1 + $0x10] sm:$0xff]  }
   0x8   :  { %10468 = vmatpush3.bf16.msra.mxu1 %v11124_v3  ;;  %10437 = vmatprep.subr.bf16.mxu0 %v11125_v4  ;;  %v11136_v17 = vld [vmem:[%s13629_s2] sm:$0xff]   ;;  %v11140_v20 = vld [vmem:[%s13630_s1 + $0x48] sm:$0xff]   ;;  %v11144_v23 = vld [vmem:[%s13630_s1 + $0x50] sm:$0xff]  }
   0x9   :  { %10469 = vmatprep.subr.bf16.mxu1 %v11126_v5  ;;  %v11147_v24 = vld [vmem:[%s13629_s2 + $0x28] sm:$0xff]   ;;  %v11145_v25 = vld [vmem:[%s13630_s1 + $0x18] sm:$0xff]   ;;  %v11148_v27 = vld [vmem:[%s13629_s2 + $0x20] sm:$0xff]  }
   0xa   :  { %v11146_v26 = vld [vmem:[%s13630_s1 + $0x58] sm:$0xff]   ;;  %v11149_v28 = vld [vmem:[%s13630_s1 + $0x20] sm:$0xff]   ;;  %v11151_v30 = vld [vmem:[%s13630_s1 + $0x28] sm:$0xff]  }
   0xb   :  { %10438 = vmatpush3.bf16.msra.mxu0 %v11125_v4  ;;  %v11150_v29 = vld [vmem:[%s13630_s1 + $0x60] sm:$0xff]   ;;  %v11153_v31 = vld [vmem:[%s13629_s2 + $0x18] sm:$0xff]   ;;  %v11152_v32 = vld [vmem:[%s13630_s1 + $0x68] sm:$0xff]  }
   0xc   :  { %10470 = vmatpush3.bf16.msra.mxu1 %v11126_v5  ;;  %10439 = vmatprep.subr.bf16.mxu0 %v11127_v6  ;;  %v11154_v33 = vld [vmem:[%s13629_s2 + $0x10] sm:$0xff]   ;;  %v11159_v36 = vld [vmem:[%s13629_s2 + $0x8] sm:$0xff]   ;;  %v11157_v37 = vld [vmem:[%s13630_s1 + $0x38] sm:$0xff]  }
   0xd   :  { %10471 = vmatprep.subr.bf16.mxu1 %v11128_v7  ;;  %v11155_v34 = vld [vmem:[%s13630_s1 + $0x30] sm:$0xff]   ;;  %v11158_v38 = vld [vmem:[%s13630_s1 + $0x78] sm:$0xff]   ;;  %v11160_v39 = vld [vmem:[%s13629_s2] sm:$0xff]  }
   0xe   :  { %v11156_v35 = vld [vmem:[%s13630_s1 + $0x70] sm:$0xff]   ;;  %v11161_v40 = vld [vmem:[%s13630_s1 + $0x80] sm:$0xff]   ;;  %v11162_v41 = vld [vmem:[%s13630_s1 + $0x88] sm:$0xff]  }
   0xf   :  { %10440 = vmatpush3.bf16.msra.mxu0 %v11127_v6  ;;  %v11163_v42 = vld [vmem:[%s13630_s1 + $0x90] sm:$0xff]   ;;  %v11164_v43 = vld [vmem:[%s13630_s1 + $0x98] sm:$0xff]   ;;  %v11165_v44 = vld [vmem:[%s13630_s1 + $0xa0] sm:$0xff]  }
  0x10   :  { %10472 = vmatpush3.bf16.msra.mxu1 %v11128_v7  ;;  %10441 = vmatprep.subr.bf16.mxu0 %v11129_v8  ;;  %v11166_v45 = vld [vmem:[%s13630_s1 + $0xa8] sm:$0xff]   ;;  %v11167_v46 = vld [vmem:[%s13630_s1 + $0xb0] sm:$0xff]   ;;  %v11168_v47 = vld [vmem:[%s13630_s1 + $0xb8] sm:$0xff]  }
  0x11   :  { %10473 = vmatprep.subr.bf16.mxu1 %v11130_v9  ;;  %v11188_v48 = vld [vmem:[%s13631_s0 + $0x4] ss:$12 sps:$4 sm:$0xff]   ;;  %v11224_v49 = vld [vmem:[%s13631_s0 + $0x8] ss:$12 sps:$4 sm:$0xff]  }
  0x13   :  { %10442 = vmatpush3.bf16.msra.mxu0 %v11129_v8 }
  0x14   :  { %10474 = vmatpush3.bf16.msra.mxu1 %v11130_v9  ;;  %10443 = vmatprep.subr.bf16.mxu0 %v11131_v10 }
  0x15   :  { %10475 = vmatprep.subr.bf16.mxu1 %v11132_v11 }
  0x17   :  { %10444 = vmatpush3.bf16.msra.mxu0 %v11131_v10 }
  0x18   :  { %10476 = vmatpush3.bf16.msra.mxu1 %v11132_v11  ;;  %10445 = vmatprep.subr.bf16.mxu0 %v11133_v14 }
  0x19   :  { %10477 = vmatprep.subr.bf16.mxu1 %v11134_v15 }
  0x1b   :  { %10446 = vmatpush3.bf16.msra.mxu0 %v11133_v14 }
  0x1c   :  { %10478 = vmatpush3.bf16.msra.mxu1 %v11134_v15  ;;  %10447 = vmatprep.subr.bf16.mxu0 %v11135_v16 }
  0x1d   :  { %10479 = vmatprep.subr.bf16.mxu1 %v11136_v17 }
  0x1f   :  { %10448 = vmatpush3.bf16.msra.mxu0 %v11135_v16 }
  0x20   :  { %10480 = vmatpush3.bf16.msra.mxu1 %v11136_v17  ;;  %10497 = vmatprep.subr.bf16.mxu0 %v11141_v18 }
  0x22   :  { %10450 = vmatmul.mubr.bf16.vlgmr.msra.gmra.mxu0 %v11139_v19 }
  0x23   :  { %10482 = vmatmul.mubr.bf16.vlgmr.msra.gmra.mxu1 %v11140_v20  ;;  %10498 = vmatpush3.bf16.msra.mxu0 %v11141_v18 }
  0x24   :  { %10499 = vmatprep.subr.bf16.mxu0 %v11142_v21  ;;  %10453 = vmatprep.mubr.bf16.mxu0 %v11143_v22 }
  0x25   :  { %10485 = vmatprep.mubr.bf16.mxu1 %v11144_v23 }
  0x27   :  { %10500 = vmatpush3.bf16.msra.mxu0 %v11142_v21 }
  0x28   :  { %10501 = vmatprep.subr.bf16.mxu0 %v11147_v24 }
  0x2a   :  { %10454 = vmatmul.mubr.bf16.gmra.mxu0 %v11145_v25 }
  0x2b   :  { %10486 = vmatmul.mubr.bf16.gmra.mxu1 %v11146_v26  ;;  %10502 = vmatpush3.bf16.msra.mxu0 %v11147_v24 }
  0x2c   :  { %10503 = vmatprep.subr.bf16.mxu0 %v11148_v27  ;;  %10457 = vmatprep.mubr.bf16.mxu0 %v11149_v28 }
  0x2d   :  { %10489 = vmatprep.mubr.bf16.mxu1 %v11150_v29 }
  0x2f   :  { %10504 = vmatpush3.bf16.msra.mxu0 %v11148_v27 }
  0x30   :  { %10505 = vmatprep.subr.bf16.mxu0 %v11153_v31 }
  0x32   :  { %10458 = vmatmul.mubr.bf16.gmra.mxu0 %v11151_v30 }
  0x33   :  { %10490 = vmatmul.mubr.bf16.gmra.mxu1 %v11152_v32  ;;  %10506 = vmatpush3.bf16.msra.mxu0 %v11153_v31 }
  0x34   :  { %10507 = vmatprep.subr.bf16.mxu0 %v11154_v33  ;;  %10461 = vmatprep.mubr.bf16.mxu0 %v11155_v34 }
  0x35   :  { %10493 = vmatprep.mubr.bf16.mxu1 %v11156_v35 }
  0x37   :  { %10508 = vmatpush3.bf16.msra.mxu0 %v11154_v33 }
  0x38   :  { %10509 = vmatprep.subr.bf16.mxu0 %v11159_v36 }
  0x3a   :  { %10462 = vmatmul.mubr.bf16.gmra.mxu0 %v11157_v37 }
  0x3b   :  { %10494 = vmatmul.mubr.bf16.gmra.mxu1 %v11158_v38  ;;  %10510 = vmatpush3.bf16.msra.mxu0 %v11159_v36 }
  0x3c   :  { %10511 = vmatprep.subr.bf16.mxu0 %v11160_v39  ;;  %10513 = vmatprep.mubr.bf16.mxu0 %v11161_v40 }
  0x3d   :  { %1330 = vmatprep.mubr.bf16.mxu1 %v11188_v48 }
  0x3f   :  { %10512 = vmatpush3.bf16.msra.mxu0 %v11160_v39 }
  0x42   :  { %10514 = vmatmul.mubr.bf16.vlgmr.msra.gmra.mxu0 %v11162_v41 }
  0x43   :  { %10517 = vmatprep.mubr.bf16.mxu0 %v11163_v42 }
  0x4a   :  { %10518 = vmatmul.mubr.bf16.gmra.mxu0 %v11164_v43 }
  0x4b   :  { %10521 = vmatprep.mubr.bf16.mxu0 %v11165_v44 }
  0x52   :  { %10522 = vmatmul.mubr.bf16.gmra.mxu0 %v11166_v45 }
  0x53   :  { %10525 = vmatprep.mubr.bf16.mxu0 %v11167_v46 }
  0x5a   :  { %10526 = vmatmul.mubr.bf16.gmra.mxu0 %v11168_v47 }
  0x5b   :  { %10545 = vmatprep.mubr.bf16.mxu0 %v11224_v49 }
  0xe2   :  { %v10451_v50 = vpop.f32.mrf.mxu0 }
  0xe3   :  { %v10483_v51 = vpop.f32.mrf.mxu1 }
  0xe4   :  { %v186_v52 = vpop.f32.mrf.mxu0 }
  0xe5   :  { %v491_v53 = vpop.f32.mrf.mxu1 }
  0xe6   :  { %v10452_v54 = vpop.f32.mrf.mxu0 }
  0xe7   :  { %v9100_v55 = vpack.c.bf16 %v10452_v54, %v10451_v50  ;;  %v10484_v56 = vpop.f32.mrf.mxu1 }
  0xe8   :  { %v9140_v57 = vpack.c.bf16 %v10484_v56, %v10483_v51  ;;  %v189_v58 = vpop.f32.mrf.mxu0 }
  0xe9   :  { %9452 = vst [vmem:[#allocation2 + $0x8] sm:$0xff] %v9100_v55   ;;  %v9095_v59 = vpack.c.bf16 %v189_v58, %v186_v52  ;;  %v494_v60 = vpop.f32.mrf.mxu1 }
  0xea   :  { %9460 = vst [vmem:[#allocation2 + $0x48] sm:$0xff] %v9140_v57   ;;  %v9135_v61 = vpack.c.bf16 %v494_v60, %v491_v53  ;;  %v10455_v62 = vpop.f32.mrf.mxu0 }
  0xeb   :  { %9096 = vst [vmem:[#allocation2] sm:$0xff] %v9095_v59   ;;  %v10487_v63 = vpop.f32.mrf.mxu1 }
  0xec   :  { %9459 = vst [vmem:[#allocation2 + $0x40] sm:$0xff] %v9135_v61   ;;  %v202_v0 = vpop.f32.mrf.mxu0 }
  0xed   :  { %v507_v1 = vpop.f32.mrf.mxu1 }
  0xee   :  { %v10456_v2 = vpop.f32.mrf.mxu0 }
  0xef   :  { %v9110_v3 = vpack.c.bf16 %v10456_v2, %v10455_v62  ;;  %v10488_v4 = vpop.f32.mrf.mxu1 }
  0xf0   :  { %v9150_v5 = vpack.c.bf16 %v10488_v4, %v10487_v63  ;;  %v205_v6 = vpop.f32.mrf.mxu0 }
  0xf1   :  { %9454 = vst [vmem:[#allocation2 + $0x18] sm:$0xff] %v9110_v3   ;;  %v9105_v7 = vpack.c.bf16 %v205_v6, %v202_v0  ;;  %v510_v8 = vpop.f32.mrf.mxu1  ;;  %v11181_v4 = vld [vmem:[#allocation2 + $0x48] sm:$0xff]  }
  0xf2   :  { %9462 = vst [vmem:[#allocation2 + $0x58] sm:$0xff] %v9150_v5   ;;  %v9145_v9 = vpack.c.bf16 %v510_v8, %v507_v1  ;;  %v10459_v10 = vpop.f32.mrf.mxu0 }
  0xf3   :  { %9453 = vst [vmem:[#allocation2 + $0x10] sm:$0xff] %v9105_v7   ;;  %v10491_v11 = vpop.f32.mrf.mxu1  ;;  %v11182_v7 = vld [vmem:[#allocation2 + $0x8] sm:$0xff]   ;;  %v11183_v8 = vld [vmem:[#allocation2 + $0x40] sm:$0xff]  }
  0xf4   :  { %9461 = vst [vmem:[#allocation2 + $0x50] sm:$0xff] %v9145_v9   ;;  %v218_v12 = vpop.f32.mrf.mxu0  ;;  %v11186_v9 = vld [vmem:[%s13631_s0] ss:$12 sps:$4 sm:$0xff]  }
  0xf5   :  { %v523_v13 = vpop.f32.mrf.mxu1 }
  0xf6   :  { %v10460_v14 = vpop.f32.mrf.mxu0 }
  0xf7   :  { %v9120_v15 = vpack.c.bf16 %v10460_v14, %v10459_v10  ;;  %v10492_v16 = vpop.f32.mrf.mxu1  ;;  %v11184_v10 = vld [vmem:[#allocation2] sm:$0xff]  }
  0xf8   :  { %v9160_v17 = vpack.c.bf16 %v10492_v16, %v10491_v11  ;;  %v221_v18 = vpop.f32.mrf.mxu0  ;;  %v11178_v62 = vld [vmem:[#allocation2 + $0x18] sm:$0xff]  }
  0xf9   :  { %9456 = vst [vmem:[#allocation2 + $0x28] sm:$0xff] %v9120_v15   ;;  %v9115_v19 = vpack.c.bf16 %v221_v18, %v218_v12  ;;  %v526_v20 = vpop.f32.mrf.mxu1  ;;  %v11177_v58 = vld [vmem:[#allocation2 + $0x58] sm:$0xff]  }
  0xfa   :  { %9464 = vst [vmem:[#allocation2 + $0x68] sm:$0xff] %v9160_v17   ;;  %v9155_v21 = vpack.c.bf16 %v526_v20, %v523_v13  ;;  %v10463_v22 = vpop.f32.mrf.mxu0  ;;  %v11180_v2 = vld [vmem:[#allocation2 + $0x10] sm:$0xff]   ;;  %v11196_v12 = vld [vmem:[%s13631_s0 + $0x1c] ss:$12 sps:$4 sm:$0xff]   ;;  %v11198_v18 = vld [vmem:[%s13631_s0 + $0x18] ss:$12 sps:$4 sm:$0xff]  }
  0xfb   :  { %9455 = vst [vmem:[#allocation2 + $0x20] sm:$0xff] %v9115_v19   ;;  %v10495_v23 = vpop.f32.mrf.mxu1  ;;  %v11179_v63 = vld [vmem:[#allocation2 + $0x50] sm:$0xff]  }
  0xfc   :  { %9463 = vst [vmem:[#allocation2 + $0x60] sm:$0xff] %v9155_v21   ;;  %v234_v24 = vpop.f32.mrf.mxu0  ;;  %v11205_v21 = vld [vmem:[%s13631_s0 + $0x34] ss:$12 sps:$4 sm:$0xff]  }
  0xfd   :  { %v539_v25 = vpop.f32.mrf.mxu1 }
  0xfe   :  { %v10464_v26 = vpop.f32.mrf.mxu0 }
  0xff   :  { %v9130_v27 = vpack.c.bf16 %v10464_v26, %v10463_v22  ;;  %v10496_v28 = vpop.f32.mrf.mxu1  ;;  %v11207_v26 = vld [vmem:[%s13631_s0 + $0x30] ss:$12 sps:$4 sm:$0xff]  }
 0x100   :  { %v9170_v29 = vpack.c.bf16 %v10496_v28, %v10495_v23  ;;  %v237_v30 = vpop.f32.mrf.mxu0  ;;  %v11174_v52 = vld [vmem:[#allocation2 + $0x28] sm:$0xff]   ;;  %v11204_v28 = vld [vmem:[#allocation2 + $0x58] sm:$0xff]  }
 0x101   :  { %9458 = vst [vmem:[#allocation2 + $0x38] sm:$0xff] %v9130_v27   ;;  %v9125_v31 = vpack.c.bf16 %v237_v30, %v234_v24  ;;  %v542_v32 = vpop.f32.mrf.mxu1  ;;  %v11173_v48 = vld [vmem:[#allocation2 + $0x68] sm:$0xff]   ;;  %v11208_v30 = vld [vmem:[#allocation2 + $0x18] sm:$0xff]  }
 0x102   :  { %9466 = vst [vmem:[#allocation2 + $0x78] sm:$0xff] %v9170_v29   ;;  %v9165_v33 = vpack.c.bf16 %v542_v32, %v539_v25  ;;  %v10515_v34 = vpop.f32.mrf.mxu0  ;;  %v11176_v56 = vld [vmem:[#allocation2 + $0x20] sm:$0xff]   ;;  %v11195_v20 = vld [vmem:[#allocation2 + $0x68] sm:$0xff]   ;;  %v11210_v32 = vld [vmem:[#allocation2 + $0x50] sm:$0xff]  }
 0x103   :  { %9457 = vst [vmem:[#allocation2 + $0x30] sm:$0xff] %v9125_v31   ;;  %v11175_v53 = vld [vmem:[#allocation2 + $0x60] sm:$0xff]   ;;  %v11199_v22 = vld [vmem:[#allocation2 + $0x28] sm:$0xff]  }
 0x104   :  { %9465 = vst [vmem:[#allocation2 + $0x70] sm:$0xff] %v9165_v33   ;;  %v796_v35 = vpop.f32.mrf.mxu0  ;;  %v11201_v24 = vld [vmem:[#allocation2 + $0x60] sm:$0xff]   ;;  %v11214_v29 = vld [vmem:[%s13631_s0 + $0x4c] ss:$12 sps:$4 sm:$0xff]   ;;  %v11211_v33 = vld [vmem:[#allocation2 + $0x10] sm:$0xff]  }
 0x105   :  { %v11202_v25 = vld [vmem:[#allocation2 + $0x20] sm:$0xff]  }
 0x106   :  { %v10516_v36 = vpop.f32.mrf.mxu0 }
 0x107   :  { %v9180_v37 = vpack.c.bf16 %v10516_v36, %v10515_v34  ;;  %v11216_v36 = vld [vmem:[%s13631_s0 + $0x48] ss:$12 sps:$4 sm:$0xff]  }
 0x108   :  { %v799_v38 = vpop.f32.mrf.mxu0  ;;  %v11170_v39 = vld [vmem:[#allocation2 + $0x38] sm:$0xff]  }
 0x109   :  { %9468 = vst [vmem:[#allocation2 + $0x88] sm:$0xff] %v9180_v37   ;;  %v9175_v40 = vpack.c.bf16 %v799_v38, %v796_v35  ;;  %v11169_v41 = vld [vmem:[#allocation2 + $0x78] sm:$0xff]   ;;  %v11213_v35 = vld [vmem:[#allocation2 + $0x48] sm:$0xff]   ;;  %v11222_v37 = vld [vmem:[%s13631_s0 + $0x64] ss:$12 sps:$4 sm:$0xff]  }
 0x10a   :  { %v10519_v42 = vpop.f32.mrf.mxu0  ;;  %9569 = vmatprep.subr.bf16.mxu1 %v11169_v41  ;;  %v11172_v46 = vld [vmem:[#allocation2 + $0x30] sm:$0xff]   ;;  %v11185_v11 = vld [vmem:[#allocation2 + $0x78] sm:$0xff]   ;;  %v11217_v38 = vld [vmem:[#allocation2 + $0x8] sm:$0xff]  }
 0x10b   :  { %9467 = vst [vmem:[#allocation2 + $0x80] sm:$0xff] %v9175_v40   ;;  %v11171_v43 = vld [vmem:[#allocation2 + $0x70] sm:$0xff]   ;;  %9570 = vmatpush3.bf16.msra.mxu1 %v11170_v39  ;;  %v11190_v14 = vld [vmem:[#allocation2 + $0x38] sm:$0xff]   ;;  %v11219_v40 = vld [vmem:[#allocation2 + $0x40] sm:$0xff]  }
 0x10c   :  { %v812_v44 = vpop.f32.mrf.mxu0  ;;  %9571 = vmatprep.subr.bf16.mxu1 %v11171_v43  ;;  %v11192_v16 = vld [vmem:[#allocation2 + $0x70] sm:$0xff]   ;;  %v11227_v41 = vld [vmem:[%s13629_s2 + $0x78] sm:$0xff]   ;;  %v11226_v43 = vld [vmem:[%s13631_s0 + $0x20] ss:$12 sps:$4 sm:$0xff]  }
 0x10d   :  { %v11193_v17 = vld [vmem:[#allocation2 + $0x30] sm:$0xff]  }
 0x10e   :  { %v10520_v45 = vpop.f32.mrf.mxu0 }
 0x10f   :  { %v9190_v47 = vpack.c.bf16 %v10520_v45, %v10519_v42  ;;  %9572 = vmatpush3.bf16.msra.mxu1 %v11172_v46  ;;  %v11220_v42 = vld [vmem:[#allocation2] sm:$0xff]   ;;  %v11228_v46 = vld [vmem:[%s13629_s2 + $0x70] sm:$0xff]  }
 0x110   :  { %v815_v49 = vpop.f32.mrf.mxu0  ;;  %9573 = vmatprep.subr.bf16.mxu1 %v11173_v48  ;;  %v11212_v34 = vld [vmem:[#allocation2 + $0x88] sm:$0xff]   ;;  %v11231_v48 = vld [vmem:[%s13631_s0 + $0x38] ss:$12 sps:$4 sm:$0xff]  }
 0x111   :  { %9470 = vst [vmem:[#allocation2 + $0x98] sm:$0xff] %v9190_v47   ;;  %v9185_v50 = vpack.c.bf16 %v815_v49, %v812_v44  ;;  %v11221_v44 = vld [vmem:[#allocation2 + $0x78] sm:$0xff]   ;;  %v11225_v45 = vld [vmem:[%s13631_s0 + $0x60] ss:$12 sps:$4 sm:$0xff]  }
 0x112   :  { %v10523_v51 = vpop.f32.mrf.mxu0  ;;  %v11218_v39 = vld [vmem:[#allocation2 + $0x80] sm:$0xff]   ;;  %v11229_v47 = vld [vmem:[%s13631_s0 + $0x7c] ss:$12 sps:$4 sm:$0xff]  }
 0x113   :  { %9469 = vst [vmem:[#allocation2 + $0x90] sm:$0xff] %v9185_v50   ;;  %9574 = vmatpush3.bf16.msra.mxu1 %v11174_v52  ;;  %v11234_v49 = vld [vmem:[%s13629_s2 + $0x68] sm:$0xff]   ;;  %v11233_v50 = vld [vmem:[%s13631_s0 + $0x50] ss:$12 sps:$4 sm:$0xff]   ;;  %v11235_v52 = vld [vmem:[%s13629_s2 + $0x60] sm:$0xff]  }
 0x114   :  { %v828_v54 = vpop.f32.mrf.mxu0  ;;  %9575 = vmatprep.subr.bf16.mxu1 %v11175_v53  ;;  %v11236_v53 = vld [vmem:[%s13631_s0 + $0x94] ss:$12 sps:$4 sm:$0xff]  }
 0x116   :  { %v10524_v55 = vpop.f32.mrf.mxu0 }
 0x117   :  { %v9200_v57 = vpack.c.bf16 %v10524_v55, %v10523_v51  ;;  %9576 = vmatpush3.bf16.msra.mxu1 %v11176_v56  ;;  %v11232_v51 = vld [vmem:[%s13631_s0 + $0x78] ss:$12 sps:$4 sm:$0xff]   ;;  %v11240_v56 = vld [vmem:[%s13631_s0 + $0x80] ss:$12 sps:$4 sm:$0xff]  }
 0x118   :  { %v831_v59 = vpop.f32.mrf.mxu0  ;;  %9577 = vmatprep.subr.bf16.mxu1 %v11177_v58  ;;  %v11203_v27 = vld [vmem:[#allocation2 + $0x98] sm:$0xff]   ;;  %v11242_v58 = vld [vmem:[%s13629_s2 + $0x50] sm:$0xff]  }
 0x119   :  { %9472 = vst [vmem:[#allocation2 + $0xa8] sm:$0xff] %v9200_v57   ;;  %v9195_v60 = vpack.c.bf16 %v831_v59, %v828_v54  ;;  %v11238_v54 = vld [vmem:[%s13631_s0 + $0x68] ss:$12 sps:$4 sm:$0xff]   ;;  %v11241_v55 = vld [vmem:[%s13629_s2 + $0x58] sm:$0xff]  }
 0x11a   :  { %v10527_v61 = vpop.f32.mrf.mxu0  ;;  %v11209_v31 = vld [vmem:[#allocation2 + $0x90] sm:$0xff]   ;;  %v11243_v59 = vld [vmem:[%s13631_s0 + $0xac] ss:$12 sps:$4 sm:$0xff]  }
 0x11b   :  { %9471 = vst [vmem:[#allocation2 + $0xa0] sm:$0xff] %v9195_v60   ;;  %9578 = vmatpush3.bf16.msra.mxu1 %v11178_v62  ;;  %v11239_v57 = vld [vmem:[%s13631_s0 + $0x90] ss:$12 sps:$4 sm:$0xff]   ;;  %v11245_v60 = vld [vmem:[%s13631_s0 + $0x98] ss:$12 sps:$4 sm:$0xff]  }
 0x11c   :  { %v844_v0 = vpop.f32.mrf.mxu0  ;;  %9579 = vmatprep.subr.bf16.mxu1 %v11179_v63  ;;  %v11247_v62 = vld [vmem:[%s13631_s0 + $0xb0] ss:$12 sps:$4 sm:$0xff]   ;;  %v11246_v63 = vld [vmem:[%s13631_s0 + $0xa8] ss:$12 sps:$4 sm:$0xff]  }
 0x11e   :  { %v10528_v1 = vpop.f32.mrf.mxu0 }
 0x11f   :  { %v9210_v3 = vpack.c.bf16 %v10528_v1, %v10527_v61  ;;  %9580 = vmatpush3.bf16.msra.mxu1 %v11180_v2  ;;  %v11248_v61 = vld [vmem:[%s13629_s2 + $0x48] sm:$0xff]   ;;  %v11253_v1 = vld [vmem:[%s13631_s0 + $0xc4] ss:$12 sps:$4 sm:$0xff]  }
 0x120   :  { %v847_v5 = vpop.f32.mrf.mxu0  ;;  %9581 = vmatprep.subr.bf16.mxu1 %v11181_v4  ;;  %v11194_v19 = vld [vmem:[#allocation2 + $0xa8] sm:$0xff]   ;;  %v11254_v4 = vld [vmem:[#allocation2 + $0x38] sm:$0xff]  }
 0x121   :  { %9474 = vst [vmem:[#allocation2 + $0xb8] sm:$0xff] %v9210_v3   ;;  %v9205_v6 = vpack.c.bf16 %v847_v5, %v844_v0  ;;  %v11249_v0 = vld [vmem:[%s13629_s2 + $0x40] sm:$0xff]   ;;  %v11255_v5 = vld [vmem:[#allocation2 + $0x70] sm:$0xff]  }
 0x122   :  { %v11200_v23 = vld [vmem:[#allocation2 + $0xa0] sm:$0xff]  }
 0x123   :  { %9473 = vst [vmem:[#allocation2 + $0xb0] sm:$0xff] %v9205_v6   ;;  %9582 = vmatpush3.bf16.msra.mxu1 %v11182_v7  ;;  %v11251_v3 = vld [vmem:[%s13631_s0 + $0xc0] ss:$12 sps:$4 sm:$0xff]   ;;  %v11256_v6 = vld [vmem:[#allocation2 + $0x30] sm:$0xff]  }
 0x124   :  { %9583 = vmatprep.subr.bf16.mxu1 %v11183_v8  ;;  %v11257_v7 = vld [vmem:[#allocation2 + $0x68] sm:$0xff]  }
 0x125   :  { %v11258_v8 = vld [vmem:[#allocation2 + $0x28] sm:$0xff]  }
 0x127   :  { %9584 = vmatpush3.bf16.msra.mxu1 %v11184_v10  ;;  %v11260_v10 = vld [vmem:[#allocation2 + $0x20] sm:$0xff]  }
 0x128   :  { %v11189_v13 = vld [vmem:[#allocation2 + $0xb8] sm:$0xff]   ;;  %9665 = vmatprep.subr.bf16.mxu1 %v11185_v11 }
 0x129   :  { %10529 = vmatprep.subr.bf16.mxu0 %v11189_v13  ;;  %v12023_v2 = vld [vmem:[#allocation2 + $0xb8] sm:$0xff]  }
 0x12a   :  { %v11191_v15 = vld [vmem:[#allocation2 + $0xb0] sm:$0xff]   ;;  %1331 = vmatmul.mubr.bf16.vlgmr.msra.gmra.mxu1 %v11186_v9  ;;  %10530 = vmatpush3.bf16.msra.mxu0 %v11189_v13  ;;  %v11259_v9 = vld [vmem:[#allocation2 + $0x60] sm:$0xff]   ;;  %v11261_v11 = vld [vmem:[#allocation2 + $0x58] sm:$0xff]  }
 0x12b   :  { %9666 = vmatpush3.bf16.msra.mxu1 %v11190_v14  ;;  %10531 = vmatprep.subr.bf16.mxu0 %v11191_v15  ;;  %v11263_v13 = vld [vmem:[#allocation2 + $0x50] sm:$0xff]  }
 0x12c   :  { %9667 = vmatprep.subr.bf16.mxu1 %v11192_v16  ;;  %1338 = vmatprep.mubr.bf16.mxu1 %v11196_v12  ;;  %v11262_v12 = vld [vmem:[#allocation2 + $0x18] sm:$0xff]   ;;  %v11264_v14 = vld [vmem:[#allocation2 + $0x10] sm:$0xff]   ;;  %v11266_v16 = vld [vmem:[#allocation2 + $0x8] sm:$0xff]  }
 0x12e   :  { %10532 = vmatpush3.bf16.msra.mxu0 %v11191_v15  ;;  %v11265_v15 = vld [vmem:[#allocation2 + $0x48] sm:$0xff]  }
 0x12f   :  { %9668 = vmatpush3.bf16.msra.mxu1 %v11193_v17  ;;  %10533 = vmatprep.subr.bf16.mxu0 %v11194_v19  ;;  %v11267_v17 = vld [vmem:[#allocation2 + $0x40] sm:$0xff]  }
 0x130   :  { %9669 = vmatprep.subr.bf16.mxu1 %v11195_v20  ;;  %v11272_v20 = vld [vmem:[%s13631_s0 + $0xd8] ss:$12 sps:$4 sm:$0xff]  }
 0x132   :  { %1339 = vmatmul.mubr.bf16.gmra.mxu1 %v11198_v18  ;;  %10534 = vmatpush3.bf16.msra.mxu0 %v11194_v19  ;;  %v11268_v18 = vld [vmem:[#allocation2] sm:$0xff]   ;;  %v11269_v19 = vld [vmem:[%s13631_s0 + $0xdc] ss:$12 sps:$4 sm:$0xff]  }
 0x133   :  { %9670 = vmatpush3.bf16.msra.mxu1 %v11199_v22  ;;  %10535 = vmatprep.subr.bf16.mxu0 %v11200_v23  ;;  %v11277_v22 = vld [vmem:[%s13631_s0 + $0xf0] ss:$12 sps:$4 sm:$0xff]  }
 0x134   :  { %9671 = vmatprep.subr.bf16.mxu1 %v11201_v24  ;;  %1346 = vmatprep.mubr.bf16.mxu1 %v11205_v21  ;;  %v11274_v21 = vld [vmem:[%s13631_s0 + $0xf4] ss:$12 sps:$4 sm:$0xff]  }
 0x135   :  { %v11282_v24 = vld [vmem:[%s13631_s0 + $0x108] ss:$12 sps:$4 sm:$0xff]  }
 0x136   :  { %10536 = vmatpush3.bf16.msra.mxu0 %v11200_v23  ;;  %v11279_v23 = vld [vmem:[%s13631_s0 + $0x10c] ss:$12 sps:$4 sm:$0xff]  }
 0x137   :  { %9672 = vmatpush3.bf16.msra.mxu1 %v11202_v25  ;;  %10537 = vmatprep.subr.bf16.mxu0 %v11203_v27  ;;  %v11284_v25 = vld [vmem:[%s13631_s0 + $0x124] ss:$12 sps:$4 sm:$0xff]  }
 0x138   :  { %9673 = vmatprep.subr.bf16.mxu1 %v11204_v28  ;;  %v11290_v28 = vld [vmem:[%s13631_s0 + $0x138] ss:$12 sps:$4 sm:$0xff]  }
 0x13a   :  { %1347 = vmatmul.mubr.bf16.gmra.mxu1 %v11207_v26  ;;  %10538 = vmatpush3.bf16.msra.mxu0 %v11203_v27  ;;  %v11287_v26 = vld [vmem:[%s13631_s0 + $0x120] ss:$12 sps:$4 sm:$0xff]   ;;  %v11288_v27 = vld [vmem:[%s13631_s0 + $0x13c] ss:$12 sps:$4 sm:$0xff]  }
 0x13b   :  { %9674 = vmatpush3.bf16.msra.mxu1 %v11208_v30  ;;  %10539 = vmatprep.subr.bf16.mxu0 %v11209_v31  ;;  %v11297_v30 = vld [vmem:[%s13631_s0 + $0x150] ss:$12 sps:$4 sm:$0xff]  }
 0x13c   :  { %9675 = vmatprep.subr.bf16.mxu1 %v11210_v32  ;;  %1354 = vmatprep.mubr.bf16.mxu1 %v11214_v29  ;;  %v11295_v29 = vld [vmem:[%s13631_s0 + $0x154] ss:$12 sps:$4 sm:$0xff]  }
 0x13d   :  { %v11304_v32 = vld [vmem:[%s13631_s0 + $0x168] ss:$12 sps:$4 sm:$0xff]  }
 0x13e   :  { %10540 = vmatpush3.bf16.msra.mxu0 %v11209_v31  ;;  %v11302_v31 = vld [vmem:[%s13631_s0 + $0x16c] ss:$12 sps:$4 sm:$0xff]  }
 0x13f   :  { %9676 = vmatpush3.bf16.msra.mxu1 %v11211_v33  ;;  %10541 = vmatprep.subr.bf16.mxu0 %v11212_v34 }
 0x140   :  { %9677 = vmatprep.subr.bf16.mxu1 %v11213_v35 }
 0x142   :  { %1355 = vmatmul.mubr.bf16.gmra.mxu1 %v11216_v36  ;;  %10542 = vmatpush3.bf16.msra.mxu0 %v11212_v34 }
 0x143   :  { %9678 = vmatpush3.bf16.msra.mxu1 %v11217_v38  ;;  %10543 = vmatprep.subr.bf16.mxu0 %v11218_v39 }
 0x144   :  { %9679 = vmatprep.subr.bf16.mxu1 %v11219_v40  ;;  %1362 = vmatprep.mubr.bf16.mxu1 %v11222_v37 }
 0x146   :  { %10544 = vmatpush3.bf16.msra.mxu0 %v11218_v39 }
 0x147   :  { %9680 = vmatpush3.bf16.msra.mxu1 %v11220_v42  ;;  %10561 = vmatprep.subr.bf16.mxu0 %v11227_v41 }
 0x148   :  { %9761 = vmatprep.subr.bf16.mxu1 %v11221_v44 }
 0x149   :  { %10546 = vmatmul.mubr.bf16.vlgmr.msra.gmra.mxu0 %v11226_v43 }
 0x14a   :  { %1363 = vmatmul.mubr.bf16.gmra.mxu1 %v11225_v45  ;;  %10562 = vmatpush3.bf16.msra.mxu0 %v11227_v41 }
 0x14b   :  { %10563 = vmatprep.subr.bf16.mxu0 %v11228_v46  ;;  %1370 = vmatprep.mubr.bf16.mxu1 %v11229_v47 }
 0x14c   :  { %10549 = vmatprep.mubr.bf16.mxu0 %v11231_v48 }
 0x14e   :  { %10564 = vmatpush3.bf16.msra.mxu0 %v11228_v46 }
 0x14f   :  { %10565 = vmatprep.subr.bf16.mxu0 %v11234_v49 }
 0x151   :  { %10550 = vmatmul.mubr.bf16.gmra.mxu0 %v11233_v50 }
 0x152   :  { %1371 = vmatmul.mubr.bf16.gmra.mxu1 %v11232_v51  ;;  %10566 = vmatpush3.bf16.msra.mxu0 %v11234_v49 }
 0x153   :  { %10567 = vmatprep.subr.bf16.mxu0 %v11235_v52  ;;  %1378 = vmatprep.mubr.bf16.mxu1 %v11236_v53 }
 0x154   :  { %10553 = vmatprep.mubr.bf16.mxu0 %v11238_v54 }
 0x156   :  { %10568 = vmatpush3.bf16.msra.mxu0 %v11235_v52  ;;  %v12074_v52 = vld [vmem:[%s13632_s3] ss:$0 sm:$0xff] }
 0x157   :  { %10569 = vmatprep.subr.bf16.mxu0 %v11241_v55 }
 0x159   :  { %10554 = vmatmul.mubr.bf16.gmra.mxu0 %v11240_v56 }
 0x15a   :  { %1379 = vmatmul.mubr.bf16.gmra.mxu1 %v11239_v57  ;;  %10570 = vmatpush3.bf16.msra.mxu0 %v11241_v55 }
 0x15b   :  { %10571 = vmatprep.subr.bf16.mxu0 %v11242_v58  ;;  %1386 = vmatprep.mubr.bf16.mxu1 %v11243_v59 }
 0x15c   :  { %10557 = vmatprep.mubr.bf16.mxu0 %v11245_v60 }
 0x15e   :  { %10572 = vmatpush3.bf16.msra.mxu0 %v11242_v58 }
 0x15f   :  { %10573 = vmatprep.subr.bf16.mxu0 %v11248_v61 }
 0x161   :  { %10558 = vmatmul.mubr.bf16.gmra.mxu0 %v11247_v62 }
 0x162   :  { %1387 = vmatmul.mubr.bf16.gmra.mxu1 %v11246_v63  ;;  %10574 = vmatpush3.bf16.msra.mxu0 %v11248_v61 }
 0x163   :  { %10575 = vmatprep.subr.bf16.mxu0 %v11249_v0  ;;  %2149 = vmatprep.mubr.bf16.mxu1 %v11253_v1 }
 0x166   :  { %10576 = vmatpush3.bf16.msra.mxu0 %v11249_v0 }
 0x167   :  { %10593 = vmatprep.subr.bf16.mxu0 %v12023_v2 }
 0x16a   :  { %2150 = vmatmul.mubr.bf16.vlgmr.msra.gmra.mxu1 %v11251_v3 }
 0x16b   :  { %9762 = vmatpush3.bf16.msra.mxu1 %v11254_v4  ;;  %2157 = vmatprep.mubr.bf16.mxu1 %v11269_v19 }
 0x16c   :  { %9763 = vmatprep.subr.bf16.mxu1 %v11255_v5 }
 0x16f   :  { %9764 = vmatpush3.bf16.msra.mxu1 %v11256_v6 }
 0x170   :  { %9765 = vmatprep.subr.bf16.mxu1 %v11257_v7 }
 0x172   :  { %2158 = vmatmul.mubr.bf16.gmra.mxu1 %v11272_v20 }
 0x173   :  { %9766 = vmatpush3.bf16.msra.mxu1 %v11258_v8  ;;  %2165 = vmatprep.mubr.bf16.mxu1 %v11274_v21 }
 0x174   :  { %9767 = vmatprep.subr.bf16.mxu1 %v11259_v9 }
 0x177   :  { %9768 = vmatpush3.bf16.msra.mxu1 %v11260_v10 }
 0x178   :  { %9769 = vmatprep.subr.bf16.mxu1 %v11261_v11 }
 0x17a   :  { %2166 = vmatmul.mubr.bf16.gmra.mxu1 %v11277_v22 }
 0x17b   :  { %9770 = vmatpush3.bf16.msra.mxu1 %v11262_v12  ;;  %2173 = vmatprep.mubr.bf16.mxu1 %v11279_v23 }
 0x17c   :  { %9771 = vmatprep.subr.bf16.mxu1 %v11263_v13 }
 0x17f   :  { %9772 = vmatpush3.bf16.msra.mxu1 %v11264_v14 }
 0x180   :  { %9773 = vmatprep.subr.bf16.mxu1 %v11265_v15 }
 0x182   :  { %2174 = vmatmul.mubr.bf16.gmra.mxu1 %v11282_v24 }
 0x183   :  { %9774 = vmatpush3.bf16.msra.mxu1 %v11266_v16  ;;  %2181 = vmatprep.mubr.bf16.mxu1 %v11284_v25 }
 0x184   :  { %9775 = vmatprep.subr.bf16.mxu1 %v11267_v17 }
 0x187   :  { %9776 = vmatpush3.bf16.msra.mxu1 %v11268_v18 }
 0x18a   :  { %2182 = vmatmul.mubr.bf16.gmra.mxu1 %v11287_v26 }
 0x18b   :  { %2189 = vmatprep.mubr.bf16.mxu1 %v11288_v27 }
 0x192   :  { %2190 = vmatmul.mubr.bf16.gmra.mxu1 %v11290_v28 }
 0x193   :  { %2197 = vmatprep.mubr.bf16.mxu1 %v11295_v29 }
 0x19a   :  { %2198 = vmatmul.mubr.bf16.gmra.mxu1 %v11297_v30 }
 0x19b   :  { %2205 = vmatprep.mubr.bf16.mxu1 %v11302_v31  ;;  %v11271_v31 = vld [vmem:[#allocation2 + $0xb0] sm:$0xff]  }
 0x1a2   :  { %2206 = vmatmul.mubr.bf16.gmra.mxu1 %v11304_v32 }
 0x1ea   :  { %v9585_v33 = vpop.f32.mrf.mxu1 }
 0x1ec   :  { %v9586_v34 = vpop.f32.mrf.mxu1 }
 0x1ed   :  { %v9587_v48 = vadd.f32 %v9586_v34, %v9585_v33 }
 0x1ee   :  { %v9588_v35 = vpop.f32.mrf.mxu1 }
 0x1ef   :  { %v1333_v58 = vadd.f32 %v9587_v48, %v12074_v52 }
 0x1f0   :  { %v9589_v36 = vpop.f32.mrf.mxu1 }
 0x1f1   :  { %v9590_v54 = vadd.f32 %v9589_v36, %v9588_v35 }
 0x1f2   :  { %v9591_v37 = vpop.f32.mrf.mxu1 }
 0x1f3   :  { %v1336_v1 = vadd.f32 %v9590_v54, %v12074_v52 }
 0x1f4   :  { %v9592_v38 = vpop.f32.mrf.mxu1 }
 0x1f5   :  { %v9593_v51 = vadd.f32 %v9592_v38, %v9591_v37 }
 0x1f6   :  { %v9594_v39 = vpop.f32.mrf.mxu1 }
 0x1f7   :  { %v1341_v60 = vadd.f32 %v9593_v51, %v12074_v52 }
 0x1f8   :  { %v9595_v40 = vpop.f32.mrf.mxu1 }
 0x1f9   :  { %v9596_v49 = vadd.f32 %v9595_v40, %v9594_v39 }
 0x1fa   :  { %v9597_v41 = vpop.f32.mrf.mxu1 }
 0x1fb   :  { %v1344_v59 = vadd.f32 %v9596_v49, %v12074_v52 }
 0x1fc   :  { %v9598_v42 = vpop.f32.mrf.mxu1 }
 0x1fd   :  { %v9599_v5 = vadd.f32 %v9598_v42, %v9597_v41 }
 0x1fe   :  { %v9600_v43 = vpop.f32.mrf.mxu1 }
 0x1ff   :  { %v1349_v19 = vadd.f32 %v9599_v5, %v12074_v52 }
 0x200   :  { %v9601_v44 = vpop.f32.mrf.mxu1 }
 0x201   :  { %v9602_v12 = vadd.f32 %v9601_v44, %v9600_v43 }
 0x202   :  { %v9603_v45 = vpop.f32.mrf.mxu1 }
 0x203   :  { %v1352_v28 = vadd.f32 %v9602_v12, %v12074_v52 }
 0x204   :  { %v9604_v46 = vpop.f32.mrf.mxu1 }
 0x205   :  { %v9605_v9 = vadd.f32 %v9604_v46, %v9603_v45  ;;  %v11273_v45 = vld [vmem:[#allocation2 + $0xa8] sm:$0xff]  }
 0x206   :  { %v9606_v47 = vpop.f32.mrf.mxu1 }
 0x207   :  { %v1357_v23 = vadd.f32 %v9605_v9, %v12074_v52 }
 0x208   :  { %v9607_v50 = vpop.f32.mrf.mxu1 }
 0x209   :  { %v10547_v53 = vpop.f32.mrf.mxu0  ;;  %v9608_v6 = vadd.f32 %v9607_v50, %v9606_v47 }
 0x20a   :  { %v9609_v55 = vpop.f32.mrf.mxu1  ;;  %v1438_v3 = vadd.f32 %v10547_v53, %v1341_v60 }
 0x20b   :  { %v1429_v56 = vpop.f32.mrf.mxu0  ;;  %v1360_v20 = vadd.f32 %v9608_v6, %v12074_v52 }
 0x20c   :  { %v9610_v57 = vpop.f32.mrf.mxu1  ;;  %v1430_v62 = vadd.f32 %v1429_v56, %v1333_v58  ;;  %v1494_v16 = vmax.f32 %v1438_v3, 0.0 }
 0x20d   :  { %v10548_v61 = vpop.f32.mrf.mxu0  ;;  %v9611_v32 = vadd.f32 %v9610_v57, %v9609_v55 }
 0x20e   :  { %v9612_v63 = vpop.f32.mrf.mxu1  ;;  %v1441_v0 = vadd.f32 %v10548_v61, %v1344_v59  ;;  %v1492_v13 = vmax.f32 %v1430_v62, 0.0  ;;  %v11276_v59 = vld [vmem:[#allocation2 + $0xa0] sm:$0xff]  }
 0x20f   :  { %v1432_v4 = vpop.f32.mrf.mxu0  ;;  %v1365_v47 = vadd.f32 %v9611_v32, %v12074_v52  ;;  %v11286_v32 = vld [vmem:[#allocation2 + $0x80] sm:$0xff]  }
 0x210   :  { %v9613_v7 = vpop.f32.mrf.mxu1  ;;  %v1433_v8 = vadd.f32 %v1432_v4, %v1336_v1  ;;  %v1495_v10 = vmax.f32 %v1441_v0, 0.0 }
 0x211   :  { %v10551_v11 = vpop.f32.mrf.mxu0  ;;  %v9614_v39 = vadd.f32 %v9613_v7, %v9612_v63 }
 0x212   :  { %v1493_v14 = vmax.f32 %v1433_v8, 0.0  ;;  %v9615_v15 = vpop.f32.mrf.mxu1  ;;  %v1509_v22 = vpack.c.bf16 %v1495_v10, %v1494_v16  ;;  %v1454_v29 = vadd.f32 %v10551_v11, %v1357_v23  ;;  %v11278_v8 = vld [vmem:[#allocation2 + $0x98] sm:$0xff]  }
 0x213   :  { %v1445_v17 = vpop.f32.mrf.mxu0  ;;  %v1368_v56 = vadd.f32 %v9614_v39, %v12074_v52  ;;  %v11294_v39 = vld [vmem:[%s13629_s2 + $0x70] sm:$0xff]  }
 0x214   :  { %v9616_v18 = vpop.f32.mrf.mxu1  ;;  %v1508_v21 = vpack.c.bf16 %v1493_v14, %v1492_v13  ;;  %v1446_v25 = vadd.f32 %v1445_v17, %v1349_v19  ;;  %v1498_v43 = vmax.f32 %v1454_v29, 0.0 }
 0x215   :  { %v10552_v24 = vpop.f32.mrf.mxu0  ;;  %v9617_v35 = vadd.f32 %v9616_v18, %v9615_v15 }
 0x216   :  { %v9618_v26 = vpop.f32.mrf.mxu1  ;;  %v1457_v27 = vadd.f32 %v10552_v24, %v1360_v20  ;;  %10577 = vmatprep.mubr.bf16.mxu0 %v1508_v21  ;;  %v1496_v40 = vmax.f32 %v1446_v25, 0.0  ;;  %v11281_v20 = vld [vmem:[#allocation2 + $0x90] sm:$0xff]  }
 0x217   :  { %v1448_v30 = vpop.f32.mrf.mxu0  ;;  %10578 = vmatmul.mubr.bf16.vlgmr.msra.gmra.mxu0 %v1509_v22  ;;  %v1373_v50 = vadd.f32 %v9617_v35, %v12074_v52 }
 0x218   :  { %v9619_v33 = vpop.f32.mrf.mxu1  ;;  %v1449_v34 = vadd.f32 %v1448_v30, %v1352_v28  ;;  %10594 = vmatpush3.bf16.msra.mxu0 %v12023_v2  ;;  %v1499_v36 = vmax.f32 %v1457_v27, 0.0  ;;  %v11283_v28 = vld [vmem:[#allocation2 + $0x88] sm:$0xff]  }
 0x219   :  { %v9620_v37 = vadd.f32 %v9619_v33, %v9618_v26  ;;  %10595 = vmatprep.subr.bf16.mxu0 %v11271_v31  ;;  %v10555_v38 = vpop.f32.mrf.mxu0 }
 0x21a   :  { %v1497_v41 = vmax.f32 %v1449_v34, 0.0  ;;  %v9621_v42 = vpop.f32.mrf.mxu1  ;;  %v1511_v2 = vpack.c.bf16 %v1499_v36, %v1498_v43  ;;  %v1470_v57 = vadd.f32 %v10555_v38, %v1373_v50  ;;  %v11291_v34 = vld [vmem:[%s13631_s0 + $0xc8] ss:$12 sps:$4 sm:$0xff]   ;;  %v11292_v36 = vld [vmem:[%s13629_s2 + $0x78] sm:$0xff]   ;;  %v11301_v43 = vld [vmem:[%s13629_s2 + $0x60] sm:$0xff]  }
 0x21b   :  { %v1461_v44 = vpop.f32.mrf.mxu0  ;;  %v1376_v48 = vadd.f32 %v9620_v37, %v12074_v52  ;;  %v11293_v37 = vld [vmem:[%s13631_s0 + $0xe0] ss:$12 sps:$4 sm:$0xff]   ;;  %v11298_v38 = vld [vmem:[%s13631_s0 + $0xf8] ss:$12 sps:$4 sm:$0xff]  }
 0x21c   :  { %v9622_v46 = vpop.f32.mrf.mxu1  ;;  %10596 = vmatpush3.bf16.msra.mxu0 %v11271_v31  ;;  %v1510_v49 = vpack.c.bf16 %v1497_v41, %v1496_v40  ;;  %v1462_v53 = vadd.f32 %v1461_v44, %v1365_v47  ;;  %v1502_v6 = vmax.f32 %v1470_v57, 0.0  ;;  %v11299_v40 = vld [vmem:[%s13629_s2 + $0x68] sm:$0xff]   ;;  %v11300_v41 = vld [vmem:[%s13631_s0 + $0x110] ss:$12 sps:$4 sm:$0xff]   ;;  %v11322_v57 = vld [vmem:[%s13631_s0 + $0x1b4] ss:$12 sps:$4 sm:$0xff]  }
 0x21d   :  { %10597 = vmatprep.subr.bf16.mxu0 %v11273_v45  ;;  %v10556_v51 = vpop.f32.mrf.mxu0  ;;  %v9623_v60 = vadd.f32 %v9622_v46, %v9621_v42  ;;  %v11305_v42 = vld [vmem:[%s13631_s0 + $0x128] ss:$12 sps:$4 sm:$0xff]   ;;  %v11306_v44 = vld [vmem:[%s13629_s2 + $0x58] sm:$0xff]  }
 0x21e   :  { %v9624_v54 = vpop.f32.mrf.mxu1  ;;  %v1473_v55 = vadd.f32 %v10556_v51, %v1376_v48  ;;  %10581 = vmatprep.mubr.bf16.mxu0 %v1510_v49  ;;  %v1500_v1 = vmax.f32 %v1462_v53, 0.0  ;;  %v11309_v46 = vld [vmem:[%s13631_s0 + $0x158] ss:$12 sps:$4 sm:$0xff]   ;;  %v11308_v47 = vld [vmem:[%s13629_s2 + $0x50] sm:$0xff]   ;;  %v11310_v48 = vld [vmem:[%s13629_s2 + $0x48] sm:$0xff]  }
 0x21f   :  { %v1464_v58 = vpop.f32.mrf.mxu0  ;;  %10582 = vmatmul.mubr.bf16.gmra.mxu0 %v1511_v2  ;;  %v1381_v10 = vadd.f32 %v9623_v60, %v12074_v52  ;;  %v11311_v49 = vld [vmem:[%s13631_s0 + $0x170] ss:$12 sps:$4 sm:$0xff]   ;;  %v11312_v2 = vld [vmem:[%s13629_s2 + $0x40] sm:$0xff]  }
 0x220   :  { %v9625_v61 = vpop.f32.mrf.mxu1  ;;  %v1465_v62 = vadd.f32 %v1464_v58, %v1368_v56  ;;  %10598 = vmatpush3.bf16.msra.mxu0 %v11273_v45  ;;  %v1503_v63 = vmax.f32 %v1473_v55, 0.0  ;;  %v11307_v45 = vld [vmem:[%s13631_s0 + $0x140] ss:$12 sps:$4 sm:$0xff]   ;;  %v12141_v50 = vld [vmem:[#allocation2 + $0xb8] sm:$0xff]   ;;  %v11316_v53 = vld [vmem:[%s13631_s0 + $0x184] ss:$12 sps:$4 sm:$0xff]  }
 0x221   :  { %10599 = vmatprep.subr.bf16.mxu0 %v11276_v59  ;;  %v10559_v0 = vpop.f32.mrf.mxu0  ;;  %v9626_v3 = vadd.f32 %v9625_v61, %v9624_v54  ;;  %v11314_v51 = vld [vmem:[%s13631_s0 + $0x180] ss:$12 sps:$4 sm:$0xff]   ;;  %2967 = vmatprep.mubr.bf16.mxu1 %v11316_v53  ;;  %v11317_v54 = vld [vmem:[%s13631_s0 + $0x19c] ss:$12 sps:$4 sm:$0xff]   ;;  %v11319_v55 = vld [vmem:[%s13631_s0 + $0x198] ss:$12 sps:$4 sm:$0xff]  }
 0x222   :  { %v1501_v4 = vmax.f32 %v1465_v62, 0.0  ;;  %v9627_v5 = vpop.f32.mrf.mxu1  ;;  %v1513_v12 = vpack.c.bf16 %v1503_v63, %v1502_v6  ;;  %2968 = vmatmul.mubr.bf16.vlgmr.msra.gmra.mxu1 %v11314_v51  ;;  %v11324_v58 = vld [vmem:[%s13631_s0 + $0x1b0] ss:$12 sps:$4 sm:$0xff]   ;;  %v11327_v61 = vld [vmem:[%s13631_s0 + $0x1cc] ss:$12 sps:$4 sm:$0xff]  }
 0x223   :  { %v1477_v7 = vpop.f32.mrf.mxu0  ;;  %v1384_v17 = vadd.f32 %v9626_v3, %v12074_v52  ;;  %2975 = vmatprep.mubr.bf16.mxu1 %v11317_v54  ;;  %v11329_v62 = vld [vmem:[%s13631_s0 + $0x1c8] ss:$12 sps:$4 sm:$0xff]   ;;  %v11334_v3 = vld [vmem:[%s13631_s0 + $0x1e0] ss:$12 sps:$4 sm:$0xff]  }
 0x224   :  { %v9628_v9 = vpop.f32.mrf.mxu1  ;;  %10600 = vmatpush3.bf16.msra.mxu0 %v11276_v59  ;;  %v1512_v11 = vpack.c.bf16 %v1501_v4, %v1500_v1  ;;  %v1478_v15 = vadd.f32 %v1477_v7, %v1381_v10  ;;  %v11336_v4 = vld [vmem:[%s13631_s0 + $0x1fc] ss:$12 sps:$4 sm:$0xff]   ;;  %v11338_v7 = vld [vmem:[%s13631_s0 + $0x1f8] ss:$12 sps:$4 sm:$0xff]  }
 0x225   :  { %v9629_v13 = vadd.f32 %v9628_v9, %v9627_v5  ;;  %10601 = vmatprep.subr.bf16.mxu0 %v11278_v8  ;;  %v10560_v14 = vpop.f32.mrf.mxu0 }
 0x226   :  { %v9630_v16 = vpop.f32.mrf.mxu1  ;;  %10585 = vmatprep.mubr.bf16.mxu0 %v1512_v11  ;;  %v1504_v24 = vmax.f32 %v1478_v15, 0.0  ;;  %v11343_v11 = vld [vmem:[%s13631_s0 + $0x210] ss:$12 sps:$4 sm:$0xff]   ;;  %v11348_v15 = vld [vmem:[%s13631_s0 + $0x228] ss:$12 sps:$4 sm:$0xff]  }
 0x227   :  { %v1389_v18 = vadd.f32 %v9629_v13, %v12074_v52  ;;  %v1480_v19 = vpop.f32.mrf.mxu0  ;;  %10586 = vmatmul.mubr.bf16.gmra.mxu0 %v1513_v12  ;;  %v11346_v12 = vld [vmem:[%s13631_s0 + $0x22c] ss:$12 sps:$4 sm:$0xff]  }
 0x228   :  { %v9631_v21 = vpop.f32.mrf.mxu1  ;;  %v1481_v22 = vadd.f32 %v1480_v19, %v1384_v17  ;;  %10602 = vmatpush3.bf16.msra.mxu0 %v11278_v8  ;;  %v11341_v8 = vld [vmem:[%s13631_s0 + $0x214] ss:$12 sps:$4 sm:$0xff]  }
 0x229   :  { %v9632_v23 = vadd.f32 %v9631_v21, %v9630_v16  ;;  %10603 = vmatprep.subr.bf16.mxu0 %v11281_v20  ;;  %v1486_v26 = vadd.f32 %v10559_v0, %v1389_v18  ;;  %v11332_v0 = vld [vmem:[%s13631_s0 + $0x1e4] ss:$12 sps:$4 sm:$0xff]  }
 0x22a   :  { %v1505_v25 = vmax.f32 %v1481_v22, 0.0  ;;  %2976 = vmatmul.mubr.bf16.gmra.mxu1 %v11319_v55  ;;  %v12156_v56 = vpop.f32.mrf.mxu1 }
 0x22b   :  { %v1392_v27 = vadd.f32 %v9632_v23, %v12074_v52  ;;  %v1506_v31 = vmax.f32 %v1486_v26, 0.0  ;;  %2983 = vmatprep.mubr.bf16.mxu1 %v11322_v57 }
 0x22c   :  { %10604 = vmatpush3.bf16.msra.mxu0 %v11281_v20  ;;  %v1514_v29 = vpack.c.bf16 %v1505_v25, %v1504_v24  ;;  %v12164_v59 = vpop.f32.mrf.mxu1 }
 0x22d   :  { %v1489_v30 = vadd.f32 %v10560_v14, %v1392_v27  ;;  %10605 = vmatprep.subr.bf16.mxu0 %v11283_v28  ;;  %v9683_v55 = vadd.f32 %v12164_v59, %v12156_v56 }
 0x22e   :  { %10589 = vmatprep.mubr.bf16.mxu0 %v1514_v29  ;;  %v12166_v60 = vpop.f32.mrf.mxu1 }
 0x22f   :  { %v1507_v33 = vmax.f32 %v1489_v30, 0.0 }
 0x230   :  { %10606 = vmatpush3.bf16.msra.mxu0 %v11283_v28  ;;  %v12174_v63 = vpop.f32.mrf.mxu1 }
 0x231   :  { %10607 = vmatprep.subr.bf16.mxu0 %v11286_v32  ;;  %v1515_v35 = vpack.c.bf16 %v1507_v33, %v1506_v31 }
 0x232   :  { %2984 = vmatmul.mubr.bf16.gmra.mxu1 %v11324_v58  ;;  %v12179_v1 = vpop.f32.mrf.mxu1 }
 0x233   :  { %10590 = vmatmul.mubr.bf16.gmra.mxu0 %v1515_v35  ;;  %2991 = vmatprep.mubr.bf16.mxu1 %v11327_v61 }
 0x234   :  { %10608 = vmatpush3.bf16.msra.mxu0 %v11286_v32  ;;  %10609 = vmatprep.mubr.bf16.mxu0 %v11291_v34  ;;  %v12187_v5 = vpop.f32.mrf.mxu1 }
 0x235   :  { %10625 = vmatprep.subr.bf16.mxu0 %v11292_v36  ;;  %v9689_v61 = vadd.f32 %v12187_v5, %v12179_v1 }
 0x236   :  { %v9690_v6 = vpop.f32.mrf.mxu1 }
 0x237   :  { %v2160_v56 = vadd.f32 %v9689_v61, %v12074_v52  ;;  %v11321_v61 = vld [vmem:[#allocation2 + $0xa8] sm:$0xff]  }
 0x238   :  { %v9691_v9 = vpop.f32.mrf.mxu1 }
 0x239   :  { %v9692_v57 = vadd.f32 %v9691_v9, %v9690_v6 }
 0x23a   :  { %2992 = vmatmul.mubr.bf16.gmra.mxu1 %v11329_v62  ;;  %v12195_v10 = vpop.f32.mrf.mxu1 }
 0x23b   :  { %10610 = vmatmul.mubr.bf16.vlgmr.msra.gmra.mxu0 %v11293_v37  ;;  %2999 = vmatprep.mubr.bf16.mxu1 %v11332_v0 }
 0x23c   :  { %10626 = vmatpush3.bf16.msra.mxu0 %v11292_v36  ;;  %10613 = vmatprep.mubr.bf16.mxu0 %v11298_v38  ;;  %v12203_v13 = vpop.f32.mrf.mxu1 }
 0x23d   :  { %10627 = vmatprep.subr.bf16.mxu0 %v11294_v39 }
 0x23e   :  { %v12205_v14 = vpop.f32.mrf.mxu1 }
 0x240   :  { %10628 = vmatpush3.bf16.msra.mxu0 %v11294_v39  ;;  %v12210_v16 = vpop.f32.mrf.mxu1 }
 0x241   :  { %10629 = vmatprep.subr.bf16.mxu0 %v11299_v40 }
 0x242   :  { %3000 = vmatmul.mubr.bf16.gmra.mxu1 %v11334_v3  ;;  %v12212_v17 = vpop.f32.mrf.mxu1  ;;  %v9686_v3 = vadd.f32 %v12174_v63, %v12166_v60  ;;  %v9695_v60 = vadd.f32 %v12203_v13, %v12195_v10 }
 0x243   :  { %10614 = vmatmul.mubr.bf16.gmra.mxu0 %v11300_v41  ;;  %3007 = vmatprep.mubr.bf16.mxu1 %v11336_v4 }
 0x244   :  { %10630 = vmatpush3.bf16.msra.mxu0 %v11299_v40  ;;  %10617 = vmatprep.mubr.bf16.mxu0 %v11305_v42  ;;  %v12214_v18 = vpop.f32.mrf.mxu1  ;;  %v2155_v1 = vadd.f32 %v9686_v3, %v12074_v52 }
 0x245   :  { %10631 = vmatprep.subr.bf16.mxu0 %v11301_v43 }
 0x246   :  { %v9702_v19 = vpop.f32.mrf.mxu1 }
 0x248   :  { %10632 = vmatpush3.bf16.msra.mxu0 %v11301_v43  ;;  %v9703_v20 = vpop.f32.mrf.mxu1 }
 0x249   :  { %10633 = vmatprep.subr.bf16.mxu0 %v11306_v44  ;;  %v9704_v63 = vadd.f32 %v9703_v20, %v9702_v19 }
 0x24a   :  { %3008 = vmatmul.mubr.bf16.gmra.mxu1 %v11338_v7  ;;  %v12216_v21 = vpop.f32.mrf.mxu1  ;;  %v2152_v7 = vadd.f32 %v9683_v55, %v12074_v52 }
 0x24b   :  { %10618 = vmatmul.mubr.bf16.gmra.mxu0 %v11307_v45  ;;  %3015 = vmatprep.mubr.bf16.mxu1 %v11341_v8  ;;  %v2163_v8 = vadd.f32 %v9692_v57, %v12074_v52 }
 0x24c   :  { %10634 = vmatpush3.bf16.msra.mxu0 %v11306_v44  ;;  %10621 = vmatprep.mubr.bf16.mxu0 %v11309_v46  ;;  %v12218_v23 = vpop.f32.mrf.mxu1 }
 0x24d   :  { %10635 = vmatprep.subr.bf16.mxu0 %v11308_v47 }
 0x24e   :  { %v12220_v26 = vpop.f32.mrf.mxu1 }
 0x250   :  { %10636 = vmatpush3.bf16.msra.mxu0 %v11308_v47  ;;  %v12222_v31 = vpop.f32.mrf.mxu1 }
 0x251   :  { %10637 = vmatprep.subr.bf16.mxu0 %v11310_v48 }
 0x252   :  { %3016 = vmatmul.mubr.bf16.gmra.mxu1 %v11343_v11  ;;  %v12224_v34 = vpop.f32.mrf.mxu1 }
 0x253   :  { %10622 = vmatmul.mubr.bf16.gmra.mxu0 %v11311_v49  ;;  %3023 = vmatprep.mubr.bf16.mxu1 %v11346_v12 }
 0x254   :  { %10638 = vmatpush3.bf16.msra.mxu0 %v11310_v48  ;;  %v12226_v39 = vpop.f32.mrf.mxu1 }
 0x255   :  { %10639 = vmatprep.subr.bf16.mxu0 %v11312_v2 }
 0x256   :  { %v9714_v42 = vpop.f32.mrf.mxu1 }
 0x258   :  { %10640 = vmatpush3.bf16.msra.mxu0 %v11312_v2  ;;  %v9715_v46 = vpop.f32.mrf.mxu1 }
 0x259   :  { %10657 = vmatprep.subr.bf16.mxu0 %v12141_v50 }
 0x25a   :  { %3024 = vmatmul.mubr.bf16.gmra.mxu1 %v11348_v15  ;;  %v12228_v48 = vpop.f32.mrf.mxu1 }
 0x25c   :  { %v12230_v51 = vpop.f32.mrf.mxu1 }
 0x25e   :  { %v12236_v0 = vpop.f32.mrf.mxu1 }
 0x260   :  { %v12243_v6 = vpop.f32.mrf.mxu1 }
 0x2d7   :  { %v10579_v22 = vpop.f32.mrf.mxu0 }
 0x2d9   :  { %v1615_v24 = vpop.f32.mrf.mxu0 }
 0x2db   :  { %v10580_v25 = vpop.f32.mrf.mxu0 }
 0x2dc   :  { %v9220_v27 = vpack.c.bf16 %v10580_v25, %v10579_v22  ;;  %v9701_v22 = vadd.f32 %v12214_v18, %v12212_v17 }
 0x2dd   :  { %v1618_v28 = vpop.f32.mrf.mxu0 }
 0x2de   :  { %9475 = vst [vmem:[#allocation3 + $0x8] sm:$0xff] %v9220_v27   ;;  %v9215_v29 = vpack.c.bf16 %v1618_v28, %v1615_v24  ;;  %v9723_v27 = vpop.f32.mrf.mxu1  ;;  %v9698_v28 = vadd.f32 %v12210_v16, %v12205_v14  ;;  %v2176_v19 = vadd.f32 %v9701_v22, %v12074_v52 }
 0x2df   :  { %v10583_v30 = vpop.f32.mrf.mxu0 }
 0x2e0   :  { %9216 = vst [vmem:[#allocation3] sm:$0xff] %v9215_v29   ;;  %v9724_v17 = vpop.f32.mrf.mxu1 }
 0x2e1   :  { %v1631_v32 = vpop.f32.mrf.mxu0 }
 0x2e3   :  { %v10584_v33 = vpop.f32.mrf.mxu0 }
 0x2e4   :  { %v9230_v35 = vpack.c.bf16 %v10584_v33, %v10583_v30 }
 0x2e5   :  { %v1634_v36 = vpop.f32.mrf.mxu0 }
 0x2e6   :  { %9477 = vst [vmem:[#allocation3 + $0x18] sm:$0xff] %v9230_v35   ;;  %v9225_v37 = vpack.c.bf16 %v1634_v36, %v1631_v32  ;;  %v2168_v35 = vadd.f32 %v9695_v60, %v12074_v52  ;;  %v2179_v36 = vadd.f32 %v9704_v63, %v12074_v52 }
 0x2e7   :  { %v10587_v38 = vpop.f32.mrf.mxu0 }
 0x2e8   :  { %9476 = vst [vmem:[#allocation3 + $0x10] sm:$0xff] %v9225_v37  }
 0x2e9   :  { %v1647_v40 = vpop.f32.mrf.mxu0 }
 0x2eb   :  { %v10588_v41 = vpop.f32.mrf.mxu0 }
 0x2ec   :  { %v9240_v43 = vpack.c.bf16 %v10588_v41, %v10587_v38  ;;  %v2171_v38 = vadd.f32 %v9698_v28, %v12074_v52  ;;  %v9707_v41 = vadd.f32 %v12218_v23, %v12216_v21 }
 0x2ed   :  { %v1650_v44 = vpop.f32.mrf.mxu0 }
 0x2ee   :  { %9479 = vst [vmem:[#allocation3 + $0x28] sm:$0xff] %v9240_v43   ;;  %v9235_v45 = vpack.c.bf16 %v1650_v44, %v1647_v40  ;;  %v11320_v40 = vld [vmem:[#allocation2 + $0xb0] sm:$0xff]   ;;  %v9716_v43 = vadd.f32 %v9715_v46, %v9714_v42  ;;  %v2184_v21 = vadd.f32 %v9707_v41, %v12074_v52  ;;  %v11350_v41 = vld [vmem:[%s13631_s0 + $0x200] ss:$12 sps:$4 sm:$0xff]  }
 0x2f0   :  { %9478 = vst [vmem:[#allocation3 + $0x20] sm:$0xff] %v9235_v45   ;;  %v9713_v45 = vadd.f32 %v12226_v39, %v12224_v34 }
 0x2f2   :  { %v2192_v34 = vadd.f32 %v9713_v45, %v12074_v52  ;;  %v11353_v45 = vld [vmem:[%s13629_s2 + $0x78] sm:$0xff]  }
 0x2f3   :  { %v10591_v47 = vpop.f32.mrf.mxu0 }
 0x2f5   :  { %v1663_v49 = vpop.f32.mrf.mxu0 }
 0x2f7   :  { %v10592_v2 = vpop.f32.mrf.mxu0 }
 0x2f8   :  { %v9250_v53 = vpack.c.bf16 %v10592_v2, %v10591_v47  ;;  %v9726_v2 = vpop.f32.mrf.mxu1 }
 0x2f9   :  { %v1666_v54 = vpop.f32.mrf.mxu0 }
 0x2fa   :  { %9481 = vst [vmem:[#allocation3 + $0x38] sm:$0xff] %v9250_v53   ;;  %v9245_v58 = vpack.c.bf16 %v1666_v54, %v1663_v49  ;;  %v9710_v53 = vadd.f32 %v12222_v31, %v12220_v26  ;;  %v9727_v46 = vpop.f32.mrf.mxu1 }
 0x2fb   :  { %v10611_v62 = vpop.f32.mrf.mxu0 }
 0x2fc   :  { %9480 = vst [vmem:[#allocation3 + $0x30] sm:$0xff] %v9245_v58   ;;  %v2257_v5 = vadd.f32 %v10611_v62, %v2160_v56  ;;  %v2187_v26 = vadd.f32 %v9710_v53, %v12074_v52  ;;  %v9719_v56 = vadd.f32 %v12230_v51, %v12228_v48  ;;  %v11357_v53 = vld [vmem:[%s13629_s2 + $0x58] sm:$0xff]  }
 0x2fd   :  { %v2248_v4 = vpop.f32.mrf.mxu0 }
 0x2fe   :  { %v2249_v9 = vadd.f32 %v2248_v4, %v2152_v7  ;;  %v2313_v32 = vmax.f32 %v2257_v5, 0.0  ;;  %v9725_v4 = vadd.f32 %v9724_v17, %v9723_v27  ;;  %v9722_v5 = vadd.f32 %v12243_v6, %v12236_v0 }
 0x2ff   :  { %v10612_v59 = vpop.f32.mrf.mxu0 }
 0x300   :  { %v2260_v11 = vadd.f32 %v10612_v59, %v2163_v8  ;;  %v2311_v29 = vmax.f32 %v2249_v9, 0.0  ;;  %v11325_v8 = vld [vmem:[#allocation2 + $0xa0] sm:$0xff]   ;;  %v9728_v59 = vadd.f32 %v9727_v46, %v9726_v2  ;;  %v2203_v0 = vadd.f32 %v9722_v5, %v12074_v52 }
 0x301   :  { %v2251_v12 = vpop.f32.mrf.mxu0  ;;  %v11356_v2 = vld [vmem:[%s13629_s2 + $0x60] sm:$0xff]  }
 0x302   :  { %v2252_v15 = vadd.f32 %v2251_v12, %v2155_v1  ;;  %v2314_v24 = vmax.f32 %v2260_v11, 0.0  ;;  %v2211_v48 = vadd.f32 %v9728_v59, %v12074_v52 }
 0x303   :  { %v10615_v25 = vpop.f32.mrf.mxu0 }
 0x304   :  { %v2312_v30 = vmax.f32 %v2252_v15, 0.0  ;;  %v2328_v13 = vpack.c.bf16 %v2314_v24, %v2313_v32  ;;  %v2273_v14 = vadd.f32 %v10615_v25, %v2176_v19  ;;  %v2208_v15 = vadd.f32 %v9725_v4, %v12074_v52  ;;  %v11326_v24 = vld [vmem:[#allocation2 + $0x98] sm:$0xff]  }
 0x305   :  { %v2264_v33 = vpop.f32.mrf.mxu0  ;;  %v2200_v25 = vadd.f32 %v9719_v56, %v12074_v52 }
 0x306   :  { %v2327_v10 = vpack.c.bf16 %v2312_v30, %v2311_v29  ;;  %v2265_v18 = vadd.f32 %v2264_v33, %v2168_v35  ;;  %v2317_v57 = vmax.f32 %v2273_v14, 0.0  ;;  %v11330_v33 = vld [vmem:[#allocation2 + $0x90] sm:$0xff]   ;;  %v11344_v14 = vld [vmem:[%s13631_s0 + $0x1b8] ss:$12 sps:$4 sm:$0xff]  }
 0x307   :  { %v10616_v20 = vpop.f32.mrf.mxu0 }
 0x308   :  { %v2276_v37 = vadd.f32 %v10616_v20, %v2179_v36  ;;  %10641 = vmatprep.mubr.bf16.mxu0 %v2327_v10  ;;  %v2315_v54 = vmax.f32 %v2265_v18, 0.0  ;;  %v11331_v20 = vld [vmem:[#allocation2 + $0x88] sm:$0xff]  }
 0x309   :  { %v2267_v16 = vpop.f32.mrf.mxu0  ;;  %10642 = vmatmul.mubr.bf16.vlgmr.msra.gmra.mxu0 %v2328_v13  ;;  %v11339_v18 = vld [vmem:[%s13631_s0 + $0x188] ss:$12 sps:$4 sm:$0xff]  }
 0x30a   :  { %v2268_v44 = vadd.f32 %v2267_v16, %v2171_v38  ;;  %10658 = vmatpush3.bf16.msra.mxu0 %v12141_v50  ;;  %v2318_v47 = vmax.f32 %v2276_v37, 0.0  ;;  %v2195_v50 = vadd.f32 %v9716_v43, %v12074_v52  ;;  %v11335_v52 = vld [vmem:[#allocation2 + $0x80] sm:$0xff]   ;;  %v11345_v16 = vld [vmem:[%s13631_s0 + $0x1d0] ss:$12 sps:$4 sm:$0xff]  }
 0x30b   :  { %10659 = vmatprep.subr.bf16.mxu0 %v11320_v40  ;;  %v10619_v49 = vpop.f32.mrf.mxu0  ;;  %v11340_v38 = vld [vmem:[%s13631_s0 + $0x1a0] ss:$12 sps:$4 sm:$0xff]   ;;  %v11351_v43 = vld [vmem:[%s13631_s0 + $0x218] ss:$12 sps:$4 sm:$0xff]  }
 0x30c   :  { %v2316_v55 = vmax.f32 %v2268_v44, 0.0  ;;  %v2330_v42 = vpack.c.bf16 %v2318_v47, %v2317_v57  ;;  %v2289_v31 = vadd.f32 %v10619_v49, %v2192_v34  ;;  %v11352_v44 = vld [vmem:[%s13631_s0 + $0x230] ss:$12 sps:$4 sm:$0xff]   ;;  %v11355_v49 = vld [vmem:[%s13629_s2 + $0x68] sm:$0xff]   ;;  %v11361_v57 = vld [vmem:[%s13629_s2 + $0x40] sm:$0xff]  }
 0x30d   :  { %v2280_v58 = vpop.f32.mrf.mxu0  ;;  %v11354_v47 = vld [vmem:[%s13629_s2 + $0x70] sm:$0xff]  }
 0x30e   :  { %10660 = vmatpush3.bf16.msra.mxu0 %v11320_v40  ;;  %v2329_v23 = vpack.c.bf16 %v2316_v55, %v2315_v54  ;;  %v2281_v62 = vadd.f32 %v2280_v58, %v2184_v21  ;;  %v2321_v63 = vmax.f32 %v2289_v31, 0.0  ;;  %v11349_v40 = vld [vmem:[%s13631_s0 + $0x1e8] ss:$12 sps:$4 sm:$0xff]   ;;  %v9777_v58 = vpop.f32.mrf.mxu1 }
 0x30f   :  { %10661 = vmatprep.subr.bf16.mxu0 %v11321_v61  ;;  %v10620_v39 = vpop.f32.mrf.mxu0  ;;  %v11358_v54 = vld [vmem:[%s13629_s2 + $0x50] sm:$0xff]   ;;  %v11359_v55 = vld [vmem:[%s13629_s2 + $0x48] sm:$0xff]  }
 0x310   :  { %v2292_v3 = vadd.f32 %v10620_v39, %v2195_v50  ;;  %10645 = vmatprep.mubr.bf16.mxu0 %v2329_v23  ;;  %v2319_v12 = vmax.f32 %v2281_v62, 0.0  ;;  %v11380_v23 = vld [vmem:[%s13631_s0 + $0x4] ss:$12 sps:$4 sm:$0xff]  }
 0x311   :  { %v2283_v7 = vpop.f32.mrf.mxu0  ;;  %10646 = vmatmul.mubr.bf16.gmra.mxu0 %v2330_v42  ;;  %3786 = vmatprep.mubr.bf16.mxu1 %v11380_v23 }
 0x312   :  { %v2284_v9 = vadd.f32 %v2283_v7, %v2187_v26  ;;  %10662 = vmatpush3.bf16.msra.mxu0 %v11321_v61  ;;  %v2322_v11 = vmax.f32 %v2292_v3, 0.0  ;;  %v9778_v61 = vpop.f32.mrf.mxu1 }
 0x313   :  { %10663 = vmatprep.subr.bf16.mxu0 %v11325_v8  ;;  %v10623_v1 = vpop.f32.mrf.mxu0 }
 0x314   :  { %v2320_v60 = vmax.f32 %v2284_v9, 0.0  ;;  %v2332_v27 = vpack.c.bf16 %v2322_v11, %v2321_v63  ;;  %v2305_v6 = vadd.f32 %v10623_v1, %v2208_v15  ;;  %v12323_v21 = vpop.f32.mrf.mxu1 }
 0x315   :  { %v2296_v22 = vpop.f32.mrf.mxu0 }
 0x316   :  { %10664 = vmatpush3.bf16.msra.mxu0 %v11325_v8  ;;  %v2331_v51 = vpack.c.bf16 %v2320_v60, %v2319_v12  ;;  %v2297_v29 = vadd.f32 %v2296_v22, %v2200_v25  ;;  %v2325_v19 = vmax.f32 %v2305_v6, 0.0  ;;  %v9781_v50 = vpop.f32.mrf.mxu1 }
 0x317   :  { %10665 = vmatprep.subr.bf16.mxu0 %v11326_v24  ;;  %v10624_v28 = vpop.f32.mrf.mxu0 }
 0x318   :  { %v2308_v30 = vadd.f32 %v10624_v28, %v2211_v48  ;;  %10649 = vmatprep.mubr.bf16.mxu0 %v2331_v51  ;;  %v2323_v10 = vmax.f32 %v2297_v29, 0.0  ;;  %v9783_v42 = vpop.f32.mrf.mxu1 }
 0x319   :  { %v2299_v32 = vpop.f32.mrf.mxu0  ;;  %10650 = vmatmul.mubr.bf16.gmra.mxu0 %v2332_v27 }
 0x31a   :  { %v2300_v35 = vadd.f32 %v2299_v32, %v2203_v0  ;;  %10666 = vmatpush3.bf16.msra.mxu0 %v11326_v24  ;;  %v2326_v36 = vmax.f32 %v2308_v30, 0.0  ;;  %v9784_v34 = vpop.f32.mrf.mxu1 }
 0x31b   :  { %10667 = vmatprep.subr.bf16.mxu0 %v11330_v33 }
 0x31c   :  { %v2324_v13 = vmax.f32 %v2300_v35, 0.0  ;;  %v2334_v37 = vpack.c.bf16 %v2326_v36, %v2325_v19  ;;  %v9786_v39 = vpop.f32.mrf.mxu1 }
 0x31e   :  { %10668 = vmatpush3.bf16.msra.mxu0 %v11330_v33  ;;  %v2333_v17 = vpack.c.bf16 %v2324_v13, %v2323_v10  ;;  %v9787_v46 = vpop.f32.mrf.mxu1 }
 0x31f   :  { %10669 = vmatprep.subr.bf16.mxu0 %v11331_v20 }
 0x320   :  { %10653 = vmatprep.mubr.bf16.mxu0 %v2333_v17  ;;  %v12328_v62 = vpop.f32.mrf.mxu1 }
 0x321   :  { %10654 = vmatmul.mubr.bf16.gmra.mxu0 %v2334_v37 }
 0x322   :  { %10670 = vmatpush3.bf16.msra.mxu0 %v11331_v20  ;;  %10673 = vmatprep.mubr.bf16.mxu0 %v11339_v18  ;;  %v12330_v3 = vpop.f32.mrf.mxu1 }
 0x323   :  { %10671 = vmatprep.subr.bf16.mxu0 %v11335_v52 }
 0x324   :  { %v12332_v26 = vpop.f32.mrf.mxu1 }
 0x326   :  { %10672 = vmatpush3.bf16.msra.mxu0 %v11335_v52  ;;  %v12334_v31 = vpop.f32.mrf.mxu1 }
 0x327   :  { %10689 = vmatprep.subr.bf16.mxu0 %v11353_v45 }
 0x328   :  { %v12336_v4 = vpop.f32.mrf.mxu1 }
 0x329   :  { %10674 = vmatmul.mubr.bf16.vlgmr.msra.gmra.mxu0 %v11340_v38 }
 0x32a   :  { %10677 = vmatprep.mubr.bf16.mxu0 %v11344_v14  ;;  %10690 = vmatpush3.bf16.msra.mxu0 %v11353_v45  ;;  %v12338_v7 = vpop.f32.mrf.mxu1  ;;  %v9779_v14 = vadd.f32 %v9778_v61, %v9777_v58 }
 0x32b   :  { %10691 = vmatprep.subr.bf16.mxu0 %v11354_v47 }
 0x32c   :  { %v12340_v8 = vpop.f32.mrf.mxu1 }
 0x32e   :  { %10692 = vmatpush3.bf16.msra.mxu0 %v11354_v47  ;;  %v12342_v56 = vpop.f32.mrf.mxu1  ;;  %v9782_v47 = vadd.f32 %v9781_v50, %v12323_v21  ;;  %v9791_v21 = vadd.f32 %v12330_v3, %v12328_v62 }
 0x32f   :  { %10693 = vmatprep.subr.bf16.mxu0 %v11355_v49  ;;  %v9800_v50 = vadd.f32 %v12342_v56, %v12340_v8 }
 0x330   :  { %v12344_v59 = vpop.f32.mrf.mxu1 }
 0x331   :  { %10678 = vmatmul.mubr.bf16.gmra.mxu0 %v11345_v16  ;;  %v9788_v16 = vadd.f32 %v9787_v46, %v9786_v39 }
 0x332   :  { %10681 = vmatprep.mubr.bf16.mxu0 %v11349_v40  ;;  %10694 = vmatpush3.bf16.msra.mxu0 %v11355_v49  ;;  %v12346_v9 = vpop.f32.mrf.mxu1 }
 0x333   :  { %10695 = vmatprep.subr.bf16.mxu0 %v11356_v2 }
 0x334   :  { %v12348_v1 = vpop.f32.mrf.mxu1 }
 0x336   :  { %10696 = vmatpush3.bf16.msra.mxu0 %v11356_v2  ;;  %v12350_v60 = vpop.f32.mrf.mxu1 }
 0x337   :  { %10697 = vmatprep.subr.bf16.mxu0 %v11357_v53 }
 0x338   :  { %v12352_v25 = vpop.f32.mrf.mxu1 }
 0x339   :  { %10682 = vmatmul.mubr.bf16.gmra.mxu0 %v11350_v41  ;;  %v9785_v41 = vadd.f32 %v9784_v34, %v9783_v42 }
 0x33a   :  { %10685 = vmatprep.mubr.bf16.mxu0 %v11351_v43  ;;  %10698 = vmatpush3.bf16.msra.mxu0 %v11357_v53  ;;  %v12354_v27 = vpop.f32.mrf.mxu1  ;;  %v12367_v43 = vld [vmem:[%s13632_s3] ss:$0 sm:$0xff] }
 0x33b   :  { %10699 = vmatprep.subr.bf16.mxu0 %v11358_v54  ;;  %v2970_v2 = vadd.f32 %v9779_v14, %v12367_v43  ;;  %v2981_v53 = vadd.f32 %v9788_v16, %v12367_v43  ;;  %v2973_v23 = vadd.f32 %v9782_v47, %v12367_v43  ;;  %v2986_v8 = vadd.f32 %v9791_v21, %v12367_v43 }
 0x33c   :  { %v12356_v6 = vpop.f32.mrf.mxu1  ;;  %v2997_v56 = vadd.f32 %v9800_v50, %v12367_v43  ;;  %v11370_v50 = vld [vmem:[#allocation3 + $0x18] sm:$0xff]  }
 0x33e   :  { %10700 = vmatpush3.bf16.msra.mxu0 %v11358_v54  ;;  %v12358_v35 = vpop.f32.mrf.mxu1  ;;  %v2978_v54 = vadd.f32 %v9785_v41, %v12367_v43  ;;  %v9806_v41 = vadd.f32 %v12350_v60, %v12348_v1 }
 0x33f   :  { %10701 = vmatprep.subr.bf16.mxu0 %v11359_v55 }
 0x340   :  { %v12360_v20 = vpop.f32.mrf.mxu1  ;;  %v3005_v60 = vadd.f32 %v9806_v41, %v12367_v43  ;;  %v11388_v41 = vld [vmem:[#allocation3 + $0x28] sm:$0xff]  }
 0x341   :  { %10686 = vmatmul.mubr.bf16.gmra.mxu0 %v11352_v44 }
 0x342   :  { %10702 = vmatpush3.bf16.msra.mxu0 %v11359_v55  ;;  %v12362_v37 = vpop.f32.mrf.mxu1 }
 0x343   :  { %10703 = vmatprep.subr.bf16.mxu0 %v11361_v57 }
 0x344   :  { %v12369_v45 = vpop.f32.mrf.mxu1 }
 0x346   :  { %10704 = vmatpush3.bf16.msra.mxu0 %v11361_v57  ;;  %v12375_v57 = vpop.f32.mrf.mxu1 }
 0x3c9   :  { %v10643_v11 = vpop.f32.mrf.mxu0 }
 0x3cb   :  { %v2433_v5 = vpop.f32.mrf.mxu0 }
 0x3cd   :  { %v10644_v12 = vpop.f32.mrf.mxu0 }
 0x3ce   :  { %v9260_v63 = vpack.c.bf16 %v10644_v12, %v10643_v11  ;;  %v11362_v11 = vld [vmem:[#allocation3 + $0x38] sm:$0xff]  }
 0x3cf   :  { %v2436_v15 = vpop.f32.mrf.mxu0 }
 0x3d0   :  { %9483 = vst [vmem:[#allocation3 + $0x48] sm:$0xff] %v9260_v63   ;;  %v9255_v22 = vpack.c.bf16 %v2436_v15, %v2433_v5  ;;  %v9797_v5 = vadd.f32 %v12338_v7, %v12336_v4  ;;  %v11364_v4 = vld [vmem:[#allocation3 + $0x30] sm:$0xff]  }
 0x3d1   :  { %v10647_v24 = vpop.f32.mrf.mxu0 }
 0x3d2   :  { %9482 = vst [vmem:[#allocation3 + $0x40] sm:$0xff] %v9255_v22   ;;  %v9819_v22 = vpop.f32.mrf.mxu1 }
 0x3d3   :  { %v2449_v48 = vpop.f32.mrf.mxu0 }
 0x3d5   :  { %v10648_v51 = vpop.f32.mrf.mxu0 }
 0x3d6   :  { %v9270_v28 = vpack.c.bf16 %v10648_v51, %v10647_v24  ;;  %v9794_v24 = vadd.f32 %v12334_v31, %v12332_v26 }
 0x3d7   :  { %v2452_v29 = vpop.f32.mrf.mxu0 }
 0x3d8   :  { %9485 = vst [vmem:[#allocation3 + $0x58] sm:$0xff] %v9270_v28   ;;  %v9265_v30 = vpack.c.bf16 %v2452_v29, %v2449_v48  ;;  %v2994_v29 = vadd.f32 %v9797_v5, %v12367_v43  ;;  %v2989_v31 = vadd.f32 %v9794_v24, %v12367_v43 }
 0x3d9   :  { %v10651_v0 = vpop.f32.mrf.mxu0 }
 0x3da   :  { %9484 = vst [vmem:[#allocation3 + $0x50] sm:$0xff] %v9265_v30  }
 0x3db   :  { %v2465_v32 = vpop.f32.mrf.mxu0 }
 0x3dd   :  { %v10652_v33 = vpop.f32.mrf.mxu0 }
 0x3de   :  { %v9280_v36 = vpack.c.bf16 %v10652_v33, %v10651_v0 }
 0x3df   :  { %v2468_v10 = vpop.f32.mrf.mxu0 }
 0x3e0   :  { %9487 = vst [vmem:[#allocation3 + $0x68] sm:$0xff] %v9280_v36   ;;  %v9275_v13 = vpack.c.bf16 %v2468_v10, %v2465_v32  ;;  %v9820_v32 = vpop.f32.mrf.mxu1 }
 0x3e1   :  { %v10655_v19 = vpop.f32.mrf.mxu0  ;;  %v11371_v5 = vld [vmem:[#allocation3 + $0x50] sm:$0xff]  }
 0x3e2   :  { %9486 = vst [vmem:[#allocation3 + $0x60] sm:$0xff] %v9275_v13   ;;  %v9803_v13 = vadd.f32 %v12346_v9, %v12344_v59  ;;  %v9822_v16 = vpop.f32.mrf.mxu1 }
 0x3e3   :  { %v2481_v17 = vpop.f32.mrf.mxu0 }
 0x3e4   :  { %v3002_v9 = vadd.f32 %v9803_v13, %v12367_v43 }
 0x3e5   :  { %v10656_v18 = vpop.f32.mrf.mxu0 }
 0x3e6   :  { %v9290_v52 = vpack.c.bf16 %v10656_v18, %v10655_v19  ;;  %v9812_v19 = vadd.f32 %v12358_v35, %v12356_v6  ;;  %v11366_v18 = vld [vmem:[#allocation3 + $0x28] sm:$0xff]  }
 0x3e7   :  { %v2484_v38 = vpop.f32.mrf.mxu0  ;;  %v11365_v0 = vld [vmem:[#allocation3 + $0x68] sm:$0xff]  }
 0x3e8   :  { %9489 = vst [vmem:[#allocation3 + $0x78] sm:$0xff] %v9290_v52   ;;  %v9285_v40 = vpack.c.bf16 %v2484_v38, %v2481_v17  ;;  %v9809_v52 = vadd.f32 %v12354_v27, %v12352_v25  ;;  %v3013_v6 = vadd.f32 %v9812_v19, %v12367_v43 }
 0x3e9   :  { %v10675_v44 = vpop.f32.mrf.mxu0 }
 0x3ea   :  { %9488 = vst [vmem:[#allocation3 + $0x70] sm:$0xff] %v9285_v40   ;;  %v3075_v42 = vadd.f32 %v10675_v44, %v2978_v54  ;;  %v11367_v40 = vld [vmem:[#allocation3 + $0x60] sm:$0xff]   ;;  %v3010_v27 = vadd.f32 %v9809_v52, %v12367_v43  ;;  %v9823_v54 = vpop.f32.mrf.mxu1 }
 0x3eb   :  { %v3066_v49 = vpop.f32.mrf.mxu0 }
 0x3ec   :  { %v3067_v58 = vadd.f32 %v3066_v49, %v2970_v2  ;;  %v3131_v62 = vmax.f32 %v3075_v42, 0.0  ;;  %v11368_v2 = vld [vmem:[#allocation3 + $0x20] sm:$0xff]  }
 0x3ed   :  { %v10676_v55 = vpop.f32.mrf.mxu0 }
 0x3ee   :  { %v3078_v61 = vadd.f32 %v10676_v55, %v2981_v53  ;;  %v3129_v48 = vmax.f32 %v3067_v58, 0.0  ;;  %v11369_v55 = vld [vmem:[#allocation3 + $0x58] sm:$0xff]  }
 0x3ef   :  { %v3069_v34 = vpop.f32.mrf.mxu0  ;;  %v11360_v39 = vld [vmem:[#allocation3 + $0x78] sm:$0xff]  }
 0x3f0   :  { %v3070_v46 = vadd.f32 %v3069_v34, %v2973_v23  ;;  %v3132_v12 = vmax.f32 %v3078_v61, 0.0  ;;  %9857 = vmatprep.subr.bf16.mxu1 %v11360_v39  ;;  %v9821_v23 = vadd.f32 %v9820_v32, %v9819_v22  ;;  %v9815_v34 = vadd.f32 %v12362_v37, %v12360_v20  ;;  %v11375_v32 = vld [vmem:[#allocation3 + $0x40] sm:$0xff]   ;;  %v11377_v19 = vld [vmem:[#allocation3 + $0x78] sm:$0xff]  }
 0x3f1   :  { %v10679_v63 = vpop.f32.mrf.mxu0  ;;  %v11363_v15 = vld [vmem:[#allocation3 + $0x70] sm:$0xff]   ;;  %9858 = vmatpush3.bf16.msra.mxu1 %v11362_v11  ;;  %v9824_v39 = vadd.f32 %v9823_v54, %v9822_v16  ;;  %v11385_v16 = vld [vmem:[%s13631_s0 + $0x18] ss:$12 sps:$4 sm:$0xff]   ;;  %v11402_v54 = vld [vmem:[#allocation3 + $0x8] sm:$0xff]  }
 0x3f2   :  { %v3130_v51 = vmax.f32 %v3070_v46, 0.0  ;;  %9859 = vmatprep.subr.bf16.mxu1 %v11363_v15  ;;  %v3146_v7 = vpack.c.bf16 %v3132_v12, %v3131_v62  ;;  %v3091_v36 = vadd.f32 %v10679_v63, %v2994_v29  ;;  %v9818_v12 = vadd.f32 %v12375_v57, %v12369_v45  ;;  %v11372_v62 = vld [vmem:[#allocation3 + $0x10] sm:$0xff]  }
 0x3f3   :  { %v3082_v3 = vpop.f32.mrf.mxu0  ;;  %v3026_v22 = vadd.f32 %v9821_v23, %v12367_v43  ;;  %v3029_v20 = vadd.f32 %v9824_v39, %v12367_v43  ;;  %v11382_v52 = vld [vmem:[#allocation3 + $0x70] sm:$0xff]   ;;  %v11409_v23 = vld [vmem:[%s13631_s0 + $0x78] ss:$12 sps:$4 sm:$0xff]  }
 0x3f4   :  { %v3145_v28 = vpack.c.bf16 %v3130_v51, %v3129_v48  ;;  %v3083_v33 = vadd.f32 %v3082_v3, %v2986_v8  ;;  %v3135_v49 = vmax.f32 %v3091_v36, 0.0  ;;  %v3018_v51 = vadd.f32 %v9815_v34, %v12367_v43  ;;  %v11412_v34 = vld [vmem:[%s13631_s0 + $0x90] ss:$12 sps:$4 sm:$0xff]   ;;  %v11417_v39 = vld [vmem:[%s13631_s0 + $0xac] ss:$12 sps:$4 sm:$0xff]  }
 0x3f5   :  { %v10680_v30 = vpop.f32.mrf.mxu0  ;;  %9860 = vmatpush3.bf16.msra.mxu1 %v11364_v4  ;;  %v3021_v45 = vadd.f32 %v9818_v12, %v12367_v43  ;;  %v11378_v43 = vld [vmem:[%s13631_s0] ss:$12 sps:$4 sm:$0xff]   ;;  %v11423_v12 = vld [vmem:[#allocation3 + $0x30] sm:$0xff]  }
 0x3f6   :  { %v3094_v26 = vadd.f32 %v10680_v30, %v2997_v56  ;;  %10705 = vmatprep.mubr.bf16.mxu0 %v3145_v28  ;;  %9861 = vmatprep.subr.bf16.mxu1 %v11365_v0  ;;  %v3133_v44 = vmax.f32 %v3083_v33, 0.0  ;;  %v11373_v56 = vld [vmem:[#allocation3 + $0x48] sm:$0xff]  }
 0x3f7   :  { %v3085_v10 = vpop.f32.mrf.mxu0  ;;  %10706 = vmatmul.mubr.bf16.vlgmr.msra.gmra.mxu0 %v3146_v7  ;;  %v11374_v30 = vld [vmem:[#allocation3 + $0x8] sm:$0xff]  }
 0x3f8   :  { %v3086_v17 = vadd.f32 %v3085_v10, %v2989_v31  ;;  %v3136_v38 = vmax.f32 %v3094_v26, 0.0  ;;  %v11376_v10 = vld [vmem:[#allocation3] sm:$0xff]  }
 0x3f9   :  { %v10683_v14 = vpop.f32.mrf.mxu0  ;;  %9862 = vmatpush3.bf16.msra.mxu1 %v11366_v18  ;;  %v11381_v18 = vld [vmem:[#allocation3 + $0x38] sm:$0xff]  }
 0x3fa   :  { %v3134_v47 = vmax.f32 %v3086_v17, 0.0  ;;  %9863 = vmatprep.subr.bf16.mxu1 %v11367_v40  ;;  %v3148_v25 = vpack.c.bf16 %v3136_v38, %v3135_v49  ;;  %v3107_v61 = vadd.f32 %v10683_v14, %v3010_v27  ;;  %v11387_v17 = vld [vmem:[%s13631_s0 + $0x1c] ss:$12 sps:$4 sm:$0xff]   ;;  %v11383_v38 = vld [vmem:[#allocation3 + $0x30] sm:$0xff]  }
 0x3fb   :  { %v3098_v59 = vpop.f32.mrf.mxu0  ;;  %v11384_v14 = vld [vmem:[#allocation3 + $0x68] sm:$0xff]   ;;  %v11394_v40 = vld [vmem:[%s13631_s0 + $0x34] ss:$12 sps:$4 sm:$0xff]   ;;  %v11391_v49 = vld [vmem:[#allocation3 + $0x58] sm:$0xff]  }
 0x3fc   :  { %v3147_v35 = vpack.c.bf16 %v3134_v47, %v3133_v44  ;;  %v3099_v58 = vadd.f32 %v3098_v59, %v3002_v9  ;;  %v3139_v24 = vmax.f32 %v3107_v61, 0.0  ;;  %v11389_v44 = vld [vmem:[#allocation3 + $0x60] sm:$0xff]   ;;  %v11392_v59 = vld [vmem:[%s13631_s0 + $0x30] ss:$12 sps:$4 sm:$0xff]   ;;  %v11401_v9 = vld [vmem:[%s13631_s0 + $0x4c] ss:$12 sps:$4 sm:$0xff]  }
 0x3fd   :  { %v10684_v53 = vpop.f32.mrf.mxu0  ;;  %9864 = vmatpush3.bf16.msra.mxu1 %v11368_v2  ;;  %v11390_v47 = vld [vmem:[#allocation3 + $0x20] sm:$0xff]   ;;  %v11397_v2 = vld [vmem:[#allocation3 + $0x10] sm:$0xff]   ;;  %v11411_v61 = vld [vmem:[%s13631_s0 + $0x7c] ss:$12 sps:$4 sm:$0xff]  }
 0x3fe   :  { %v3110_v1 = vadd.f32 %v10684_v53, %v3013_v6  ;;  %10709 = vmatprep.mubr.bf16.mxu0 %v3147_v35  ;;  %9865 = vmatprep.subr.bf16.mxu1 %v11369_v55  ;;  %v3137_v63 = vmax.f32 %v3099_v58, 0.0  ;;  %v11395_v6 = vld [vmem:[#allocation3 + $0x18] sm:$0xff]   ;;  %v11396_v35 = vld [vmem:[#allocation3 + $0x50] sm:$0xff]   ;;  %v11403_v55 = vld [vmem:[#allocation3 + $0x40] sm:$0xff]  }
 0x3ff   :  { %v3101_v42 = vpop.f32.mrf.mxu0  ;;  %10710 = vmatmul.mubr.bf16.gmra.mxu0 %v3148_v25  ;;  %v11398_v25 = vld [vmem:[#allocation3 + $0x48] sm:$0xff]   ;;  %v11408_v53 = vld [vmem:[%s13631_s0 + $0x64] ss:$12 sps:$4 sm:$0xff]  }
 0x400   :  { %v3102_v21 = vadd.f32 %v3101_v42, %v3005_v60  ;;  %v3140_v46 = vmax.f32 %v3110_v1, 0.0  ;;  %v11399_v27 = vld [vmem:[%s13631_s0 + $0x48] ss:$12 sps:$4 sm:$0xff]   ;;  %v11404_v58 = vld [vmem:[#allocation3] sm:$0xff]   ;;  %v11405_v1 = vld [vmem:[#allocation3 + $0x78] sm:$0xff]  }
 0x401   :  { %v10687_v11 = vpop.f32.mrf.mxu0  ;;  %9866 = vmatpush3.bf16.msra.mxu1 %v11370_v50  ;;  %v11406_v60 = vld [vmem:[%s13631_s0 + $0x60] ss:$12 sps:$4 sm:$0xff]   ;;  %v11420_v50 = vld [vmem:[%s13631_s0 + $0xc4] ss:$12 sps:$4 sm:$0xff]  }
 0x402   :  { %v3138_v15 = vmax.f32 %v3102_v21, 0.0  ;;  %9867 = vmatprep.subr.bf16.mxu1 %v11371_v5  ;;  %v3150_v3 = vpack.c.bf16 %v3140_v46, %v3139_v24  ;;  %v3123_v57 = vadd.f32 %v10687_v11, %v3026_v22  ;;  %v11414_v42 = vld [vmem:[%s13631_s0 + $0x94] ss:$12 sps:$4 sm:$0xff]   ;;  %v11421_v11 = vld [vmem:[#allocation3 + $0x38] sm:$0xff]  }
 0x403   :  { %v3114_v48 = vpop.f32.mrf.mxu0  ;;  %v11415_v21 = vld [vmem:[%s13631_s0 + $0xa8] ss:$12 sps:$4 sm:$0xff]   ;;  %v11418_v46 = vld [vmem:[%s13631_s0 + $0xc0] ss:$12 sps:$4 sm:$0xff]  }
 0x404   :  { %v3149_v37 = vpack.c.bf16 %v3138_v15, %v3137_v63  ;;  %v3115_v28 = vadd.f32 %v3114_v48, %v3018_v51  ;;  %v3143_v31 = vmax.f32 %v3123_v57, 0.0  ;;  %v11422_v5 = vld [vmem:[#allocation3 + $0x70] sm:$0xff]   ;;  %v11424_v63 = vld [vmem:[#allocation3 + $0x68] sm:$0xff]   ;;  %v11426_v24 = vld [vmem:[#allocation3 + $0x60] sm:$0xff]  }
 0x405   :  { %v10688_v8 = vpop.f32.mrf.mxu0  ;;  %9868 = vmatpush3.bf16.msra.mxu1 %v11372_v62  ;;  %v11425_v15 = vld [vmem:[#allocation3 + $0x28] sm:$0xff]   ;;  %v11427_v22 = vld [vmem:[#allocation3 + $0x20] sm:$0xff]   ;;  %v11428_v48 = vld [vmem:[#allocation3 + $0x58] sm:$0xff]  }
 0x406   :  { %v3126_v4 = vadd.f32 %v10688_v8, %v3029_v20  ;;  %10713 = vmatprep.mubr.bf16.mxu0 %v3149_v37  ;;  %9869 = vmatprep.subr.bf16.mxu1 %v11373_v56  ;;  %v3141_v33 = vmax.f32 %v3115_v28, 0.0  ;;  %v11429_v51 = vld [vmem:[#allocation3 + $0x18] sm:$0xff]   ;;  %v11430_v20 = vld [vmem:[#allocation3 + $0x50] sm:$0xff]   ;;  %v11432_v62 = vld [vmem:[#allocation3 + $0x48] sm:$0xff]  }
 0x407   :  { %v3117_v7 = vpop.f32.mrf.mxu0  ;;  %10714 = vmatmul.mubr.bf16.gmra.mxu0 %v3150_v3  ;;  %v11431_v37 = vld [vmem:[#allocation3 + $0x10] sm:$0xff]   ;;  %v11433_v3 = vld [vmem:[#allocation3 + $0x8] sm:$0xff]   ;;  %v11434_v8 = vld [vmem:[#allocation3 + $0x40] sm:$0xff]  }
 0x408   :  { %v3118_v29 = vadd.f32 %v3117_v7, %v3021_v45  ;;  %v3144_v0 = vmax.f32 %v3126_v4, 0.0  ;;  %v11435_v56 = vld [vmem:[#allocation3] sm:$0xff]   ;;  %v11444_v28 = vld [vmem:[%s13631_s0 + $0x8] ss:$12 sps:$4 sm:$0xff]  }
 0x409   :  { %9870 = vmatpush3.bf16.msra.mxu1 %v11374_v30 }
 0x40a   :  { %v3142_v26 = vmax.f32 %v3118_v29, 0.0  ;;  %9871 = vmatprep.subr.bf16.mxu1 %v11375_v32  ;;  %v3152_v13 = vpack.c.bf16 %v3144_v0, %v3143_v31 }
 0x40c   :  { %v3151_v36 = vpack.c.bf16 %v3142_v26, %v3141_v33 }
 0x40d   :  { %9872 = vmatpush3.bf16.msra.mxu1 %v11376_v10 }
 0x40e   :  { %10717 = vmatprep.mubr.bf16.mxu0 %v3151_v36  ;;  %9953 = vmatprep.subr.bf16.mxu1 %v11377_v19 }
 0x40f   :  { %10718 = vmatmul.mubr.bf16.gmra.mxu0 %v3152_v13 }
 0x410   :  { %3787 = vmatmul.mubr.bf16.vlgmr.msra.gmra.mxu1 %v11378_v43  ;;  %10737 = vmatprep.mubr.bf16.mxu0 %v11444_v28 }
 0x411   :  { %9954 = vmatpush3.bf16.msra.mxu1 %v11381_v18  ;;  %3794 = vmatprep.mubr.bf16.mxu1 %v11387_v17 }
 0x412   :  { %9955 = vmatprep.subr.bf16.mxu1 %v11382_v52 }
 0x415   :  { %9956 = vmatpush3.bf16.msra.mxu1 %v11383_v38 }
 0x416   :  { %9957 = vmatprep.subr.bf16.mxu1 %v11384_v14 }
 0x418   :  { %3795 = vmatmul.mubr.bf16.gmra.mxu1 %v11385_v16 }
 0x419   :  { %9958 = vmatpush3.bf16.msra.mxu1 %v11388_v41  ;;  %3802 = vmatprep.mubr.bf16.mxu1 %v11394_v40 }
 0x41a   :  { %9959 = vmatprep.subr.bf16.mxu1 %v11389_v44 }
 0x41d   :  { %9960 = vmatpush3.bf16.msra.mxu1 %v11390_v47 }
 0x41e   :  { %9961 = vmatprep.subr.bf16.mxu1 %v11391_v49 }
 0x420   :  { %3803 = vmatmul.mubr.bf16.gmra.mxu1 %v11392_v59 }
 0x421   :  { %9962 = vmatpush3.bf16.msra.mxu1 %v11395_v6  ;;  %3810 = vmatprep.mubr.bf16.mxu1 %v11401_v9 }
 0x422   :  { %9963 = vmatprep.subr.bf16.mxu1 %v11396_v35 }
 0x425   :  { %9964 = vmatpush3.bf16.msra.mxu1 %v11397_v2 }
 0x426   :  { %9965 = vmatprep.subr.bf16.mxu1 %v11398_v25  ;;  %v11446_v25 = vld [vmem:[%s13629_s2 + $0xb8] sm:$0xff]  }
 0x428   :  { %3811 = vmatmul.mubr.bf16.gmra.mxu1 %v11399_v27  ;;  %v11445_v27 = vld [vmem:[%s13631_s0 + $0x20] ss:$12 sps:$4 sm:$0xff]  }
 0x429   :  { %9966 = vmatpush3.bf16.msra.mxu1 %v11402_v54  ;;  %3818 = vmatprep.mubr.bf16.mxu1 %v11408_v53  ;;  %v11448_v53 = vld [vmem:[%s13631_s0 + $0x38] ss:$12 sps:$4 sm:$0xff]   ;;  %v11447_v54 = vld [vmem:[%s13629_s2 + $0xb0] sm:$0xff]  }
 0x42a   :  { %9967 = vmatprep.subr.bf16.mxu1 %v11403_v55  ;;  %v11450_v55 = vld [vmem:[%s13629_s2 + $0xa8] sm:$0xff]  }
 0x42d   :  { %9968 = vmatpush3.bf16.msra.mxu1 %v11404_v58  ;;  %v11449_v58 = vld [vmem:[%s13631_s0 + $0x50] ss:$12 sps:$4 sm:$0xff]  }
 0x42e   :  { %10049 = vmatprep.subr.bf16.mxu1 %v11405_v1  ;;  %v11452_v1 = vld [vmem:[%s13631_s0 + $0x68] ss:$12 sps:$4 sm:$0xff]  }
 0x430   :  { %3819 = vmatmul.mubr.bf16.gmra.mxu1 %v11406_v60  ;;  %v11451_v60 = vld [vmem:[%s13629_s2 + $0xa0] sm:$0xff]  }
 0x431   :  { %3826 = vmatprep.mubr.bf16.mxu1 %v11411_v61  ;;  %v11454_v61 = vld [vmem:[%s13629_s2 + $0x98] sm:$0xff]  }
 0x438   :  { %3827 = vmatmul.mubr.bf16.gmra.mxu1 %v11409_v23  ;;  %v11453_v23 = vld [vmem:[%s13631_s0 + $0x80] ss:$12 sps:$4 sm:$0xff]  }
 0x439   :  { %3834 = vmatprep.mubr.bf16.mxu1 %v11414_v42  ;;  %v11456_v42 = vld [vmem:[%s13631_s0 + $0x98] ss:$12 sps:$4 sm:$0xff]  }
 0x440   :  { %3835 = vmatmul.mubr.bf16.gmra.mxu1 %v11412_v34  ;;  %v11455_v34 = vld [vmem:[%s13629_s2 + $0x90] sm:$0xff]  }
 0x441   :  { %3842 = vmatprep.mubr.bf16.mxu1 %v11417_v39  ;;  %v11458_v39 = vld [vmem:[%s13629_s2 + $0x88] sm:$0xff]  }
 0x448   :  { %3843 = vmatmul.mubr.bf16.gmra.mxu1 %v11415_v21  ;;  %v11457_v21 = vld [vmem:[%s13631_s0 + $0xb0] ss:$12 sps:$4 sm:$0xff]  }
 0x449   :  { %4605 = vmatprep.mubr.bf16.mxu1 %v11420_v50  ;;  %v11459_v50 = vld [vmem:[%s13629_s2 + $0x80] sm:$0xff]  }
 0x450   :  { %4606 = vmatmul.mubr.bf16.vlgmr.msra.gmra.mxu1 %v11418_v46 }
 0x451   :  { %10050 = vmatpush3.bf16.msra.mxu1 %v11421_v11  ;;  %v11461_v11 = vld [vmem:[%s13631_s0 + $0xd8] ss:$12 sps:$4 sm:$0xff]  }
 0x452   :  { %10051 = vmatprep.subr.bf16.mxu1 %v11422_v5  ;;  %v11463_v5 = vld [vmem:[%s13631_s0 + $0xdc] ss:$12 sps:$4 sm:$0xff]  }
 0x453   :  { %4613 = vmatprep.mubr.bf16.mxu1 %v11463_v5 }
 0x455   :  { %10052 = vmatpush3.bf16.msra.mxu1 %v11423_v12 }
 0x456   :  { %10053 = vmatprep.subr.bf16.mxu1 %v11424_v63  ;;  %v11466_v63 = vld [vmem:[%s13631_s0 + $0xf0] ss:$12 sps:$4 sm:$0xff]  }
 0x458   :  { %4614 = vmatmul.mubr.bf16.gmra.mxu1 %v11461_v11 }
 0x459   :  { %10054 = vmatpush3.bf16.msra.mxu1 %v11425_v15  ;;  %v11468_v15 = vld [vmem:[%s13631_s0 + $0xf4] ss:$12 sps:$4 sm:$0xff]  }
 0x45a   :  { %10055 = vmatprep.subr.bf16.mxu1 %v11426_v24  ;;  %4621 = vmatprep.mubr.bf16.mxu1 %v11468_v15 }
 0x45d   :  { %10056 = vmatpush3.bf16.msra.mxu1 %v11427_v22 }
 0x45e   :  { %10057 = vmatprep.subr.bf16.mxu1 %v11428_v48  ;;  %v11471_v48 = vld [vmem:[%s13631_s0 + $0x108] ss:$12 sps:$4 sm:$0xff]  }
 0x460   :  { %4622 = vmatmul.mubr.bf16.gmra.mxu1 %v11466_v63 }
 0x461   :  { %10058 = vmatpush3.bf16.msra.mxu1 %v11429_v51  ;;  %v11473_v51 = vld [vmem:[%s13631_s0 + $0x10c] ss:$12 sps:$4 sm:$0xff]  }
 0x462   :  { %10059 = vmatprep.subr.bf16.mxu1 %v11430_v20  ;;  %4629 = vmatprep.mubr.bf16.mxu1 %v11473_v51 }
 0x465   :  { %10060 = vmatpush3.bf16.msra.mxu1 %v11431_v37  ;;  %v11478_v37 = vld [vmem:[%s13631_s0 + $0x124] ss:$12 sps:$4 sm:$0xff]  }
 0x466   :  { %10061 = vmatprep.subr.bf16.mxu1 %v11432_v62 }
 0x468   :  { %4630 = vmatmul.mubr.bf16.gmra.mxu1 %v11471_v48 }
 0x469   :  { %10062 = vmatpush3.bf16.msra.mxu1 %v11433_v3  ;;  %4637 = vmatprep.mubr.bf16.mxu1 %v11478_v37  ;;  %v11476_v3 = vld [vmem:[%s13631_s0 + $0x120] ss:$12 sps:$4 sm:$0xff]  }
 0x46a   :  { %10063 = vmatprep.subr.bf16.mxu1 %v11434_v8  ;;  %v11482_v8 = vld [vmem:[%s13631_s0 + $0x13c] ss:$12 sps:$4 sm:$0xff]  }
 0x46d   :  { %10064 = vmatpush3.bf16.msra.mxu1 %v11435_v56 }
 0x470   :  { %4638 = vmatmul.mubr.bf16.gmra.mxu1 %v11476_v3 }
 0x471   :  { %4645 = vmatprep.mubr.bf16.mxu1 %v11482_v8 }
 0x4b7   :  { %v10707_v4 = vpop.f32.mrf.mxu0 }
 0x4b9   :  { %v3251_v45 = vpop.f32.mrf.mxu0 }
 0x4bb   :  { %v10708_v57 = vpop.f32.mrf.mxu0 }
 0x4bc   :  { %v9300_v7 = vpack.c.bf16 %v10708_v57, %v10707_v4  ;;  %v11480_v4 = vld [vmem:[%s13631_s0 + $0x138] ss:$12 sps:$4 sm:$0xff]  }
 0x4bd   :  { %v3254_v29 = vpop.f32.mrf.mxu0  ;;  %4646 = vmatmul.mubr.bf16.gmra.mxu1 %v11480_v4 }
 0x4be   :  { %9491 = vst [vmem:[#allocation3 + $0x88] sm:$0xff] %v9300_v7   ;;  %v9295_v30 = vpack.c.bf16 %v3254_v29, %v3251_v45  ;;  %v11489_v45 = vld [vmem:[%s13631_s0 + $0x154] ss:$12 sps:$4 sm:$0xff]   ;;  %v11487_v29 = vld [vmem:[%s13631_s0 + $0x150] ss:$12 sps:$4 sm:$0xff]  }
 0x4bf   :  { %v10711_v0 = vpop.f32.mrf.mxu0  ;;  %4653 = vmatprep.mubr.bf16.mxu1 %v11489_v45 }
 0x4c0   :  { %9490 = vst [vmem:[#allocation3 + $0x80] sm:$0xff] %v9295_v30   ;;  %v11496_v30 = vld [vmem:[%s13631_s0 + $0x16c] ss:$12 sps:$4 sm:$0xff]  }
 0x4c1   :  { %v3267_v32 = vpop.f32.mrf.mxu0 }
 0x4c3   :  { %v10712_v33 = vpop.f32.mrf.mxu0 }
 0x4c4   :  { %v9310_v26 = vpack.c.bf16 %v10712_v33, %v10711_v0  ;;  %v11494_v33 = vld [vmem:[%s13631_s0 + $0x168] ss:$12 sps:$4 sm:$0xff]  }
 0x4c5   :  { %v3270_v31 = vpop.f32.mrf.mxu0  ;;  %v11442_v35 = vld [vmem:[#allocation3 + $0x88] sm:$0xff]   ;;  %4654 = vmatmul.mubr.bf16.gmra.mxu1 %v11487_v29 }
 0x4c6   :  { %9493 = vst [vmem:[#allocation3 + $0x98] sm:$0xff] %v9310_v26   ;;  %v9305_v36 = vpack.c.bf16 %v3270_v31, %v3267_v32  ;;  %4661 = vmatprep.mubr.bf16.mxu1 %v11496_v30 }
 0x4c7   :  { %v10715_v10 = vpop.f32.mrf.mxu0  ;;  %v11443_v2 = vld [vmem:[#allocation3 + $0x80] sm:$0xff]  }
 0x4c8   :  { %9492 = vst [vmem:[#allocation3 + $0x90] sm:$0xff] %v9305_v36  }
 0x4c9   :  { %v3283_v13 = vpop.f32.mrf.mxu0 }
 0x4cb   :  { %v10716_v19 = vpop.f32.mrf.mxu0 }
 0x4cc   :  { %v9320_v43 = vpack.c.bf16 %v10716_v19, %v10715_v10 }
 0x4cd   :  { %v3286_v17 = vpop.f32.mrf.mxu0  ;;  %v11440_v9 = vld [vmem:[#allocation3 + $0x98] sm:$0xff]   ;;  %4662 = vmatmul.mubr.bf16.gmra.mxu1 %v11494_v33 }
 0x4ce   :  { %9495 = vst [vmem:[#allocation3 + $0xa8] sm:$0xff] %v9320_v43   ;;  %v9315_v18 = vpack.c.bf16 %v3286_v17, %v3283_v13 }
 0x4cf   :  { %v10719_v52 = vpop.f32.mrf.mxu0  ;;  %v11441_v6 = vld [vmem:[#allocation3 + $0x90] sm:$0xff]  }
 0x4d0   :  { %9494 = vst [vmem:[#allocation3 + $0xa0] sm:$0xff] %v9315_v18   ;;  %v9873_v12 = vpop.f32.mrf.mxu1 }
 0x4d1   :  { %v3299_v38 = vpop.f32.mrf.mxu0 }
 0x4d2   :  { %v9874_v24 = vpop.f32.mrf.mxu1 }
 0x4d3   :  { %v10720_v14 = vpop.f32.mrf.mxu0 }
 0x4d4   :  { %v9330_v16 = vpack.c.bf16 %v10720_v14, %v10719_v52  ;;  %v9876_v22 = vpop.f32.mrf.mxu1 }
 0x4d5   :  { %v3302_v40 = vpop.f32.mrf.mxu0  ;;  %v11438_v49 = vld [vmem:[#allocation3 + $0xa8] sm:$0xff]  }
 0x4d6   :  { %9497 = vst [vmem:[#allocation3 + $0xb8] sm:$0xff] %v9330_v16   ;;  %v9325_v41 = vpack.c.bf16 %v3302_v40, %v3299_v38  ;;  %v9877_v20 = vpop.f32.mrf.mxu1 }
 0x4d7   :  { %v11439_v59 = vld [vmem:[#allocation3 + $0xa0] sm:$0xff]  }
 0x4d8   :  { %9496 = vst [vmem:[#allocation3 + $0xb0] sm:$0xff] %v9325_v41   ;;  %v9879_v62 = vpop.f32.mrf.mxu1 }
 0x4da   :  { %v9880_v56 = vpop.f32.mrf.mxu1 }
 0x4dc   :  { %v9882_v28 = vpop.f32.mrf.mxu1 }
 0x4dd   :  { %v11436_v44 = vld [vmem:[#allocation3 + $0xb8] sm:$0xff]  }
 0x4de   :  { %10721 = vmatprep.subr.bf16.mxu0 %v11436_v44  ;;  %v12509_v46 = vld [vmem:[#allocation3 + $0xb8] sm:$0xff]   ;;  %v9883_v57 = vpop.f32.mrf.mxu1 }
 0x4df   :  { %v11437_v47 = vld [vmem:[#allocation3 + $0xb0] sm:$0xff]   ;;  %10722 = vmatpush3.bf16.msra.mxu0 %v11436_v44  ;;  %v9875_v44 = vadd.f32 %v9874_v24, %v9873_v12 }
 0x4e0   :  { %10723 = vmatprep.subr.bf16.mxu0 %v11437_v47  ;;  %v9885_v7 = vpop.f32.mrf.mxu1 }
 0x4e2   :  { %v9886_v0 = vpop.f32.mrf.mxu1 }
 0x4e3   :  { %10724 = vmatpush3.bf16.msra.mxu0 %v11437_v47  ;;  %v9884_v47 = vadd.f32 %v9883_v57, %v9882_v28 }
 0x4e4   :  { %10725 = vmatprep.subr.bf16.mxu0 %v11438_v49  ;;  %v9888_v32 = vpop.f32.mrf.mxu1 }
 0x4e6   :  { %v9889_v26 = vpop.f32.mrf.mxu1 }
 0x4e7   :  { %10726 = vmatpush3.bf16.msra.mxu0 %v11438_v49  ;;  %v9881_v49 = vadd.f32 %v9880_v56, %v9879_v62  ;;  %v9890_v12 = vadd.f32 %v9889_v26, %v9888_v32 }
 0x4e8   :  { %10727 = vmatprep.subr.bf16.mxu0 %v11439_v59  ;;  %v9891_v31 = vpop.f32.mrf.mxu1 }
 0x4ea   :  { %v9892_v36 = vpop.f32.mrf.mxu1 }
 0x4eb   :  { %10728 = vmatpush3.bf16.msra.mxu0 %v11439_v59  ;;  %v12561_v59 = vld [vmem:[%s13632_s3 + $0x1] ss:$0 sm:$0xff] }
 0x4ec   :  { %10729 = vmatprep.subr.bf16.mxu0 %v11440_v9  ;;  %v9894_v10 = vpop.f32.mrf.mxu1  ;;  %v3808_v4 = vadd.f32 %v9890_v12, %v12561_v59 }
 0x4ee   :  { %v9895_v13 = vpop.f32.mrf.mxu1 }
 0x4ef   :  { %10730 = vmatpush3.bf16.msra.mxu0 %v11440_v9 }
 0x4f0   :  { %10731 = vmatprep.subr.bf16.mxu0 %v11441_v6  ;;  %v9897_v19 = vpop.f32.mrf.mxu1 }
 0x4f2   :  { %v9898_v43 = vpop.f32.mrf.mxu1 }
 0x4f3   :  { %10732 = vmatpush3.bf16.msra.mxu0 %v11441_v6  ;;  %v9899_v29 = vadd.f32 %v9898_v43, %v9897_v19 }
 0x4f4   :  { %10733 = vmatprep.subr.bf16.mxu0 %v11442_v35  ;;  %v9900_v17 = vpop.f32.mrf.mxu1 }
 0x4f6   :  { %v9901_v18 = vpop.f32.mrf.mxu1 }
 0x4f7   :  { %10734 = vmatpush3.bf16.msra.mxu0 %v11442_v35  ;;  %v9878_v35 = vadd.f32 %v9877_v20, %v9876_v22 }
 0x4f8   :  { %10735 = vmatprep.subr.bf16.mxu0 %v11443_v2  ;;  %v9903_v52 = vpop.f32.mrf.mxu1 }
 0x4fa   :  { %v9904_v38 = vpop.f32.mrf.mxu1 }
 0x4fb   :  { %10736 = vmatpush3.bf16.msra.mxu0 %v11443_v2  ;;  %v9905_v32 = vadd.f32 %v9904_v38, %v9903_v52 }
 0x4fc   :  { %10753 = vmatprep.subr.bf16.mxu0 %v11446_v25  ;;  %v9906_v14 = vpop.f32.mrf.mxu1 }
 0x4fe   :  { %10738 = vmatmul.mubr.bf16.vlgmr.msra.gmra.mxu0 %v11445_v27  ;;  %v9907_v16 = vpop.f32.mrf.mxu1  ;;  %v3800_v27 = vadd.f32 %v9884_v47, %v12561_v59 }
 0x4ff   :  { %10754 = vmatpush3.bf16.msra.mxu0 %v11446_v25  ;;  %10741 = vmatprep.mubr.bf16.mxu0 %v11448_v53  ;;  %v3789_v25 = vadd.f32 %v9875_v44, %v12561_v59  ;;  %v3797_v53 = vadd.f32 %v9881_v49, %v12561_v59  ;;  %v9908_v30 = vadd.f32 %v9907_v16, %v9906_v14  ;;  %v11465_v49 = vld [vmem:[#allocation3 + $0xa8] sm:$0xff]  }
 0x500   :  { %10755 = vmatprep.subr.bf16.mxu0 %v11447_v54  ;;  %v12554_v40 = vpop.f32.mrf.mxu1 }
 0x501   :  { %v3832_v19 = vadd.f32 %v9908_v30, %v12561_v59  ;;  %v11491_v30 = vld [vmem:[%s13629_s2 + $0xa8] sm:$0xff]  }
 0x502   :  { %v12556_v41 = vpop.f32.mrf.mxu1 }
 0x503   :  { %10756 = vmatpush3.bf16.msra.mxu0 %v11447_v54 }
 0x504   :  { %10757 = vmatprep.subr.bf16.mxu0 %v11450_v55  ;;  %v12563_v6 = vpop.f32.mrf.mxu1 }
 0x506   :  { %10742 = vmatmul.mubr.bf16.gmra.mxu0 %v11449_v58 }
 0x507   :  { %10758 = vmatpush3.bf16.msra.mxu0 %v11450_v55  ;;  %10745 = vmatprep.mubr.bf16.mxu0 %v11452_v1  ;;  %v12568_v55 = vpop.f32.mrf.mxu1 }
 0x508   :  { %10759 = vmatprep.subr.bf16.mxu0 %v11451_v60 }
 0x509   :  { %v9915_v5 = vpop.f32.mrf.mxu1 }
 0x50b   :  { %10760 = vmatpush3.bf16.msra.mxu0 %v11451_v60  ;;  %v3792_v60 = vadd.f32 %v9878_v35, %v12561_v59  ;;  %v9916_v8 = vpop.f32.mrf.mxu1 }
 0x50c   :  { %10761 = vmatprep.subr.bf16.mxu0 %v11454_v61 }
 0x50e   :  { %10746 = vmatmul.mubr.bf16.gmra.mxu0 %v11453_v23 }
 0x50f   :  { %10762 = vmatpush3.bf16.msra.mxu0 %v11454_v61  ;;  %10749 = vmatprep.mubr.bf16.mxu0 %v11456_v42  ;;  %v9887_v42 = vadd.f32 %v9886_v0, %v9885_v7  ;;  %v11464_v7 = vld [vmem:[#allocation3 + $0xb0] sm:$0xff]  }
 0x510   :  { %10763 = vmatprep.subr.bf16.mxu0 %v11455_v34 }
 0x511   :  { %v3805_v48 = vadd.f32 %v9887_v42, %v12561_v59 }
 0x513   :  { %10764 = vmatpush3.bf16.msra.mxu0 %v11455_v34  ;;  %v9896_v34 = vadd.f32 %v9895_v13, %v9894_v10 }
 0x514   :  { %10765 = vmatprep.subr.bf16.mxu0 %v11458_v39 }
 0x515   :  { %v3816_v51 = vadd.f32 %v9896_v34, %v12561_v59 }
 0x516   :  { %10750 = vmatmul.mubr.bf16.gmra.mxu0 %v11457_v21  ;;  %v9893_v21 = vadd.f32 %v9892_v36, %v9891_v31  ;;  %v9918_v31 = vpop.f32.mrf.mxu1  ;;  %v9902_v36 = vadd.f32 %v9901_v18, %v9900_v17 }
 0x517   :  { %10766 = vmatpush3.bf16.msra.mxu0 %v11458_v39 }
 0x518   :  { %10767 = vmatprep.subr.bf16.mxu0 %v11459_v50  ;;  %v3813_v62 = vadd.f32 %v9893_v21, %v12561_v59  ;;  %v9919_v38 = vpop.f32.mrf.mxu1  ;;  %v3824_v17 = vadd.f32 %v9902_v36, %v12561_v59  ;;  %v11501_v36 = vld [vmem:[%s13631_s0 + $0x158] ss:$12 sps:$4 sm:$0xff]  }
 0x51b   :  { %10768 = vmatpush3.bf16.msra.mxu0 %v11459_v50 }
 0x51c   :  { %10785 = vmatprep.subr.bf16.mxu0 %v12509_v46 }
 0x5be   :  { %v10739_v9 = vpop.f32.mrf.mxu0 }
 0x5bf   :  { %v3894_v61 = vadd.f32 %v10739_v9, %v3797_v53  ;;  %v3821_v9 = vadd.f32 %v9899_v29, %v12561_v59  ;;  %v9911_v53 = vadd.f32 %v12556_v41, %v12554_v40  ;;  %v11486_v29 = vld [vmem:[%s13629_s2 + $0xb0] sm:$0xff]  }
 0x5c0   :  { %v3885_v2 = vpop.f32.mrf.mxu0 }
 0x5c1   :  { %v3886_v58 = vadd.f32 %v3885_v2, %v3789_v25  ;;  %v3950_v24 = vmax.f32 %v3894_v61, 0.0  ;;  %v9917_v2 = vadd.f32 %v9916_v8, %v9915_v5  ;;  %v9914_v61 = vadd.f32 %v12568_v55, %v12563_v6 }
 0x5c2   :  { %v10740_v54 = vpop.f32.mrf.mxu0 }
 0x5c3   :  { %v3897_v1 = vadd.f32 %v10740_v54, %v3800_v27  ;;  %v3948_v63 = vmax.f32 %v3886_v58, 0.0  ;;  %v11469_v27 = vld [vmem:[#allocation3 + $0xa0] sm:$0xff]   ;;  %v9920_v54 = vadd.f32 %v9919_v38, %v9918_v31  ;;  %v3840_v6 = vadd.f32 %v9914_v61, %v12561_v59 }
 0x5c4   :  { %v3888_v23 = vpop.f32.mrf.mxu0  ;;  %v11499_v31 = vld [vmem:[%s13631_s0 + $0x140] ss:$12 sps:$4 sm:$0xff]  }
 0x5c5   :  { %v3889_v39 = vadd.f32 %v3888_v23, %v3792_v60  ;;  %v3951_v50 = vmax.f32 %v3897_v1, 0.0  ;;  %v3848_v40 = vadd.f32 %v9920_v54, %v12561_v59  ;;  %v11516_v38 = vld [vmem:[%s13631_s0 + $0x1b4] ss:$12 sps:$4 sm:$0xff]   ;;  %v11530_v54 = vld [vmem:[%s13631_s0 + $0x1fc] ss:$12 sps:$4 sm:$0xff]  }
 0x5c6   :  { %v10743_v11 = vpop.f32.mrf.mxu0  ;;  %v11535_v61 = vld [vmem:[%s13631_s0 + $0x214] ss:$12 sps:$4 sm:$0xff]  }
 0x5c7   :  { %v3949_v15 = vmax.f32 %v3889_v39, 0.0  ;;  %v3965_v37 = vpack.c.bf16 %v3951_v50, %v3950_v24  ;;  %v3910_v45 = vadd.f32 %v10743_v11, %v3813_v62  ;;  %v3845_v39 = vadd.f32 %v9917_v2, %v12561_v59  ;;  %v11470_v50 = vld [vmem:[#allocation3 + $0x98] sm:$0xff]  }
 0x5c8   :  { %v3901_v22 = vpop.f32.mrf.mxu0  ;;  %v3837_v11 = vadd.f32 %v9911_v53, %v12561_v59  ;;  %v11524_v53 = vld [vmem:[%s13631_s0 + $0x1e0] ss:$12 sps:$4 sm:$0xff]  }
 0x5c9   :  { %v3964_v20 = vpack.c.bf16 %v3949_v15, %v3948_v63  ;;  %v3902_v56 = vadd.f32 %v3901_v22, %v3805_v48  ;;  %v3954_v44 = vmax.f32 %v3910_v45, 0.0  ;;  %v11474_v22 = vld [vmem:[#allocation3 + $0x90] sm:$0xff]   ;;  %v11484_v45 = vld [vmem:[%s13629_s2 + $0xb8] sm:$0xff]  }
 0x5ca   :  { %v10744_v3 = vpop.f32.mrf.mxu0 }
 0x5cb   :  { %v3913_v28 = vadd.f32 %v10744_v3, %v3816_v51  ;;  %10769 = vmatprep.mubr.bf16.mxu0 %v3964_v20  ;;  %v3952_v10 = vmax.f32 %v3902_v56, 0.0  ;;  %v11475_v3 = vld [vmem:[#allocation3 + $0x88] sm:$0xff]  }
 0x5cc   :  { %v3904_v57 = vpop.f32.mrf.mxu0  ;;  %10770 = vmatmul.mubr.bf16.vlgmr.msra.gmra.mxu0 %v3965_v37  ;;  %v11483_v56 = vld [vmem:[%s13631_s0 + $0xc8] ss:$12 sps:$4 sm:$0xff]  }
 0x5cd   :  { %v3905_v0 = vadd.f32 %v3904_v57, %v3808_v4  ;;  %10786 = vmatpush3.bf16.msra.mxu0 %v12509_v46  ;;  %v3955_v33 = vmax.f32 %v3913_v28, 0.0  ;;  %v3829_v46 = vadd.f32 %v9905_v32, %v12561_v59  ;;  %v11479_v4 = vld [vmem:[#allocation3 + $0x80] sm:$0xff]   ;;  %v11497_v32 = vld [vmem:[%s13631_s0 + $0x128] ss:$12 sps:$4 sm:$0xff]  }
 0x5ce   :  { %10787 = vmatprep.subr.bf16.mxu0 %v11464_v7  ;;  %v10747_v26 = vpop.f32.mrf.mxu0  ;;  %v11485_v57 = vld [vmem:[%s13631_s0 + $0xe0] ss:$12 sps:$4 sm:$0xff]  }
 0x5cf   :  { %v3953_v13 = vmax.f32 %v3905_v0, 0.0  ;;  %v3967_v14 = vpack.c.bf16 %v3955_v33, %v3954_v44  ;;  %v3926_v18 = vadd.f32 %v10747_v26, %v3829_v46  ;;  %v11492_v0 = vld [vmem:[%s13631_s0 + $0x110] ss:$12 sps:$4 sm:$0xff]   ;;  %v11493_v33 = vld [vmem:[%s13629_s2 + $0xa0] sm:$0xff]   ;;  %v12651_v46 = vpop.f32.mrf.mxu1 }
 0x5d0   :  { %v3917_v47 = vpop.f32.mrf.mxu0  ;;  %v11498_v26 = vld [vmem:[%s13629_s2 + $0x98] sm:$0xff]  }
 0x5d1   :  { %10788 = vmatpush3.bf16.msra.mxu0 %v11464_v7  ;;  %v3966_v43 = vpack.c.bf16 %v3953_v13, %v3952_v10  ;;  %v3918_v16 = vadd.f32 %v3917_v47, %v3821_v9  ;;  %v3958_v34 = vmax.f32 %v3926_v18, 0.0  ;;  %v11490_v7 = vld [vmem:[%s13631_s0 + $0xf8] ss:$12 sps:$4 sm:$0xff]   ;;  %v11500_v10 = vld [vmem:[%s13629_s2 + $0x90] sm:$0xff]   ;;  %v11502_v13 = vld [vmem:[%s13629_s2 + $0x88] sm:$0xff]  }
 0x5d2   :  { %10789 = vmatprep.subr.bf16.mxu0 %v11465_v49  ;;  %v10748_v52 = vpop.f32.mrf.mxu0  ;;  %v11503_v44 = vld [vmem:[%s13631_s0 + $0x170] ss:$12 sps:$4 sm:$0xff]   ;;  %v11504_v47 = vld [vmem:[%s13629_s2 + $0x80] sm:$0xff]   ;;  %v11521_v18 = vld [vmem:[%s13631_s0 + $0x1cc] ss:$12 sps:$4 sm:$0xff]  }
 0x5d3   :  { %v3929_v35 = vadd.f32 %v10748_v52, %v3832_v19  ;;  %10773 = vmatprep.mubr.bf16.mxu0 %v3966_v43  ;;  %v3956_v23 = vmax.f32 %v3918_v16, 0.0  ;;  %v11506_v9 = vld [vmem:[%s13631_s0 + $0x180] ss:$12 sps:$4 sm:$0xff]   ;;  %v11508_v19 = vld [vmem:[%s13631_s0 + $0x184] ss:$12 sps:$4 sm:$0xff]   ;;  %v12659_v16 = vpop.f32.mrf.mxu1 }
 0x5d4   :  { %v3920_v25 = vpop.f32.mrf.mxu0  ;;  %10774 = vmatmul.mubr.bf16.gmra.mxu0 %v3967_v14  ;;  %5423 = vmatprep.mubr.bf16.mxu1 %v11508_v19  ;;  %v11509_v43 = vld [vmem:[%s13631_s0 + $0x198] ss:$12 sps:$4 sm:$0xff]   ;;  %v11511_v14 = vld [vmem:[%s13631_s0 + $0x19c] ss:$12 sps:$4 sm:$0xff]  }
 0x5d5   :  { %v3921_v58 = vadd.f32 %v3920_v25, %v3824_v17  ;;  %10790 = vmatpush3.bf16.msra.mxu0 %v11465_v49  ;;  %v3959_v1 = vmax.f32 %v3929_v35, 0.0  ;;  %v12636_v49 = vld [vmem:[#allocation3 + $0xb8] sm:$0xff]   ;;  %5424 = vmatmul.mubr.bf16.vlgmr.msra.gmra.mxu1 %v11506_v9  ;;  %v12661_v35 = vpop.f32.mrf.mxu1  ;;  %v11519_v17 = vld [vmem:[%s13631_s0 + $0x1c8] ss:$12 sps:$4 sm:$0xff]   ;;  %v11526_v25 = vld [vmem:[%s13631_s0 + $0x1e4] ss:$12 sps:$4 sm:$0xff]  }
 0x5d6   :  { %10791 = vmatprep.subr.bf16.mxu0 %v11469_v27  ;;  %v10751_v60 = vpop.f32.mrf.mxu0  ;;  %5431 = vmatprep.mubr.bf16.mxu1 %v11511_v14  ;;  %v11514_v52 = vld [vmem:[%s13631_s0 + $0x1b0] ss:$12 sps:$4 sm:$0xff]   ;;  %v9971_v14 = vadd.f32 %v12659_v16, %v12651_v46 }
 0x5d7   :  { %v3957_v42 = vmax.f32 %v3921_v58, 0.0  ;;  %v3969_v5 = vpack.c.bf16 %v3959_v1, %v3958_v34  ;;  %v3942_v55 = vadd.f32 %v10751_v60, %v3845_v39  ;;  %v12669_v2 = vpop.f32.mrf.mxu1  ;;  %v11528_v60 = vld [vmem:[%s13631_s0 + $0x1f8] ss:$12 sps:$4 sm:$0xff]   ;;  %v11533_v34 = vld [vmem:[%s13631_s0 + $0x210] ss:$12 sps:$4 sm:$0xff]  }
 0x5d8   :  { %v3933_v21 = vpop.f32.mrf.mxu0  ;;  %v11540_v39 = vld [vmem:[%s13631_s0 + $0x22c] ss:$12 sps:$4 sm:$0xff]  }
 0x5d9   :  { %10792 = vmatpush3.bf16.msra.mxu0 %v11469_v27  ;;  %v3968_v41 = vpack.c.bf16 %v3957_v42, %v3956_v23  ;;  %v3934_v63 = vadd.f32 %v3933_v21, %v3837_v11  ;;  %v3962_v62 = vmax.f32 %v3942_v55, 0.0  ;;  %v12674_v27 = vpop.f32.mrf.mxu1  ;;  %v11538_v11 = vld [vmem:[%s13631_s0 + $0x228] ss:$12 sps:$4 sm:$0xff]  }
 0x5da   :  { %10793 = vmatprep.subr.bf16.mxu0 %v11470_v50  ;;  %v10752_v12 = vpop.f32.mrf.mxu0 }
 0x5db   :  { %v3945_v15 = vadd.f32 %v10752_v12, %v3848_v40  ;;  %10777 = vmatprep.mubr.bf16.mxu0 %v3968_v41  ;;  %v3960_v20 = vmax.f32 %v3934_v63, 0.0  ;;  %v12682_v58 = vpop.f32.mrf.mxu1 }
 0x5dc   :  { %v3936_v24 = vpop.f32.mrf.mxu0  ;;  %10778 = vmatmul.mubr.bf16.gmra.mxu0 %v3969_v5 }
 0x5dd   :  { %v3937_v48 = vadd.f32 %v3936_v24, %v3840_v6  ;;  %10794 = vmatpush3.bf16.msra.mxu0 %v11470_v50  ;;  %v3963_v51 = vmax.f32 %v3945_v15, 0.0  ;;  %5432 = vmatmul.mubr.bf16.gmra.mxu1 %v11509_v43  ;;  %v9978_v1 = vpop.f32.mrf.mxu1 }
 0x5de   :  { %10795 = vmatprep.subr.bf16.mxu0 %v11474_v22  ;;  %5439 = vmatprep.mubr.bf16.mxu1 %v11516_v38 }
 0x5df   :  { %v3961_v37 = vmax.f32 %v3937_v48, 0.0  ;;  %v3971_v28 = vpack.c.bf16 %v3963_v51, %v3962_v62  ;;  %v9979_v23 = vpop.f32.mrf.mxu1 }
 0x5e1   :  { %10796 = vmatpush3.bf16.msra.mxu0 %v11474_v22  ;;  %v3970_v8 = vpack.c.bf16 %v3961_v37, %v3960_v20  ;;  %v12690_v42 = vpop.f32.mrf.mxu1 }
 0x5e2   :  { %10797 = vmatprep.subr.bf16.mxu0 %v11475_v3 }
 0x5e3   :  { %10781 = vmatprep.mubr.bf16.mxu0 %v3970_v8  ;;  %v12698_v21 = vpop.f32.mrf.mxu1 }
 0x5e4   :  { %10782 = vmatmul.mubr.bf16.gmra.mxu0 %v3971_v28 }
 0x5e5   :  { %10798 = vmatpush3.bf16.msra.mxu0 %v11475_v3  ;;  %10801 = vmatprep.mubr.bf16.mxu0 %v11483_v56  ;;  %v12700_v50 = vpop.f32.mrf.mxu1 }
 0x5e6   :  { %10799 = vmatprep.subr.bf16.mxu0 %v11479_v4  ;;  %5440 = vmatmul.mubr.bf16.gmra.mxu1 %v11514_v52  ;;  %v9980_v52 = vadd.f32 %v9979_v23, %v9978_v1 }
 0x5e7   :  { %5447 = vmatprep.mubr.bf16.mxu1 %v11521_v18  ;;  %v12705_v40 = vpop.f32.mrf.mxu1 }
 0x5e9   :  { %10800 = vmatpush3.bf16.msra.mxu0 %v11479_v4  ;;  %v12707_v41 = vpop.f32.mrf.mxu1 }
 0x5ea   :  { %10817 = vmatprep.subr.bf16.mxu0 %v11484_v45 }
 0x5eb   :  { %v12709_v5 = vpop.f32.mrf.mxu1 }
 0x5ec   :  { %10802 = vmatmul.mubr.bf16.vlgmr.msra.gmra.mxu0 %v11485_v57 }
 0x5ed   :  { %10818 = vmatpush3.bf16.msra.mxu0 %v11484_v45  ;;  %10805 = vmatprep.mubr.bf16.mxu0 %v11490_v7  ;;  %v9990_v12 = vpop.f32.mrf.mxu1 }
 0x5ee   :  { %10819 = vmatprep.subr.bf16.mxu0 %v11486_v29  ;;  %5448 = vmatmul.mubr.bf16.gmra.mxu1 %v11519_v17  ;;  %v9977_v17 = vadd.f32 %v12682_v58, %v12674_v27 }
 0x5ef   :  { %5455 = vmatprep.mubr.bf16.mxu1 %v11526_v25  ;;  %v9991_v63 = vpop.f32.mrf.mxu1 }
 0x5f0   :  { %v4616_v46 = vadd.f32 %v9977_v17, %v12561_v59 }
 0x5f1   :  { %10820 = vmatpush3.bf16.msra.mxu0 %v11486_v29  ;;  %v12711_v15 = vpop.f32.mrf.mxu1 }
 0x5f2   :  { %10821 = vmatprep.subr.bf16.mxu0 %v11491_v30 }
 0x5f3   :  { %v12713_v6 = vpop.f32.mrf.mxu1 }
 0x5f4   :  { %10806 = vmatmul.mubr.bf16.gmra.mxu0 %v11492_v0 }
 0x5f5   :  { %10822 = vmatpush3.bf16.msra.mxu0 %v11491_v30  ;;  %10809 = vmatprep.mubr.bf16.mxu0 %v11497_v32  ;;  %v12715_v24 = vpop.f32.mrf.mxu1 }
 0x5f6   :  { %10823 = vmatprep.subr.bf16.mxu0 %v11493_v33  ;;  %5456 = vmatmul.mubr.bf16.gmra.mxu1 %v11524_v53  ;;  %v9974_v53 = vadd.f32 %v12669_v2, %v12661_v35  ;;  %v9983_v35 = vadd.f32 %v12698_v21, %v12690_v42  ;;  %v9992_v2 = vadd.f32 %v9991_v63, %v9990_v12 }
 0x5f7   :  { %5463 = vmatprep.mubr.bf16.mxu1 %v11530_v54  ;;  %v12717_v51 = vpop.f32.mrf.mxu1 }
 0x5f8   :  { %v4611_v27 = vadd.f32 %v9974_v53, %v12561_v59 }
 0x5f9   :  { %10824 = vmatpush3.bf16.msra.mxu0 %v11493_v33  ;;  %v12719_v8 = vpop.f32.mrf.mxu1 }
 0x5fa   :  { %10825 = vmatprep.subr.bf16.mxu0 %v11498_v26 }
 0x5fb   :  { %v12721_v4 = vpop.f32.mrf.mxu1 }
 0x5fc   :  { %10810 = vmatmul.mubr.bf16.gmra.mxu0 %v11499_v31 }
 0x5fd   :  { %10826 = vmatpush3.bf16.msra.mxu0 %v11498_v26  ;;  %10813 = vmatprep.mubr.bf16.mxu0 %v11501_v36  ;;  %v12723_v30 = vpop.f32.mrf.mxu1 }
 0x5fe   :  { %10827 = vmatprep.subr.bf16.mxu0 %v11500_v10  ;;  %5464 = vmatmul.mubr.bf16.gmra.mxu1 %v11528_v60  ;;  %v4608_v60 = vadd.f32 %v9971_v14, %v12561_v59 }
 0x5ff   :  { %5471 = vmatprep.mubr.bf16.mxu1 %v11535_v61  ;;  %v10003_v33 = vpop.f32.mrf.mxu1  ;;  %v4619_v61 = vadd.f32 %v9980_v52, %v12561_v59 }
 0x601   :  { %10828 = vmatpush3.bf16.msra.mxu0 %v11500_v10 }
 0x602   :  { %10829 = vmatprep.subr.bf16.mxu0 %v11502_v13 }
 0x604   :  { %10814 = vmatmul.mubr.bf16.gmra.mxu0 %v11503_v44 }
 0x605   :  { %10830 = vmatpush3.bf16.msra.mxu0 %v11502_v13  ;;  %v12725_v13 = vpop.f32.mrf.mxu1 }
 0x606   :  { %10831 = vmatprep.subr.bf16.mxu0 %v11504_v47  ;;  %5472 = vmatmul.mubr.bf16.gmra.mxu1 %v11533_v34 }
 0x607   :  { %5479 = vmatprep.mubr.bf16.mxu1 %v11540_v39  ;;  %v12727_v9 = vpop.f32.mrf.mxu1 }
 0x609   :  { %10832 = vmatpush3.bf16.msra.mxu0 %v11504_v47  ;;  %v12733_v25 = vpop.f32.mrf.mxu1 }
 0x60a   :  { %10849 = vmatprep.subr.bf16.mxu0 %v12636_v49 }
 0x60b   :  { %v12740_v1 = vpop.f32.mrf.mxu1 }
 0x60e   :  { %5480 = vmatmul.mubr.bf16.gmra.mxu1 %v11538_v11 }
 0x68c   :  { %v10771_v55 = vpop.f32.mrf.mxu0 }
 0x68e   :  { %v4071_v22 = vpop.f32.mrf.mxu0 }
 0x690   :  { %v10772_v48 = vpop.f32.mrf.mxu0 }
 0x691   :  { %v9340_v20 = vpack.c.bf16 %v10772_v48, %v10771_v55  ;;  %v9989_v55 = vadd.f32 %v12709_v5, %v12707_v41 }
 0x692   :  { %v4074_v37 = vpop.f32.mrf.mxu0 }
 0x693   :  { %9498 = vst [vmem:[#allocation2 + $0x8] sm:$0xff] %v9340_v20   ;;  %v9335_v62 = vpack.c.bf16 %v4074_v37, %v4071_v22  ;;  %v10011_v20 = vpop.f32.mrf.mxu1  ;;  %v9986_v37 = vadd.f32 %v12705_v40, %v12700_v50  ;;  %v4632_v12 = vadd.f32 %v9989_v55, %v12561_v59 }
 0x694   :  { %v10775_v3 = vpop.f32.mrf.mxu0 }
 0x695   :  { %9336 = vst [vmem:[#allocation2] sm:$0xff] %v9335_v62   ;;  %v10012_v41 = vpop.f32.mrf.mxu1 }
 0x696   :  { %v4087_v56 = vpop.f32.mrf.mxu0 }
 0x698   :  { %v10776_v28 = vpop.f32.mrf.mxu0 }
 0x699   :  { %v9350_v45 = vpack.c.bf16 %v10776_v28, %v10775_v3 }
 0x69a   :  { %v4090_v57 = vpop.f32.mrf.mxu0 }
 0x69b   :  { %9500 = vst [vmem:[#allocation2 + $0x18] sm:$0xff] %v9350_v45   ;;  %v9345_v7 = vpack.c.bf16 %v4090_v57, %v4087_v56  ;;  %v4624_v45 = vadd.f32 %v9983_v35, %v12561_v59  ;;  %v4635_v57 = vadd.f32 %v9992_v2, %v12561_v59 }
 0x69c   :  { %v10779_v29 = vpop.f32.mrf.mxu0 }
 0x69d   :  { %9499 = vst [vmem:[#allocation2 + $0x10] sm:$0xff] %v9345_v7  }
 0x69e   :  { %v4103_v0 = vpop.f32.mrf.mxu0 }
 0x6a0   :  { %v10780_v32 = vpop.f32.mrf.mxu0 }
 0x6a1   :  { %v9360_v26 = vpack.c.bf16 %v10780_v32, %v10779_v29  ;;  %v4627_v29 = vadd.f32 %v9986_v37, %v12561_v59  ;;  %v9995_v32 = vadd.f32 %v12713_v6, %v12711_v15  ;;  %v11513_v15 = vld [vmem:[#allocation3 + $0xa8] sm:$0xff]  }
 0x6a2   :  { %v4106_v31 = vpop.f32.mrf.mxu0 }
 0x6a3   :  { %9502 = vst [vmem:[#allocation2 + $0x28] sm:$0xff] %v9360_v26   ;;  %v9355_v36 = vpack.c.bf16 %v4106_v31, %v4103_v0  ;;  %v11512_v0 = vld [vmem:[#allocation3 + $0xb0] sm:$0xff]   ;;  %v10004_v26 = vadd.f32 %v10003_v33, %v12723_v30  ;;  %v4640_v6 = vadd.f32 %v9995_v32, %v12561_v59  ;;  %v11542_v32 = vld [vmem:[%s13631_s0 + $0x200] ss:$12 sps:$4 sm:$0xff]  }
 0x6a4   :  { %v10783_v10 = vpop.f32.mrf.mxu0 }
 0x6a5   :  { %9501 = vst [vmem:[#allocation2 + $0x20] sm:$0xff] %v9355_v36   ;;  %v10001_v36 = vadd.f32 %v12721_v4, %v12719_v8 }
 0x6a6   :  { %v4119_v44 = vpop.f32.mrf.mxu0 }
 0x6a7   :  { %v4648_v8 = vadd.f32 %v10001_v36, %v12561_v59  ;;  %v11545_v36 = vld [vmem:[%s13629_s2 + $0xb8] sm:$0xff]  }
 0x6a8   :  { %v10784_v47 = vpop.f32.mrf.mxu0 }
 0x6a9   :  { %v9370_v19 = vpack.c.bf16 %v10784_v47, %v10783_v10  ;;  %v10014_v47 = vpop.f32.mrf.mxu1 }
 0x6aa   :  { %v4122_v43 = vpop.f32.mrf.mxu0 }
 0x6ab   :  { %9504 = vst [vmem:[#allocation2 + $0x38] sm:$0xff] %v9370_v19   ;;  %v9365_v38 = vpack.c.bf16 %v4122_v43, %v4119_v44  ;;  %v9998_v19 = vadd.f32 %v12717_v51, %v12715_v24  ;;  %v10015_v17 = vpop.f32.mrf.mxu1 }
 0x6ac   :  { %v10803_v18 = vpop.f32.mrf.mxu0 }
 0x6ad   :  { %9503 = vst [vmem:[#allocation2 + $0x30] sm:$0xff] %v9365_v38   ;;  %v4713_v58 = vadd.f32 %v10803_v18, %v4616_v46  ;;  %v4643_v24 = vadd.f32 %v9998_v19, %v12561_v59  ;;  %v10007_v46 = vadd.f32 %v12727_v9, %v12725_v13  ;;  %v11549_v19 = vld [vmem:[%s13629_s2 + $0x98] sm:$0xff]  }
 0x6ae   :  { %v4704_v54 = vpop.f32.mrf.mxu0 }
 0x6af   :  { %v4705_v23 = vadd.f32 %v4704_v54, %v4608_v60  ;;  %v4769_v56 = vmax.f32 %v4713_v58, 0.0  ;;  %v10013_v54 = vadd.f32 %v10012_v41, %v10011_v20  ;;  %v10010_v58 = vadd.f32 %v12740_v1, %v12733_v25 }
 0x6b0   :  { %v10804_v16 = vpop.f32.mrf.mxu0 }
 0x6b1   :  { %v4716_v34 = vadd.f32 %v10804_v16, %v4619_v61  ;;  %v4767_v62 = vmax.f32 %v4705_v23, 0.0  ;;  %v11517_v61 = vld [vmem:[#allocation3 + $0xa0] sm:$0xff]   ;;  %v10016_v16 = vadd.f32 %v10015_v17, %v10014_v47  ;;  %v4659_v25 = vadd.f32 %v10010_v58, %v12561_v59 }
 0x6b2   :  { %v4707_v39 = vpop.f32.mrf.mxu0  ;;  %v11548_v47 = vld [vmem:[%s13629_s2 + $0xa0] sm:$0xff]  }
 0x6b3   :  { %v4708_v11 = vadd.f32 %v4707_v39, %v4611_v27  ;;  %v4770_v22 = vmax.f32 %v4716_v34, 0.0  ;;  %v4667_v13 = vadd.f32 %v10016_v16, %v12561_v59 }
 0x6b4   :  { %v10807_v48 = vpop.f32.mrf.mxu0 }
 0x6b5   :  { %v4768_v3 = vmax.f32 %v4708_v11, 0.0  ;;  %v4784_v21 = vpack.c.bf16 %v4770_v22, %v4769_v56  ;;  %v4729_v50 = vadd.f32 %v10807_v48, %v4632_v12  ;;  %v4664_v11 = vadd.f32 %v10013_v54, %v12561_v59  ;;  %v11518_v22 = vld [vmem:[#allocation3 + $0x98] sm:$0xff]  }
 0x6b6   :  { %v4720_v28 = vpop.f32.mrf.mxu0  ;;  %v4656_v48 = vadd.f32 %v10007_v46, %v12561_v59 }
 0x6b7   :  { %v4783_v42 = vpack.c.bf16 %v4768_v3, %v4767_v62  ;;  %v4721_v5 = vadd.f32 %v4720_v28, %v4624_v45  ;;  %v4773_v52 = vmax.f32 %v4729_v50, 0.0  ;;  %v11522_v28 = vld [vmem:[#allocation3 + $0x90] sm:$0xff]   ;;  %v11536_v50 = vld [vmem:[%s13631_s0 + $0x1b8] ss:$12 sps:$4 sm:$0xff]  }
 0x6b8   :  { %v10808_v63 = vpop.f32.mrf.mxu0 }
 0x6b9   :  { %v4732_v7 = vadd.f32 %v10808_v63, %v4635_v57  ;;  %10833 = vmatprep.mubr.bf16.mxu0 %v4783_v42  ;;  %v4771_v43 = vmax.f32 %v4721_v5, 0.0  ;;  %v11523_v63 = vld [vmem:[#allocation3 + $0x88] sm:$0xff]  }
 0x6ba   :  { %v4723_v40 = vpop.f32.mrf.mxu0  ;;  %10834 = vmatmul.mubr.bf16.vlgmr.msra.gmra.mxu0 %v4784_v21  ;;  %v11531_v5 = vld [vmem:[%s13631_s0 + $0x188] ss:$12 sps:$4 sm:$0xff]  }
 0x6bb   :  { %v4724_v31 = vadd.f32 %v4723_v40, %v4627_v29  ;;  %10850 = vmatpush3.bf16.msra.mxu0 %v12636_v49  ;;  %v4774_v10 = vmax.f32 %v4732_v7, 0.0  ;;  %v4651_v49 = vadd.f32 %v10004_v26, %v12561_v59  ;;  %v11527_v59 = vld [vmem:[#allocation3 + $0x80] sm:$0xff]   ;;  %v11537_v40 = vld [vmem:[%s13631_s0 + $0x1d0] ss:$12 sps:$4 sm:$0xff]  }
 0x6bc   :  { %10851 = vmatprep.subr.bf16.mxu0 %v11512_v0  ;;  %v10811_v44 = vpop.f32.mrf.mxu0  ;;  %v11532_v29 = vld [vmem:[%s13631_s0 + $0x1a0] ss:$12 sps:$4 sm:$0xff]   ;;  %v11543_v26 = vld [vmem:[%s13631_s0 + $0x218] ss:$12 sps:$4 sm:$0xff]  }
 0x6bd   :  { %v4772_v14 = vmax.f32 %v4724_v31, 0.0  ;;  %v4786_v33 = vpack.c.bf16 %v4774_v10, %v4773_v52  ;;  %v4745_v51 = vadd.f32 %v10811_v44, %v4648_v8  ;;  %v11544_v31 = vld [vmem:[%s13631_s0 + $0x230] ss:$12 sps:$4 sm:$0xff]   ;;  %v11547_v44 = vld [vmem:[%s13629_s2 + $0xa8] sm:$0xff]   ;;  %v11553_v52 = vld [vmem:[%s13629_s2 + $0x80] sm:$0xff]  }
 0x6be   :  { %v4736_v38 = vpop.f32.mrf.mxu0  ;;  %v11546_v10 = vld [vmem:[%s13629_s2 + $0xb0] sm:$0xff]  }
 0x6bf   :  { %10852 = vmatpush3.bf16.msra.mxu0 %v11512_v0  ;;  %v4785_v30 = vpack.c.bf16 %v4772_v14, %v4771_v43  ;;  %v4737_v18 = vadd.f32 %v4736_v38, %v4640_v6  ;;  %v4777_v2 = vmax.f32 %v4745_v51, 0.0  ;;  %v11541_v0 = vld [vmem:[%s13631_s0 + $0x1e8] ss:$12 sps:$4 sm:$0xff]   ;;  %v10065_v38 = vpop.f32.mrf.mxu1 }
 0x6c0   :  { %10853 = vmatprep.subr.bf16.mxu0 %v11513_v15  ;;  %v10812_v4 = vpop.f32.mrf.mxu0  ;;  %v11550_v43 = vld [vmem:[%s13629_s2 + $0x90] sm:$0xff]   ;;  %v11551_v14 = vld [vmem:[%s13629_s2 + $0x88] sm:$0xff]  }
 0x6c1   :  { %v4748_v53 = vadd.f32 %v10812_v4, %v4651_v49  ;;  %10837 = vmatprep.mubr.bf16.mxu0 %v4785_v30  ;;  %v4775_v39 = vmax.f32 %v4737_v18, 0.0  ;;  %v11572_v30 = vld [vmem:[%s13631_s0 + $0x4] ss:$12 sps:$4 sm:$0xff]  }
 0x6c2   :  { %v4739_v60 = vpop.f32.mrf.mxu0  ;;  %10838 = vmatmul.mubr.bf16.gmra.mxu0 %v4786_v33  ;;  %6242 = vmatprep.mubr.bf16.mxu1 %v11572_v30 }
 0x6c3   :  { %v4740_v23 = vadd.f32 %v4739_v60, %v4643_v24  ;;  %10854 = vmatpush3.bf16.msra.mxu0 %v11513_v15  ;;  %v4778_v34 = vmax.f32 %v4748_v53, 0.0  ;;  %v10066_v15 = vpop.f32.mrf.mxu1 }
 0x6c4   :  { %10855 = vmatprep.subr.bf16.mxu0 %v11517_v61  ;;  %v10815_v27 = vpop.f32.mrf.mxu0 }
 0x6c5   :  { %v4776_v35 = vmax.f32 %v4740_v23, 0.0  ;;  %v4788_v20 = vpack.c.bf16 %v4778_v34, %v4777_v2  ;;  %v4761_v1 = vadd.f32 %v10815_v27, %v4664_v11  ;;  %v12821_v6 = vpop.f32.mrf.mxu1 }
 0x6c6   :  { %v4752_v55 = vpop.f32.mrf.mxu0 }
 0x6c7   :  { %10856 = vmatpush3.bf16.msra.mxu0 %v11517_v61  ;;  %v4787_v9 = vpack.c.bf16 %v4776_v35, %v4775_v39  ;;  %v4753_v62 = vadd.f32 %v4752_v55, %v4656_v48  ;;  %v4781_v12 = vmax.f32 %v4761_v1, 0.0  ;;  %v10069_v49 = vpop.f32.mrf.mxu1 }
 0x6c8   :  { %10857 = vmatprep.subr.bf16.mxu0 %v11518_v22  ;;  %v10816_v37 = vpop.f32.mrf.mxu0 }
 0x6c9   :  { %v4764_v3 = vadd.f32 %v10816_v37, %v4667_v13  ;;  %10841 = vmatprep.mubr.bf16.mxu0 %v4787_v9  ;;  %v4779_v42 = vmax.f32 %v4753_v62, 0.0  ;;  %v10071_v33 = vpop.f32.mrf.mxu1 }
 0x6ca   :  { %v4755_v56 = vpop.f32.mrf.mxu0  ;;  %10842 = vmatmul.mubr.bf16.gmra.mxu0 %v4788_v20 }
 0x6cb   :  { %v4756_v45 = vadd.f32 %v4755_v56, %v4659_v25  ;;  %10858 = vmatpush3.bf16.msra.mxu0 %v11518_v22  ;;  %v4782_v57 = vmax.f32 %v4764_v3, 0.0  ;;  %v10072_v8 = vpop.f32.mrf.mxu1 }
 0x6cc   :  { %10859 = vmatprep.subr.bf16.mxu0 %v11522_v28 }
 0x6cd   :  { %v4780_v21 = vmax.f32 %v4756_v45, 0.0  ;;  %v4790_v7 = vpack.c.bf16 %v4782_v57, %v4781_v12  ;;  %v10074_v4 = vpop.f32.mrf.mxu1 }
 0x6cf   :  { %10860 = vmatpush3.bf16.msra.mxu0 %v11522_v28  ;;  %v4789_v41 = vpack.c.bf16 %v4780_v21, %v4779_v42  ;;  %v10075_v17 = vpop.f32.mrf.mxu1 }
 0x6d0   :  { %10861 = vmatprep.subr.bf16.mxu0 %v11523_v63 }
 0x6d1   :  { %10845 = vmatprep.mubr.bf16.mxu0 %v4789_v41  ;;  %v12826_v18 = vpop.f32.mrf.mxu1 }
 0x6d2   :  { %10846 = vmatmul.mubr.bf16.gmra.mxu0 %v4790_v7 }
 0x6d3   :  { %10862 = vmatpush3.bf16.msra.mxu0 %v11523_v63  ;;  %10865 = vmatprep.mubr.bf16.mxu0 %v11531_v5  ;;  %v12828_v53 = vpop.f32.mrf.mxu1 }
 0x6d4   :  { %10863 = vmatprep.subr.bf16.mxu0 %v11527_v59 }
 0x6d5   :  { %v12830_v24 = vpop.f32.mrf.mxu1 }
 0x6d7   :  { %10864 = vmatpush3.bf16.msra.mxu0 %v11527_v59  ;;  %v12832_v51 = vpop.f32.mrf.mxu1 }
 0x6d8   :  { %10881 = vmatprep.subr.bf16.mxu0 %v11545_v36 }
 0x6d9   :  { %v12834_v54 = vpop.f32.mrf.mxu1 }
 0x6da   :  { %10866 = vmatmul.mubr.bf16.vlgmr.msra.gmra.mxu0 %v11532_v29 }
 0x6db   :  { %10869 = vmatprep.mubr.bf16.mxu0 %v11536_v50  ;;  %10882 = vmatpush3.bf16.msra.mxu0 %v11545_v36  ;;  %v12836_v60 = vpop.f32.mrf.mxu1  ;;  %v10067_v50 = vadd.f32 %v10066_v15, %v10065_v38 }
 0x6dc   :  { %10883 = vmatprep.subr.bf16.mxu0 %v11546_v10 }
 0x6dd   :  { %v12838_v61 = vpop.f32.mrf.mxu1 }
 0x6df   :  { %10884 = vmatpush3.bf16.msra.mxu0 %v11546_v10  ;;  %v12840_v46 = vpop.f32.mrf.mxu1  ;;  %v10070_v10 = vadd.f32 %v10069_v49, %v12821_v6  ;;  %v10079_v6 = vadd.f32 %v12828_v53, %v12826_v18 }
 0x6e0   :  { %10885 = vmatprep.subr.bf16.mxu0 %v11547_v44  ;;  %v10088_v49 = vadd.f32 %v12840_v46, %v12838_v61 }
 0x6e1   :  { %v12842_v16 = vpop.f32.mrf.mxu1 }
 0x6e2   :  { %10870 = vmatmul.mubr.bf16.gmra.mxu0 %v11537_v40  ;;  %v10076_v40 = vadd.f32 %v10075_v17, %v10074_v4 }
 0x6e3   :  { %10873 = vmatprep.mubr.bf16.mxu0 %v11541_v0  ;;  %10886 = vmatpush3.bf16.msra.mxu0 %v11547_v44  ;;  %v12844_v23 = vpop.f32.mrf.mxu1 }
 0x6e4   :  { %10887 = vmatprep.subr.bf16.mxu0 %v11548_v47 }
 0x6e5   :  { %v12846_v27 = vpop.f32.mrf.mxu1 }
 0x6e7   :  { %10888 = vmatpush3.bf16.msra.mxu0 %v11548_v47  ;;  %v12848_v35 = vpop.f32.mrf.mxu1 }
 0x6e8   :  { %10889 = vmatprep.subr.bf16.mxu0 %v11549_v19 }
 0x6e9   :  { %v12850_v48 = vpop.f32.mrf.mxu1 }
 0x6ea   :  { %10874 = vmatmul.mubr.bf16.gmra.mxu0 %v11542_v32  ;;  %v10073_v32 = vadd.f32 %v10072_v8, %v10071_v33 }
 0x6eb   :  { %10877 = vmatprep.mubr.bf16.mxu0 %v11543_v26  ;;  %10890 = vmatpush3.bf16.msra.mxu0 %v11549_v19  ;;  %v12852_v20 = vpop.f32.mrf.mxu1  ;;  %v12865_v26 = vld [vmem:[%s13632_s3 + $0x1] ss:$0 sm:$0xff] }
 0x6ec   :  { %10891 = vmatprep.subr.bf16.mxu0 %v11550_v43  ;;  %v5426_v47 = vadd.f32 %v10067_v50, %v12865_v26  ;;  %v5437_v19 = vadd.f32 %v10076_v40, %v12865_v26  ;;  %v5429_v30 = vadd.f32 %v10070_v10, %v12865_v26  ;;  %v5442_v61 = vadd.f32 %v10079_v6, %v12865_v26 }
 0x6ed   :  { %v12854_v1 = vpop.f32.mrf.mxu1  ;;  %v5453_v46 = vadd.f32 %v10088_v49, %v12865_v26  ;;  %v11562_v49 = vld [vmem:[#allocation2 + $0x18] sm:$0xff]  }
 0x6ef   :  { %10892 = vmatpush3.bf16.msra.mxu0 %v11550_v43  ;;  %v12856_v45 = vpop.f32.mrf.mxu1  ;;  %v5434_v43 = vadd.f32 %v10073_v32, %v12865_v26  ;;  %v10094_v32 = vadd.f32 %v12848_v35, %v12846_v27 }
 0x6f0   :  { %10893 = vmatprep.subr.bf16.mxu0 %v11551_v14 }
 0x6f1   :  { %v12858_v63 = vpop.f32.mrf.mxu1  ;;  %v5461_v35 = vadd.f32 %v10094_v32, %v12865_v26  ;;  %v11580_v32 = vld [vmem:[#allocation2 + $0x28] sm:$0xff]  }
 0x6f2   :  { %10878 = vmatmul.mubr.bf16.gmra.mxu0 %v11544_v31 }
 0x6f3   :  { %10894 = vmatpush3.bf16.msra.mxu0 %v11551_v14  ;;  %v12860_v7 = vpop.f32.mrf.mxu1 }
 0x6f4   :  { %10895 = vmatprep.subr.bf16.mxu0 %v11553_v52 }
 0x6f5   :  { %v12867_v36 = vpop.f32.mrf.mxu1 }
 0x6f7   :  { %10896 = vmatpush3.bf16.msra.mxu0 %v11553_v52  ;;  %v12873_v52 = vpop.f32.mrf.mxu1 }
 0x77a   :  { %v10835_v34 = vpop.f32.mrf.mxu0 }
 0x77c   :  { %v4889_v58 = vpop.f32.mrf.mxu0 }
 0x77e   :  { %v10836_v39 = vpop.f32.mrf.mxu0 }
 0x77f   :  { %v9380_v2 = vpack.c.bf16 %v10836_v39, %v10835_v34  ;;  %v11554_v34 = vld [vmem:[#allocation2 + $0x38] sm:$0xff]  }
 0x780   :  { %v4892_v11 = vpop.f32.mrf.mxu0 }
 0x781   :  { %9506 = vst [vmem:[#allocation2 + $0x48] sm:$0xff] %v9380_v2   ;;  %v9375_v55 = vpack.c.bf16 %v4892_v11, %v4889_v58  ;;  %v10085_v58 = vadd.f32 %v12836_v60, %v12834_v54  ;;  %v11556_v54 = vld [vmem:[#allocation2 + $0x30] sm:$0xff]  }
 0x782   :  { %v10839_v22 = vpop.f32.mrf.mxu0 }
 0x783   :  { %9505 = vst [vmem:[#allocation2 + $0x40] sm:$0xff] %v9375_v55   ;;  %v10107_v55 = vpop.f32.mrf.mxu1 }
 0x784   :  { %v4905_v13 = vpop.f32.mrf.mxu0 }
 0x786   :  { %v10840_v9 = vpop.f32.mrf.mxu0 }
 0x787   :  { %v9390_v37 = vpack.c.bf16 %v10840_v9, %v10839_v22  ;;  %v10082_v22 = vadd.f32 %v12832_v51, %v12830_v24 }
 0x788   :  { %v4908_v62 = vpop.f32.mrf.mxu0 }
 0x789   :  { %9508 = vst [vmem:[#allocation2 + $0x58] sm:$0xff] %v9390_v37   ;;  %v9385_v3 = vpack.c.bf16 %v4908_v62, %v4905_v13  ;;  %v5450_v62 = vadd.f32 %v10085_v58, %v12865_v26  ;;  %v5445_v51 = vadd.f32 %v10082_v22, %v12865_v26 }
 0x78a   :  { %v10843_v25 = vpop.f32.mrf.mxu0 }
 0x78b   :  { %9507 = vst [vmem:[#allocation2 + $0x50] sm:$0xff] %v9385_v3  }
 0x78c   :  { %v4921_v56 = vpop.f32.mrf.mxu0 }
 0x78e   :  { %v10844_v28 = vpop.f32.mrf.mxu0 }
 0x78f   :  { %v9400_v57 = vpack.c.bf16 %v10844_v28, %v10843_v25 }
 0x790   :  { %v4924_v42 = vpop.f32.mrf.mxu0 }
 0x791   :  { %9510 = vst [vmem:[#allocation2 + $0x68] sm:$0xff] %v9400_v57   ;;  %v9395_v21 = vpack.c.bf16 %v4924_v42, %v4921_v56  ;;  %v10108_v56 = vpop.f32.mrf.mxu1 }
 0x792   :  { %v10847_v12 = vpop.f32.mrf.mxu0  ;;  %v11563_v58 = vld [vmem:[#allocation2 + $0x50] sm:$0xff]  }
 0x793   :  { %9509 = vst [vmem:[#allocation2 + $0x60] sm:$0xff] %v9395_v21   ;;  %v10091_v21 = vadd.f32 %v12844_v23, %v12842_v16  ;;  %v10110_v40 = vpop.f32.mrf.mxu1 }
 0x794   :  { %v4937_v41 = vpop.f32.mrf.mxu0 }
 0x795   :  { %v5458_v23 = vadd.f32 %v10091_v21, %v12865_v26 }
 0x796   :  { %v10848_v5 = vpop.f32.mrf.mxu0 }
 0x797   :  { %v9410_v59 = vpack.c.bf16 %v10848_v5, %v10847_v12  ;;  %v10100_v12 = vadd.f32 %v12856_v45, %v12854_v1  ;;  %v11558_v5 = vld [vmem:[#allocation2 + $0x28] sm:$0xff]  }
 0x798   :  { %v4940_v29 = vpop.f32.mrf.mxu0  ;;  %v11557_v25 = vld [vmem:[#allocation2 + $0x68] sm:$0xff]  }
 0x799   :  { %9512 = vst [vmem:[#allocation2 + $0x78] sm:$0xff] %v9410_v59   ;;  %v9405_v0 = vpack.c.bf16 %v4940_v29, %v4937_v41  ;;  %v10097_v59 = vadd.f32 %v12852_v20, %v12850_v48  ;;  %v5469_v1 = vadd.f32 %v10100_v12, %v12865_v26 }
 0x79a   :  { %v10867_v31 = vpop.f32.mrf.mxu0 }
 0x79b   :  { %9511 = vst [vmem:[#allocation2 + $0x70] sm:$0xff] %v9405_v0   ;;  %v5531_v33 = vadd.f32 %v10867_v31, %v5434_v43  ;;  %v11559_v0 = vld [vmem:[#allocation2 + $0x60] sm:$0xff]   ;;  %v5466_v20 = vadd.f32 %v10097_v59, %v12865_v26  ;;  %v10111_v43 = vpop.f32.mrf.mxu1 }
 0x79c   :  { %v5522_v44 = vpop.f32.mrf.mxu0 }
 0x79d   :  { %v5523_v38 = vadd.f32 %v5522_v44, %v5426_v47  ;;  %v5587_v18 = vmax.f32 %v5531_v33, 0.0  ;;  %v11560_v47 = vld [vmem:[#allocation2 + $0x20] sm:$0xff]  }
 0x79e   :  { %v10868_v14 = vpop.f32.mrf.mxu0 }
 0x79f   :  { %v5534_v15 = vadd.f32 %v10868_v14, %v5437_v19  ;;  %v5585_v13 = vmax.f32 %v5523_v38, 0.0  ;;  %v11561_v14 = vld [vmem:[#allocation2 + $0x58] sm:$0xff]  }
 0x7a0   :  { %v5525_v8 = vpop.f32.mrf.mxu0  ;;  %v11552_v4 = vld [vmem:[#allocation2 + $0x78] sm:$0xff]  }
 0x7a1   :  { %v5526_v17 = vadd.f32 %v5525_v8, %v5429_v30  ;;  %v5588_v39 = vmax.f32 %v5534_v15, 0.0  ;;  %10145 = vmatprep.subr.bf16.mxu1 %v11552_v4  ;;  %v10109_v30 = vadd.f32 %v10108_v56, %v10107_v55  ;;  %v10103_v8 = vadd.f32 %v12860_v7, %v12858_v63  ;;  %v11567_v56 = vld [vmem:[#allocation2 + $0x40] sm:$0xff]   ;;  %v11569_v12 = vld [vmem:[#allocation2 + $0x78] sm:$0xff]  }
 0x7a2   :  { %v10871_v2 = vpop.f32.mrf.mxu0  ;;  %v11555_v11 = vld [vmem:[#allocation2 + $0x70] sm:$0xff]   ;;  %10146 = vmatpush3.bf16.msra.mxu1 %v11554_v34  ;;  %v10112_v4 = vadd.f32 %v10111_v43, %v10110_v40  ;;  %v11577_v40 = vld [vmem:[%s13631_s0 + $0x18] ss:$12 sps:$4 sm:$0xff]   ;;  %v11594_v43 = vld [vmem:[#allocation2 + $0x8] sm:$0xff]  }
 0x7a3   :  { %v5586_v9 = vmax.f32 %v5526_v17, 0.0  ;;  %10147 = vmatprep.subr.bf16.mxu1 %v11555_v11  ;;  %v5602_v60 = vpack.c.bf16 %v5588_v39, %v5587_v18  ;;  %v5547_v57 = vadd.f32 %v10871_v2, %v5450_v62  ;;  %v10106_v39 = vadd.f32 %v12873_v52, %v12867_v36  ;;  %v11564_v18 = vld [vmem:[#allocation2 + $0x10] sm:$0xff]  }
 0x7a4   :  { %v5538_v53 = vpop.f32.mrf.mxu0  ;;  %v5482_v55 = vadd.f32 %v10109_v30, %v12865_v26  ;;  %v5474_v63 = vadd.f32 %v10103_v8, %v12865_v26  ;;  %v5485_v7 = vadd.f32 %v10112_v4, %v12865_v26  ;;  %v11574_v59 = vld [vmem:[#allocation2 + $0x70] sm:$0xff]   ;;  %v11601_v30 = vld [vmem:[%s13631_s0 + $0x78] ss:$12 sps:$4 sm:$0xff]  }
 0x7a5   :  { %v5601_v37 = vpack.c.bf16 %v5586_v9, %v5585_v13  ;;  %v5539_v28 = vadd.f32 %v5538_v53, %v5442_v61  ;;  %v5591_v44 = vmax.f32 %v5547_v57, 0.0  ;;  %v5477_v36 = vadd.f32 %v10106_v39, %v12865_v26  ;;  %v11570_v26 = vld [vmem:[%s13631_s0] ss:$12 sps:$4 sm:$0xff]   ;;  %v11604_v8 = vld [vmem:[%s13631_s0 + $0x90] ss:$12 sps:$4 sm:$0xff]  }
 0x7a6   :  { %v10872_v3 = vpop.f32.mrf.mxu0  ;;  %10148 = vmatpush3.bf16.msra.mxu1 %v11556_v54  ;;  %v11609_v4 = vld [vmem:[%s13631_s0 + $0xac] ss:$12 sps:$4 sm:$0xff]   ;;  %v11615_v39 = vld [vmem:[#allocation2 + $0x30] sm:$0xff]  }
 0x7a7   :  { %v5550_v24 = vadd.f32 %v10872_v3, %v5453_v46  ;;  %10897 = vmatprep.mubr.bf16.mxu0 %v5601_v37  ;;  %10149 = vmatprep.subr.bf16.mxu1 %v11557_v25  ;;  %v5589_v31 = vmax.f32 %v5539_v28, 0.0  ;;  %v11565_v46 = vld [vmem:[#allocation2 + $0x48] sm:$0xff]  }
 0x7a8   :  { %v5541_v42 = vpop.f32.mrf.mxu0  ;;  %10898 = vmatmul.mubr.bf16.vlgmr.msra.gmra.mxu0 %v5602_v60  ;;  %v11566_v3 = vld [vmem:[#allocation2 + $0x8] sm:$0xff]  }
 0x7a9   :  { %v5542_v41 = vadd.f32 %v5541_v42, %v5445_v51  ;;  %v5592_v29 = vmax.f32 %v5550_v24, 0.0  ;;  %v11568_v42 = vld [vmem:[#allocation2] sm:$0xff]  }
 0x7aa   :  { %v10875_v50 = vpop.f32.mrf.mxu0  ;;  %10150 = vmatpush3.bf16.msra.mxu1 %v11558_v5  ;;  %v11573_v5 = vld [vmem:[#allocation2 + $0x38] sm:$0xff]  }
 0x7ab   :  { %v5590_v10 = vmax.f32 %v5542_v41, 0.0  ;;  %10151 = vmatprep.subr.bf16.mxu1 %v11559_v0  ;;  %v5604_v48 = vpack.c.bf16 %v5592_v29, %v5591_v44  ;;  %v5563_v15 = vadd.f32 %v10875_v50, %v5466_v20  ;;  %v11579_v41 = vld [vmem:[%s13631_s0 + $0x1c] ss:$12 sps:$4 sm:$0xff]   ;;  %v11575_v29 = vld [vmem:[#allocation2 + $0x30] sm:$0xff]  }
 0x7ac   :  { %v5554_v16 = vpop.f32.mrf.mxu0  ;;  %v11576_v50 = vld [vmem:[#allocation2 + $0x68] sm:$0xff]   ;;  %v11586_v0 = vld [vmem:[%s13631_s0 + $0x34] ss:$12 sps:$4 sm:$0xff]   ;;  %v11583_v44 = vld [vmem:[#allocation2 + $0x58] sm:$0xff]  }
 0x7ad   :  { %v5603_v45 = vpack.c.bf16 %v5590_v10, %v5589_v31  ;;  %v5555_v38 = vadd.f32 %v5554_v16, %v5458_v23  ;;  %v5595_v22 = vmax.f32 %v5563_v15, 0.0  ;;  %v11581_v31 = vld [vmem:[#allocation2 + $0x60] sm:$0xff]   ;;  %v11584_v16 = vld [vmem:[%s13631_s0 + $0x30] ss:$12 sps:$4 sm:$0xff]   ;;  %v11593_v23 = vld [vmem:[%s13631_s0 + $0x4c] ss:$12 sps:$4 sm:$0xff]  }
 0x7ae   :  { %v10876_v19 = vpop.f32.mrf.mxu0  ;;  %10152 = vmatpush3.bf16.msra.mxu1 %v11560_v47  ;;  %v11582_v10 = vld [vmem:[#allocation2 + $0x20] sm:$0xff]   ;;  %v11589_v47 = vld [vmem:[#allocation2 + $0x10] sm:$0xff]   ;;  %v11603_v15 = vld [vmem:[%s13631_s0 + $0x7c] ss:$12 sps:$4 sm:$0xff]  }
 0x7af   :  { %v5566_v27 = vadd.f32 %v10876_v19, %v5469_v1  ;;  %10901 = vmatprep.mubr.bf16.mxu0 %v5603_v45  ;;  %10153 = vmatprep.subr.bf16.mxu1 %v11561_v14  ;;  %v5593_v2 = vmax.f32 %v5555_v38, 0.0  ;;  %v11587_v1 = vld [vmem:[#allocation2 + $0x18] sm:$0xff]   ;;  %v11588_v45 = vld [vmem:[#allocation2 + $0x50] sm:$0xff]   ;;  %v11595_v14 = vld [vmem:[#allocation2 + $0x40] sm:$0xff]  }
 0x7b0   :  { %v5557_v33 = vpop.f32.mrf.mxu0  ;;  %10902 = vmatmul.mubr.bf16.gmra.mxu0 %v5604_v48  ;;  %v11590_v48 = vld [vmem:[#allocation2 + $0x48] sm:$0xff]   ;;  %v11600_v19 = vld [vmem:[%s13631_s0 + $0x64] ss:$12 sps:$4 sm:$0xff]  }
 0x7b1   :  { %v5558_v6 = vadd.f32 %v5557_v33, %v5461_v35  ;;  %v5596_v17 = vmax.f32 %v5566_v27, 0.0  ;;  %v11591_v20 = vld [vmem:[%s13631_s0 + $0x48] ss:$12 sps:$4 sm:$0xff]   ;;  %v11596_v38 = vld [vmem:[#allocation2] sm:$0xff]   ;;  %v11597_v27 = vld [vmem:[#allocation2 + $0x78] sm:$0xff]  }
 0x7b2   :  { %v10879_v34 = vpop.f32.mrf.mxu0  ;;  %10154 = vmatpush3.bf16.msra.mxu1 %v11562_v49  ;;  %v11598_v35 = vld [vmem:[%s13631_s0 + $0x60] ss:$12 sps:$4 sm:$0xff]   ;;  %v11612_v49 = vld [vmem:[%s13631_s0 + $0xc4] ss:$12 sps:$4 sm:$0xff]  }
 0x7b3   :  { %v5594_v11 = vmax.f32 %v5558_v6, 0.0  ;;  %10155 = vmatprep.subr.bf16.mxu1 %v11563_v58  ;;  %v5606_v53 = vpack.c.bf16 %v5596_v17, %v5595_v22  ;;  %v5579_v52 = vadd.f32 %v10879_v34, %v5482_v55  ;;  %v11606_v33 = vld [vmem:[%s13631_s0 + $0x94] ss:$12 sps:$4 sm:$0xff]   ;;  %v11613_v34 = vld [vmem:[#allocation2 + $0x38] sm:$0xff]  }
 0x7b4   :  { %v5570_v13 = vpop.f32.mrf.mxu0  ;;  %v11607_v6 = vld [vmem:[%s13631_s0 + $0xa8] ss:$12 sps:$4 sm:$0xff]   ;;  %v11610_v17 = vld [vmem:[%s13631_s0 + $0xc0] ss:$12 sps:$4 sm:$0xff]  }
 0x7b5   :  { %v5605_v9 = vpack.c.bf16 %v5594_v11, %v5593_v2  ;;  %v5571_v37 = vadd.f32 %v5570_v13, %v5474_v63  ;;  %v5599_v51 = vmax.f32 %v5579_v52, 0.0  ;;  %v11614_v58 = vld [vmem:[#allocation2 + $0x70] sm:$0xff]   ;;  %v11616_v2 = vld [vmem:[#allocation2 + $0x68] sm:$0xff]   ;;  %v11618_v22 = vld [vmem:[#allocation2 + $0x60] sm:$0xff]  }
 0x7b6   :  { %v10880_v61 = vpop.f32.mrf.mxu0  ;;  %10156 = vmatpush3.bf16.msra.mxu1 %v11564_v18  ;;  %v11617_v11 = vld [vmem:[#allocation2 + $0x28] sm:$0xff]   ;;  %v11619_v55 = vld [vmem:[#allocation2 + $0x20] sm:$0xff]   ;;  %v11620_v13 = vld [vmem:[#allocation2 + $0x58] sm:$0xff]  }
 0x7b7   :  { %v5582_v54 = vadd.f32 %v10880_v61, %v5485_v7  ;;  %10905 = vmatprep.mubr.bf16.mxu0 %v5605_v9  ;;  %10157 = vmatprep.subr.bf16.mxu1 %v11565_v46  ;;  %v5597_v28 = vmax.f32 %v5571_v37, 0.0  ;;  %v11621_v9 = vld [vmem:[#allocation2 + $0x18] sm:$0xff]   ;;  %v11622_v63 = vld [vmem:[#allocation2 + $0x50] sm:$0xff]   ;;  %v11624_v18 = vld [vmem:[#allocation2 + $0x48] sm:$0xff]  }
 0x7b8   :  { %v5573_v60 = vpop.f32.mrf.mxu0  ;;  %10906 = vmatmul.mubr.bf16.gmra.mxu0 %v5606_v53  ;;  %v11623_v7 = vld [vmem:[#allocation2 + $0x10] sm:$0xff]   ;;  %v11625_v53 = vld [vmem:[#allocation2 + $0x8] sm:$0xff]   ;;  %v11626_v61 = vld [vmem:[#allocation2 + $0x40] sm:$0xff]  }
 0x7b9   :  { %v5574_v62 = vadd.f32 %v5573_v60, %v5477_v36  ;;  %v5600_v25 = vmax.f32 %v5582_v54, 0.0  ;;  %v11627_v46 = vld [vmem:[#allocation2] sm:$0xff]   ;;  %v11636_v37 = vld [vmem:[%s13631_s0 + $0x8] ss:$12 sps:$4 sm:$0xff]  }
 0x7ba   :  { %10158 = vmatpush3.bf16.msra.mxu1 %v11566_v3 }
 0x7bb   :  { %v5598_v24 = vmax.f32 %v5574_v62, 0.0  ;;  %10159 = vmatprep.subr.bf16.mxu1 %v11567_v56  ;;  %v5608_v21 = vpack.c.bf16 %v5600_v25, %v5599_v51 }
 0x7bd   :  { %v5607_v57 = vpack.c.bf16 %v5598_v24, %v5597_v28 }
 0x7be   :  { %10160 = vmatpush3.bf16.msra.mxu1 %v11568_v42 }
 0x7bf   :  { %10909 = vmatprep.mubr.bf16.mxu0 %v5607_v57  ;;  %10241 = vmatprep.subr.bf16.mxu1 %v11569_v12 }
 0x7c0   :  { %10910 = vmatmul.mubr.bf16.gmra.mxu0 %v5608_v21 }
 0x7c1   :  { %6243 = vmatmul.mubr.bf16.vlgmr.msra.gmra.mxu1 %v11570_v26  ;;  %10929 = vmatprep.mubr.bf16.mxu0 %v11636_v37 }
 0x7c2   :  { %10242 = vmatpush3.bf16.msra.mxu1 %v11573_v5  ;;  %6250 = vmatprep.mubr.bf16.mxu1 %v11579_v41 }
 0x7c3   :  { %10243 = vmatprep.subr.bf16.mxu1 %v11574_v59 }
 0x7c6   :  { %10244 = vmatpush3.bf16.msra.mxu1 %v11575_v29 }
 0x7c7   :  { %10245 = vmatprep.subr.bf16.mxu1 %v11576_v50 }
 0x7c9   :  { %6251 = vmatmul.mubr.bf16.gmra.mxu1 %v11577_v40 }
 0x7ca   :  { %10246 = vmatpush3.bf16.msra.mxu1 %v11580_v32  ;;  %6258 = vmatprep.mubr.bf16.mxu1 %v11586_v0 }
 0x7cb   :  { %10247 = vmatprep.subr.bf16.mxu1 %v11581_v31 }
 0x7ce   :  { %10248 = vmatpush3.bf16.msra.mxu1 %v11582_v10 }
 0x7cf   :  { %10249 = vmatprep.subr.bf16.mxu1 %v11583_v44 }
 0x7d1   :  { %6259 = vmatmul.mubr.bf16.gmra.mxu1 %v11584_v16 }
 0x7d2   :  { %10250 = vmatpush3.bf16.msra.mxu1 %v11587_v1  ;;  %6266 = vmatprep.mubr.bf16.mxu1 %v11593_v23 }
 0x7d3   :  { %10251 = vmatprep.subr.bf16.mxu1 %v11588_v45 }
 0x7d6   :  { %10252 = vmatpush3.bf16.msra.mxu1 %v11589_v47 }
 0x7d7   :  { %10253 = vmatprep.subr.bf16.mxu1 %v11590_v48  ;;  %v11638_v48 = vld [vmem:[%s13633_s4 + $0x38] sm:$0xff]  }
 0x7d9   :  { %6267 = vmatmul.mubr.bf16.gmra.mxu1 %v11591_v20  ;;  %v11637_v20 = vld [vmem:[%s13631_s0 + $0x20] ss:$12 sps:$4 sm:$0xff]  }
 0x7da   :  { %10254 = vmatpush3.bf16.msra.mxu1 %v11594_v43  ;;  %6274 = vmatprep.mubr.bf16.mxu1 %v11600_v19  ;;  %v11640_v19 = vld [vmem:[%s13631_s0 + $0x38] ss:$12 sps:$4 sm:$0xff]   ;;  %v11639_v43 = vld [vmem:[%s13633_s4 + $0x30] sm:$0xff]  }
 0x7db   :  { %10255 = vmatprep.subr.bf16.mxu1 %v11595_v14  ;;  %v11642_v14 = vld [vmem:[%s13633_s4 + $0x28] sm:$0xff]  }
 0x7de   :  { %10256 = vmatpush3.bf16.msra.mxu1 %v11596_v38  ;;  %v11641_v38 = vld [vmem:[%s13631_s0 + $0x50] ss:$12 sps:$4 sm:$0xff]  }
 0x7df   :  { %10337 = vmatprep.subr.bf16.mxu1 %v11597_v27  ;;  %v11644_v27 = vld [vmem:[%s13631_s0 + $0x68] ss:$12 sps:$4 sm:$0xff]  }
 0x7e1   :  { %6275 = vmatmul.mubr.bf16.gmra.mxu1 %v11598_v35  ;;  %v11643_v35 = vld [vmem:[%s13633_s4 + $0x20] sm:$0xff]  }
 0x7e2   :  { %6282 = vmatprep.mubr.bf16.mxu1 %v11603_v15  ;;  %v11646_v15 = vld [vmem:[%s13633_s4 + $0x18] sm:$0xff]  }
 0x7e9   :  { %6283 = vmatmul.mubr.bf16.gmra.mxu1 %v11601_v30  ;;  %v11645_v30 = vld [vmem:[%s13631_s0 + $0x80] ss:$12 sps:$4 sm:$0xff]  }
 0x7ea   :  { %6290 = vmatprep.mubr.bf16.mxu1 %v11606_v33  ;;  %v11648_v33 = vld [vmem:[%s13631_s0 + $0x98] ss:$12 sps:$4 sm:$0xff]  }
 0x7f1   :  { %6291 = vmatmul.mubr.bf16.gmra.mxu1 %v11604_v8  ;;  %v11647_v8 = vld [vmem:[%s13633_s4 + $0x10] sm:$0xff]  }
 0x7f2   :  { %6298 = vmatprep.mubr.bf16.mxu1 %v11609_v4  ;;  %v11650_v4 = vld [vmem:[%s13633_s4 + $0x8] sm:$0xff]  }
 0x7f9   :  { %6299 = vmatmul.mubr.bf16.gmra.mxu1 %v11607_v6  ;;  %v11649_v6 = vld [vmem:[%s13631_s0 + $0xb0] ss:$12 sps:$4 sm:$0xff]  }
 0x7fa   :  { %7003 = vmatprep.mubr.bf16.mxu1 %v11612_v49  ;;  %v11651_v49 = vld [vmem:[%s13633_s4] sm:$0xff]  }
 0x801   :  { %7004 = vmatmul.mubr.bf16.vlgmr.msra.gmra.mxu1 %v11610_v17 }
 0x802   :  { %10338 = vmatpush3.bf16.msra.mxu1 %v11613_v34  ;;  %v11653_v34 = vld [vmem:[%s13631_s0 + $0xd8] ss:$12 sps:$4 sm:$0xff]  }
 0x803   :  { %10339 = vmatprep.subr.bf16.mxu1 %v11614_v58  ;;  %v11655_v58 = vld [vmem:[%s13631_s0 + $0xdc] ss:$12 sps:$4 sm:$0xff]  }
 0x804   :  { %7011 = vmatprep.mubr.bf16.mxu1 %v11655_v58 }
 0x806   :  { %10340 = vmatpush3.bf16.msra.mxu1 %v11615_v39 }
 0x807   :  { %10341 = vmatprep.subr.bf16.mxu1 %v11616_v2  ;;  %v11658_v2 = vld [vmem:[%s13631_s0 + $0xf0] ss:$12 sps:$4 sm:$0xff]  }
 0x809   :  { %7012 = vmatmul.mubr.bf16.gmra.mxu1 %v11653_v34 }
 0x80a   :  { %10342 = vmatpush3.bf16.msra.mxu1 %v11617_v11  ;;  %v11660_v11 = vld [vmem:[%s13631_s0 + $0xf4] ss:$12 sps:$4 sm:$0xff]  }
 0x80b   :  { %10343 = vmatprep.subr.bf16.mxu1 %v11618_v22  ;;  %7019 = vmatprep.mubr.bf16.mxu1 %v11660_v11 }
 0x80e   :  { %10344 = vmatpush3.bf16.msra.mxu1 %v11619_v55 }
 0x80f   :  { %10345 = vmatprep.subr.bf16.mxu1 %v11620_v13  ;;  %v11663_v13 = vld [vmem:[%s13631_s0 + $0x108] ss:$12 sps:$4 sm:$0xff]  }
 0x811   :  { %7020 = vmatmul.mubr.bf16.gmra.mxu1 %v11658_v2 }
 0x812   :  { %10346 = vmatpush3.bf16.msra.mxu1 %v11621_v9  ;;  %v11665_v9 = vld [vmem:[%s13631_s0 + $0x10c] ss:$12 sps:$4 sm:$0xff]  }
 0x813   :  { %10347 = vmatprep.subr.bf16.mxu1 %v11622_v63  ;;  %7027 = vmatprep.mubr.bf16.mxu1 %v11665_v9 }
 0x816   :  { %10348 = vmatpush3.bf16.msra.mxu1 %v11623_v7  ;;  %v11670_v7 = vld [vmem:[%s13631_s0 + $0x124] ss:$12 sps:$4 sm:$0xff]  }
 0x817   :  { %10349 = vmatprep.subr.bf16.mxu1 %v11624_v18 }
 0x819   :  { %7028 = vmatmul.mubr.bf16.gmra.mxu1 %v11663_v13 }
 0x81a   :  { %10350 = vmatpush3.bf16.msra.mxu1 %v11625_v53  ;;  %7035 = vmatprep.mubr.bf16.mxu1 %v11670_v7  ;;  %v11668_v53 = vld [vmem:[%s13631_s0 + $0x120] ss:$12 sps:$4 sm:$0xff]  }
 0x81b   :  { %10351 = vmatprep.subr.bf16.mxu1 %v11626_v61  ;;  %v11674_v61 = vld [vmem:[%s13631_s0 + $0x13c] ss:$12 sps:$4 sm:$0xff]  }
 0x81e   :  { %10352 = vmatpush3.bf16.msra.mxu1 %v11627_v46 }
 0x821   :  { %7036 = vmatmul.mubr.bf16.gmra.mxu1 %v11668_v53 }
 0x822   :  { %7043 = vmatprep.mubr.bf16.mxu1 %v11674_v61 }
 0x868   :  { %v10899_v54 = vpop.f32.mrf.mxu0 }
 0x86a   :  { %v5707_v36 = vpop.f32.mrf.mxu0 }
 0x86c   :  { %v10900_v52 = vpop.f32.mrf.mxu0 }
 0x86d   :  { %v9420_v60 = vpack.c.bf16 %v10900_v52, %v10899_v54  ;;  %v11672_v54 = vld [vmem:[%s13631_s0 + $0x138] ss:$12 sps:$4 sm:$0xff]  }
 0x86e   :  { %v5710_v62 = vpop.f32.mrf.mxu0  ;;  %7044 = vmatmul.mubr.bf16.gmra.mxu1 %v11672_v54 }
 0x86f   :  { %9514 = vst [vmem:[#allocation2 + $0x88] sm:$0xff] %v9420_v60   ;;  %v9415_v3 = vpack.c.bf16 %v5710_v62, %v5707_v36  ;;  %v11681_v36 = vld [vmem:[%s13631_s0 + $0x154] ss:$12 sps:$4 sm:$0xff]   ;;  %v11679_v62 = vld [vmem:[%s13631_s0 + $0x150] ss:$12 sps:$4 sm:$0xff]  }
 0x870   :  { %v10903_v25 = vpop.f32.mrf.mxu0  ;;  %7051 = vmatprep.mubr.bf16.mxu1 %v11681_v36 }
 0x871   :  { %9513 = vst [vmem:[#allocation2 + $0x80] sm:$0xff] %v9415_v3   ;;  %v11688_v3 = vld [vmem:[%s13631_s0 + $0x16c] ss:$12 sps:$4 sm:$0xff]  }
 0x872   :  { %v5723_v56 = vpop.f32.mrf.mxu0 }
 0x874   :  { %v10904_v28 = vpop.f32.mrf.mxu0 }
 0x875   :  { %v9430_v24 = vpack.c.bf16 %v10904_v28, %v10903_v25  ;;  %v11686_v28 = vld [vmem:[%s13631_s0 + $0x168] ss:$12 sps:$4 sm:$0xff]  }
 0x876   :  { %v5726_v51 = vpop.f32.mrf.mxu0  ;;  %v11634_v45 = vld [vmem:[#allocation2 + $0x88] sm:$0xff]   ;;  %7052 = vmatmul.mubr.bf16.gmra.mxu1 %v11679_v62 }
 0x877   :  { %9516 = vst [vmem:[#allocation2 + $0x98] sm:$0xff] %v9430_v24   ;;  %v9425_v57 = vpack.c.bf16 %v5726_v51, %v5723_v56  ;;  %7059 = vmatprep.mubr.bf16.mxu1 %v11688_v3 }
 0x878   :  { %v10907_v42 = vpop.f32.mrf.mxu0  ;;  %v11635_v47 = vld [vmem:[#allocation2 + $0x80] sm:$0xff]  }
 0x879   :  { %9515 = vst [vmem:[#allocation2 + $0x90] sm:$0xff] %v9425_v57  }
 0x87a   :  { %v5739_v21 = vpop.f32.mrf.mxu0 }
 0x87c   :  { %v10908_v12 = vpop.f32.mrf.mxu0 }
 0x87d   :  { %v9440_v26 = vpack.c.bf16 %v10908_v12, %v10907_v42 }
 0x87e   :  { %v5742_v41 = vpop.f32.mrf.mxu0  ;;  %v11632_v23 = vld [vmem:[#allocation2 + $0x98] sm:$0xff]   ;;  %7060 = vmatmul.mubr.bf16.gmra.mxu1 %v11686_v28 }
 0x87f   :  { %9518 = vst [vmem:[#allocation2 + $0xa8] sm:$0xff] %v9440_v26   ;;  %v9435_v5 = vpack.c.bf16 %v5742_v41, %v5739_v21 }
 0x880   :  { %v10911_v59 = vpop.f32.mrf.mxu0  ;;  %v11633_v1 = vld [vmem:[#allocation2 + $0x90] sm:$0xff]  }
 0x881   :  { %9517 = vst [vmem:[#allocation2 + $0xa0] sm:$0xff] %v9435_v5   ;;  %v10161_v39 = vpop.f32.mrf.mxu1 }
 0x882   :  { %v5755_v29 = vpop.f32.mrf.mxu0 }
 0x883   :  { %v10162_v22 = vpop.f32.mrf.mxu1 }
 0x884   :  { %v10912_v50 = vpop.f32.mrf.mxu0 }
 0x885   :  { %v9450_v40 = vpack.c.bf16 %v10912_v50, %v10911_v59  ;;  %v10164_v55 = vpop.f32.mrf.mxu1 }
 0x886   :  { %v5758_v0 = vpop.f32.mrf.mxu0  ;;  %v11630_v44 = vld [vmem:[#allocation2 + $0xa8] sm:$0xff]  }
 0x887   :  { %9520 = vst [vmem:[#allocation2 + $0xb8] sm:$0xff] %v9450_v40   ;;  %v9445_v32 = vpack.c.bf16 %v5758_v0, %v5755_v29  ;;  %v10165_v63 = vpop.f32.mrf.mxu1 }
 0x888   :  { %v11631_v16 = vld [vmem:[#allocation2 + $0xa0] sm:$0xff]  }
 0x889   :  { %9519 = vst [vmem:[#allocation2 + $0xb0] sm:$0xff] %v9445_v32   ;;  %v10167_v18 = vpop.f32.mrf.mxu1 }
 0x88b   :  { %v10168_v46 = vpop.f32.mrf.mxu1 }
 0x88d   :  { %v10170_v37 = vpop.f32.mrf.mxu1 }
 0x88e   :  { %v11628_v31 = vld [vmem:[#allocation2 + $0xb8] sm:$0xff]  }
 0x88f   :  { %10913 = vmatprep.subr.bf16.mxu0 %v11628_v31  ;;  %v13007_v17 = vld [vmem:[#allocation2 + $0xb8] sm:$0xff]   ;;  %v10171_v52 = vpop.f32.mrf.mxu1 }
 0x890   :  { %v11629_v10 = vld [vmem:[#allocation2 + $0xb0] sm:$0xff]   ;;  %10914 = vmatpush3.bf16.msra.mxu0 %v11628_v31  ;;  %v10163_v31 = vadd.f32 %v10162_v22, %v10161_v39 }
 0x891   :  { %10915 = vmatprep.subr.bf16.mxu0 %v11629_v10  ;;  %v10173_v60 = vpop.f32.mrf.mxu1 }
 0x893   :  { %v10174_v25 = vpop.f32.mrf.mxu1 }
 0x894   :  { %10916 = vmatpush3.bf16.msra.mxu0 %v11629_v10  ;;  %v10172_v10 = vadd.f32 %v10171_v52, %v10170_v37 }
 0x895   :  { %10917 = vmatprep.subr.bf16.mxu0 %v11630_v44  ;;  %v10176_v56 = vpop.f32.mrf.mxu1 }
 0x897   :  { %v10177_v24 = vpop.f32.mrf.mxu1 }
 0x898   :  { %10918 = vmatpush3.bf16.msra.mxu0 %v11630_v44  ;;  %v10169_v44 = vadd.f32 %v10168_v46, %v10167_v18  ;;  %v10178_v39 = vadd.f32 %v10177_v24, %v10176_v56 }
 0x899   :  { %10919 = vmatprep.subr.bf16.mxu0 %v11631_v16  ;;  %v10179_v51 = vpop.f32.mrf.mxu1 }
 0x89b   :  { %v10180_v57 = vpop.f32.mrf.mxu1 }
 0x89c   :  { %10920 = vmatpush3.bf16.msra.mxu0 %v11631_v16  ;;  %v13059_v16 = vld [vmem:[%s13632_s3 + $0x2] ss:$0 sm:$0xff] }
 0x89d   :  { %10921 = vmatprep.subr.bf16.mxu0 %v11632_v23  ;;  %v10182_v42 = vpop.f32.mrf.mxu1  ;;  %v6264_v54 = vadd.f32 %v10178_v39, %v13059_v16 }
 0x89f   :  { %v10183_v21 = vpop.f32.mrf.mxu1 }
 0x8a0   :  { %10922 = vmatpush3.bf16.msra.mxu0 %v11632_v23 }
 0x8a1   :  { %10923 = vmatprep.subr.bf16.mxu0 %v11633_v1  ;;  %v10185_v12 = vpop.f32.mrf.mxu1 }
 0x8a3   :  { %v10186_v26 = vpop.f32.mrf.mxu1 }
 0x8a4   :  { %10924 = vmatpush3.bf16.msra.mxu0 %v11633_v1  ;;  %v10187_v62 = vadd.f32 %v10186_v26, %v10185_v12 }
 0x8a5   :  { %10925 = vmatprep.subr.bf16.mxu0 %v11634_v45  ;;  %v10188_v41 = vpop.f32.mrf.mxu1 }
 0x8a7   :  { %v10189_v5 = vpop.f32.mrf.mxu1 }
 0x8a8   :  { %10926 = vmatpush3.bf16.msra.mxu0 %v11634_v45  ;;  %v10166_v45 = vadd.f32 %v10165_v63, %v10164_v55 }
 0x8a9   :  { %10927 = vmatprep.subr.bf16.mxu0 %v11635_v47  ;;  %v10191_v59 = vpop.f32.mrf.mxu1 }
 0x8ab   :  { %v10192_v29 = vpop.f32.mrf.mxu1 }
 0x8ac   :  { %10928 = vmatpush3.bf16.msra.mxu0 %v11635_v47  ;;  %v10193_v56 = vadd.f32 %v10192_v29, %v10191_v59 }
 0x8ad   :  { %10945 = vmatprep.subr.bf16.mxu0 %v11638_v48  ;;  %v10194_v50 = vpop.f32.mrf.mxu1 }
 0x8af   :  { %10930 = vmatmul.mubr.bf16.vlgmr.msra.gmra.mxu0 %v11637_v20  ;;  %v10195_v40 = vpop.f32.mrf.mxu1  ;;  %v6256_v20 = vadd.f32 %v10172_v10, %v13059_v16 }
 0x8b0   :  { %10946 = vmatpush3.bf16.msra.mxu0 %v11638_v48  ;;  %10933 = vmatprep.mubr.bf16.mxu0 %v11640_v19  ;;  %v6245_v48 = vadd.f32 %v10163_v31, %v13059_v16  ;;  %v6253_v19 = vadd.f32 %v10169_v44, %v13059_v16  ;;  %v10196_v3 = vadd.f32 %v10195_v40, %v10194_v50  ;;  %v11657_v44 = vld [vmem:[#allocation2 + $0xa8] sm:$0xff]  }
 0x8b1   :  { %10947 = vmatprep.subr.bf16.mxu0 %v11639_v43  ;;  %v13052_v0 = vpop.f32.mrf.mxu1 }
 0x8b2   :  { %v6288_v12 = vadd.f32 %v10196_v3, %v13059_v16  ;;  %v11683_v3 = vld [vmem:[%s13633_s4 + $0x28] sm:$0xff]  }
 0x8b3   :  { %v13054_v32 = vpop.f32.mrf.mxu1 }
 0x8b4   :  { %10948 = vmatpush3.bf16.msra.mxu0 %v11639_v43 }
 0x8b5   :  { %10949 = vmatprep.subr.bf16.mxu0 %v11642_v14  ;;  %v13061_v1 = vpop.f32.mrf.mxu1 }
 0x8b7   :  { %10934 = vmatmul.mubr.bf16.gmra.mxu0 %v11641_v38 }
 0x8b8   :  { %10950 = vmatpush3.bf16.msra.mxu0 %v11642_v14  ;;  %10937 = vmatprep.mubr.bf16.mxu0 %v11644_v27  ;;  %v13066_v14 = vpop.f32.mrf.mxu1 }
 0x8b9   :  { %10951 = vmatprep.subr.bf16.mxu0 %v11643_v35 }
 0x8ba   :  { %v10203_v58 = vpop.f32.mrf.mxu1 }
 0x8bc   :  { %10952 = vmatpush3.bf16.msra.mxu0 %v11643_v35  ;;  %v6248_v35 = vadd.f32 %v10166_v45, %v13059_v16  ;;  %v10204_v61 = vpop.f32.mrf.mxu1  ;;  %v6277_v45 = vadd.f32 %v10187_v62, %v13059_v16  ;;  %v11678_v62 = vld [vmem:[%s13633_s4 + $0x30] sm:$0xff]  }
 0x8bd   :  { %10953 = vmatprep.subr.bf16.mxu0 %v11646_v15 }
 0x8bf   :  { %10938 = vmatmul.mubr.bf16.gmra.mxu0 %v11645_v30 }
 0x8c0   :  { %10954 = vmatpush3.bf16.msra.mxu0 %v11646_v15  ;;  %10941 = vmatprep.mubr.bf16.mxu0 %v11648_v33  ;;  %v10175_v33 = vadd.f32 %v10174_v25, %v10173_v60  ;;  %v11656_v60 = vld [vmem:[#allocation2 + $0xb0] sm:$0xff]  }
 0x8c1   :  { %10955 = vmatprep.subr.bf16.mxu0 %v11647_v8 }
 0x8c2   :  { %v6261_v9 = vadd.f32 %v10175_v33, %v13059_v16 }
 0x8c4   :  { %10956 = vmatpush3.bf16.msra.mxu0 %v11647_v8  ;;  %v10184_v8 = vadd.f32 %v10183_v21, %v10182_v42 }
 0x8c5   :  { %10957 = vmatprep.subr.bf16.mxu0 %v11650_v4 }
 0x8c6   :  { %v6272_v63 = vadd.f32 %v10184_v8, %v13059_v16 }
 0x8c7   :  { %10942 = vmatmul.mubr.bf16.gmra.mxu0 %v11649_v6  ;;  %v10181_v6 = vadd.f32 %v10180_v57, %v10179_v51  ;;  %v10206_v51 = vpop.f32.mrf.mxu1  ;;  %v10190_v57 = vadd.f32 %v10189_v5, %v10188_v41 }
 0x8c8   :  { %10958 = vmatpush3.bf16.msra.mxu0 %v11650_v4 }
 0x8c9   :  { %10959 = vmatprep.subr.bf16.mxu0 %v11651_v49  ;;  %v6269_v18 = vadd.f32 %v10181_v6, %v13059_v16  ;;  %v10207_v29 = vpop.f32.mrf.mxu1  ;;  %v6280_v41 = vadd.f32 %v10190_v57, %v13059_v16  ;;  %v11693_v57 = vld [vmem:[%s13631_s0 + $0x158] ss:$12 sps:$4 sm:$0xff]  }
 0x8cc   :  { %10960 = vmatpush3.bf16.msra.mxu0 %v11651_v49 }
 0x8cd   :  { %10977 = vmatprep.subr.bf16.mxu0 %v13007_v17 }
 0x96f   :  { %v10931_v23 = vpop.f32.mrf.mxu0 }
 0x970   :  { %v6350_v15 = vadd.f32 %v10931_v23, %v6253_v19  ;;  %v10199_v19 = vadd.f32 %v13054_v32, %v13052_v0 }
 0x971   :  { %v6341_v47 = vpop.f32.mrf.mxu0 }
 0x972   :  { %v6342_v38 = vadd.f32 %v6341_v47, %v6245_v48  ;;  %v6406_v22 = vmax.f32 %v6350_v15, 0.0  ;;  %v10205_v47 = vadd.f32 %v10204_v61, %v10203_v58  ;;  %v10202_v15 = vadd.f32 %v13066_v14, %v13061_v1 }
 0x973   :  { %v10932_v43 = vpop.f32.mrf.mxu0  ;;  %v6293_v58 = vadd.f32 %v10199_v19, %v13059_v16  ;;  %v11716_v19 = vld [vmem:[%s13631_s0 + $0x1e0] ss:$12 sps:$4 sm:$0xff]  }
 0x974   :  { %v6353_v27 = vadd.f32 %v10932_v43, %v6256_v20  ;;  %v6404_v2 = vmax.f32 %v6342_v38, 0.0  ;;  %v11661_v20 = vld [vmem:[#allocation2 + $0xa0] sm:$0xff]   ;;  %v10208_v43 = vadd.f32 %v10207_v29, %v10206_v51  ;;  %v6296_v1 = vadd.f32 %v10202_v15, %v13059_v16 }
 0x975   :  { %v6344_v30 = vpop.f32.mrf.mxu0  ;;  %v11691_v51 = vld [vmem:[%s13631_s0 + $0x140] ss:$12 sps:$4 sm:$0xff]  }
 0x976   :  { %v6345_v4 = vadd.f32 %v6344_v30, %v6248_v35  ;;  %v6407_v49 = vmax.f32 %v6353_v27, 0.0  ;;  %v6304_v0 = vadd.f32 %v10208_v43, %v13059_v16  ;;  %v11708_v29 = vld [vmem:[%s13631_s0 + $0x1b4] ss:$12 sps:$4 sm:$0xff]   ;;  %v11722_v43 = vld [vmem:[%s13631_s0 + $0x1fc] ss:$12 sps:$4 sm:$0xff]  }
 0x977   :  { %v10935_v34 = vpop.f32.mrf.mxu0  ;;  %v11727_v15 = vld [vmem:[%s13631_s0 + $0x214] ss:$12 sps:$4 sm:$0xff]  }
 0x978   :  { %v6405_v11 = vmax.f32 %v6345_v4, 0.0  ;;  %v6421_v7 = vpack.c.bf16 %v6407_v49, %v6406_v22  ;;  %v6366_v36 = vadd.f32 %v10935_v34, %v6269_v18  ;;  %v6301_v4 = vadd.f32 %v10205_v47, %v13059_v16  ;;  %v11662_v49 = vld [vmem:[#allocation2 + $0x98] sm:$0xff]  }
 0x979   :  { %v6357_v55 = vpop.f32.mrf.mxu0 }
 0x97a   :  { %v6420_v13 = vpack.c.bf16 %v6405_v11, %v6404_v2  ;;  %v6358_v46 = vadd.f32 %v6357_v55, %v6261_v9  ;;  %v6410_v31 = vmax.f32 %v6366_v36, 0.0  ;;  %v11666_v55 = vld [vmem:[#allocation2 + $0x90] sm:$0xff]   ;;  %v11676_v36 = vld [vmem:[%s13633_s4 + $0x38] sm:$0xff]  }
 0x97b   :  { %v10936_v53 = vpop.f32.mrf.mxu0 }
 0x97c   :  { %v6369_v37 = vadd.f32 %v10936_v53, %v6272_v63  ;;  %10961 = vmatprep.mubr.bf16.mxu0 %v6420_v13  ;;  %v6408_v42 = vmax.f32 %v6358_v46, 0.0  ;;  %v11667_v53 = vld [vmem:[#allocation2 + $0x88] sm:$0xff]  }
 0x97d   :  { %v6360_v52 = vpop.f32.mrf.mxu0  ;;  %10962 = vmatmul.mubr.bf16.vlgmr.msra.gmra.mxu0 %v6421_v7  ;;  %v11675_v46 = vld [vmem:[%s13631_s0 + $0xc8] ss:$12 sps:$4 sm:$0xff]  }
 0x97e   :  { %v6361_v25 = vadd.f32 %v6360_v52, %v6264_v54  ;;  %10978 = vmatpush3.bf16.msra.mxu0 %v13007_v17  ;;  %v6411_v28 = vmax.f32 %v6369_v37, 0.0  ;;  %v6285_v17 = vadd.f32 %v10193_v56, %v13059_v16  ;;  %v11671_v54 = vld [vmem:[#allocation2 + $0x80] sm:$0xff]   ;;  %v11689_v56 = vld [vmem:[%s13631_s0 + $0x128] ss:$12 sps:$4 sm:$0xff]  }
 0x97f   :  { %10979 = vmatprep.subr.bf16.mxu0 %v11656_v60  ;;  %v10939_v24 = vpop.f32.mrf.mxu0  ;;  %v11677_v52 = vld [vmem:[%s13631_s0 + $0xe0] ss:$12 sps:$4 sm:$0xff]  }
 0x980   :  { %v6409_v21 = vmax.f32 %v6361_v25, 0.0  ;;  %v6423_v26 = vpack.c.bf16 %v6411_v28, %v6410_v31  ;;  %v6382_v5 = vadd.f32 %v10939_v24, %v6285_v17  ;;  %v11684_v25 = vld [vmem:[%s13631_s0 + $0x110] ss:$12 sps:$4 sm:$0xff]   ;;  %v11685_v28 = vld [vmem:[%s13633_s4 + $0x20] sm:$0xff]   ;;  %v13149_v17 = vpop.f32.mrf.mxu1 }
 0x981   :  { %v6373_v10 = vpop.f32.mrf.mxu0  ;;  %v11690_v24 = vld [vmem:[%s13633_s4 + $0x18] sm:$0xff]  }
 0x982   :  { %v6422_v23 = vpack.c.bf16 %v6409_v21, %v6408_v42  ;;  %10980 = vmatpush3.bf16.msra.mxu0 %v11656_v60  ;;  %v6374_v50 = vadd.f32 %v6373_v10, %v6277_v45  ;;  %v6414_v8 = vmax.f32 %v6382_v5, 0.0  ;;  %v11682_v60 = vld [vmem:[%s13631_s0 + $0xf8] ss:$12 sps:$4 sm:$0xff]   ;;  %v11692_v42 = vld [vmem:[%s13633_s4 + $0x10] sm:$0xff]   ;;  %v11694_v21 = vld [vmem:[%s13633_s4 + $0x8] sm:$0xff]  }
 0x983   :  { %10981 = vmatprep.subr.bf16.mxu0 %v11657_v44  ;;  %v10940_v59 = vpop.f32.mrf.mxu0  ;;  %v11695_v31 = vld [vmem:[%s13631_s0 + $0x170] ss:$12 sps:$4 sm:$0xff]   ;;  %v11696_v10 = vld [vmem:[%s13633_s4] sm:$0xff]   ;;  %v11713_v5 = vld [vmem:[%s13631_s0 + $0x1cc] ss:$12 sps:$4 sm:$0xff]  }
 0x984   :  { %v6385_v40 = vadd.f32 %v10940_v59, %v6288_v12  ;;  %10965 = vmatprep.mubr.bf16.mxu0 %v6422_v23  ;;  %v6412_v30 = vmax.f32 %v6374_v50, 0.0  ;;  %v11698_v23 = vld [vmem:[%s13631_s0 + $0x180] ss:$12 sps:$4 sm:$0xff]   ;;  %v11700_v45 = vld [vmem:[%s13631_s0 + $0x184] ss:$12 sps:$4 sm:$0xff]   ;;  %v13157_v50 = vpop.f32.mrf.mxu1 }
 0x985   :  { %v6376_v48 = vpop.f32.mrf.mxu0  ;;  %10966 = vmatmul.mubr.bf16.gmra.mxu0 %v6423_v26  ;;  %7764 = vmatprep.mubr.bf16.mxu1 %v11700_v45  ;;  %v11701_v12 = vld [vmem:[%s13631_s0 + $0x198] ss:$12 sps:$4 sm:$0xff]   ;;  %v11703_v26 = vld [vmem:[%s13631_s0 + $0x19c] ss:$12 sps:$4 sm:$0xff]  }
 0x986   :  { %v6377_v38 = vadd.f32 %v6376_v48, %v6280_v41  ;;  %10982 = vmatpush3.bf16.msra.mxu0 %v11657_v44  ;;  %v6415_v27 = vmax.f32 %v6385_v40, 0.0  ;;  %v13134_v44 = vld [vmem:[#allocation2 + $0xb8] sm:$0xff]   ;;  %7765 = vmatmul.mubr.bf16.vlgmr.msra.gmra.mxu1 %v11698_v23  ;;  %v13159_v40 = vpop.f32.mrf.mxu1  ;;  %v11711_v41 = vld [vmem:[%s13631_s0 + $0x1c8] ss:$12 sps:$4 sm:$0xff]   ;;  %v11718_v48 = vld [vmem:[%s13631_s0 + $0x1e4] ss:$12 sps:$4 sm:$0xff]  }
 0x987   :  { %10983 = vmatprep.subr.bf16.mxu0 %v11661_v20  ;;  %v10943_v35 = vpop.f32.mrf.mxu0  ;;  %7772 = vmatprep.mubr.bf16.mxu1 %v11703_v26  ;;  %v11706_v59 = vld [vmem:[%s13631_s0 + $0x1b0] ss:$12 sps:$4 sm:$0xff]  }
 0x988   :  { %v6413_v33 = vmax.f32 %v6377_v38, 0.0  ;;  %v6425_v32 = vpack.c.bf16 %v6415_v27, %v6414_v8  ;;  %v6398_v14 = vadd.f32 %v10943_v35, %v6301_v4  ;;  %v13167_v47 = vpop.f32.mrf.mxu1  ;;  %v11720_v35 = vld [vmem:[%s13631_s0 + $0x1f8] ss:$12 sps:$4 sm:$0xff]   ;;  %v11725_v8 = vld [vmem:[%s13631_s0 + $0x210] ss:$12 sps:$4 sm:$0xff]  }
 0x989   :  { %v6389_v6 = vpop.f32.mrf.mxu0  ;;  %v11732_v4 = vld [vmem:[%s13631_s0 + $0x22c] ss:$12 sps:$4 sm:$0xff]  }
 0x98a   :  { %v6424_v34 = vpack.c.bf16 %v6413_v33, %v6412_v30  ;;  %10984 = vmatpush3.bf16.msra.mxu0 %v11661_v20  ;;  %v6390_v2 = vadd.f32 %v6389_v6, %v6293_v58  ;;  %v6418_v18 = vmax.f32 %v6398_v14, 0.0  ;;  %v13172_v20 = vpop.f32.mrf.mxu1 }
 0x98b   :  { %10985 = vmatprep.subr.bf16.mxu0 %v11662_v49  ;;  %v10944_v39 = vpop.f32.mrf.mxu0 }
 0x98c   :  { %v6401_v11 = vadd.f32 %v10944_v39, %v6304_v0  ;;  %10969 = vmatprep.mubr.bf16.mxu0 %v6424_v34  ;;  %v6416_v63 = vmax.f32 %v6390_v2, 0.0  ;;  %v13180_v38 = vpop.f32.mrf.mxu1  ;;  %v11730_v34 = vld [vmem:[%s13631_s0 + $0x228] ss:$12 sps:$4 sm:$0xff]   ;;  %v13218_v2 = vld [vmem:[%s13633_s4 + $0x38] sm:$0xff]  }
 0x98d   :  { %v6392_v22 = vpop.f32.mrf.mxu0  ;;  %10970 = vmatmul.mubr.bf16.gmra.mxu0 %v6425_v32  ;;  %11105 = vmatprep.subr.bf16.mxu1 %v13218_v2 }
 0x98e   :  { %v6393_v13 = vadd.f32 %v6392_v22, %v6296_v1  ;;  %10986 = vmatpush3.bf16.msra.mxu0 %v11662_v49  ;;  %v6419_v9 = vmax.f32 %v6401_v11, 0.0  ;;  %7773 = vmatmul.mubr.bf16.gmra.mxu1 %v11701_v12  ;;  %v13182_v27 = vpop.f32.mrf.mxu1  ;;  %v13231_v22 = vld [vmem:[%s13634_s5] ss:$0 sm:$0xff] }
 0x98f   :  { %10987 = vmatprep.subr.bf16.mxu0 %v11666_v55  ;;  %7780 = vmatprep.mubr.bf16.mxu1 %v11708_v29 }
 0x990   :  { %v6417_v7 = vmax.f32 %v6393_v13, 0.0  ;;  %v6427_v37 = vpack.c.bf16 %v6419_v9, %v6418_v18  ;;  %v13190_v30 = vpop.f32.mrf.mxu1  ;;  %11113 = vmatpush3.bf16.msra.mxu1 %v13218_v2 }
 0x992   :  { %v6426_v61 = vpack.c.bf16 %v6417_v7, %v6416_v63  ;;  %10988 = vmatpush3.bf16.msra.mxu0 %v11666_v55  ;;  %v13192_v33 = vpop.f32.mrf.mxu1 }
 0x993   :  { %10989 = vmatprep.subr.bf16.mxu0 %v11667_v53 }
 0x994   :  { %10973 = vmatprep.mubr.bf16.mxu0 %v6426_v61  ;;  %v13200_v6 = vpop.f32.mrf.mxu1 }
 0x995   :  { %10974 = vmatmul.mubr.bf16.gmra.mxu0 %v6427_v37 }
 0x996   :  { %10990 = vmatpush3.bf16.msra.mxu0 %v11667_v53  ;;  %10993 = vmatprep.mubr.bf16.mxu0 %v11675_v46  ;;  %v13202_v49 = vpop.f32.mrf.mxu1 }
 0x997   :  { %10991 = vmatprep.subr.bf16.mxu0 %v11671_v54  ;;  %7781 = vmatmul.mubr.bf16.gmra.mxu1 %v11706_v59 }
 0x998   :  { %7788 = vmatprep.mubr.bf16.mxu1 %v11713_v5  ;;  %v13207_v58 = vpop.f32.mrf.mxu1 }
 0x99a   :  { %10992 = vmatpush3.bf16.msra.mxu0 %v11671_v54  ;;  %v13209_v0 = vpop.f32.mrf.mxu1 }
 0x99b   :  { %11009 = vmatprep.subr.bf16.mxu0 %v11676_v36 }
 0x99c   :  { %v13211_v32 = vpop.f32.mrf.mxu1 }
 0x99d   :  { %10994 = vmatmul.mubr.bf16.vlgmr.msra.gmra.mxu0 %v11677_v52 }
 0x99e   :  { %11010 = vmatpush3.bf16.msra.mxu0 %v11676_v36  ;;  %10997 = vmatprep.mubr.bf16.mxu0 %v11682_v60  ;;  %v13213_v39 = vpop.f32.mrf.mxu1 }
 0x99f   :  { %11011 = vmatprep.subr.bf16.mxu0 %v11678_v62  ;;  %7789 = vmatmul.mubr.bf16.gmra.mxu1 %v11711_v41 }
 0x9a0   :  { %7796 = vmatprep.mubr.bf16.mxu1 %v11718_v48  ;;  %v13220_v11 = vpop.f32.mrf.mxu1 }
 0x9a2   :  { %11012 = vmatpush3.bf16.msra.mxu0 %v11678_v62  ;;  %v13224_v1 = vpop.f32.mrf.mxu1 }
 0x9a3   :  { %11013 = vmatprep.subr.bf16.mxu0 %v11683_v3 }
 0x9a4   :  { %v13226_v14 = vpop.f32.mrf.mxu1 }
 0x9a5   :  { %10998 = vmatmul.mubr.bf16.gmra.mxu0 %v11684_v25 }
 0x9a6   :  { %11014 = vmatpush3.bf16.msra.mxu0 %v11683_v3  ;;  %11001 = vmatprep.mubr.bf16.mxu0 %v11689_v56  ;;  %v13233_v13 = vpop.f32.mrf.mxu1 }
 0x9a7   :  { %11015 = vmatprep.subr.bf16.mxu0 %v11685_v28  ;;  %7797 = vmatmul.mubr.bf16.gmra.mxu1 %v11716_v19 }
 0x9a8   :  { %7804 = vmatprep.mubr.bf16.mxu1 %v11722_v43  ;;  %v13240_v53 = vpop.f32.mrf.mxu1 }
 0x9aa   :  { %11016 = vmatpush3.bf16.msra.mxu0 %v11685_v28  ;;  %v13250_v36 = vpop.f32.mrf.mxu1 }
 0x9ab   :  { %11017 = vmatprep.subr.bf16.mxu0 %v11690_v24 }
 0x9ac   :  { %v13260_v25 = vpop.f32.mrf.mxu1 }
 0x9ad   :  { %11002 = vmatmul.mubr.bf16.gmra.mxu0 %v11691_v51 }
 0x9ae   :  { %11018 = vmatpush3.bf16.msra.mxu0 %v11690_v24  ;;  %11005 = vmatprep.mubr.bf16.mxu0 %v11693_v57  ;;  %v13270_v57 = vpop.f32.mrf.mxu1 }
 0x9af   :  { %11019 = vmatprep.subr.bf16.mxu0 %v11692_v42  ;;  %7805 = vmatmul.mubr.bf16.gmra.mxu1 %v11720_v35 }
 0x9b0   :  { %7812 = vmatprep.mubr.bf16.mxu1 %v11727_v15  ;;  %v13280_v23 = vpop.f32.mrf.mxu1 }
 0x9b2   :  { %11020 = vmatpush3.bf16.msra.mxu0 %v11692_v42  ;;  %v13290_v29 = vpop.f32.mrf.mxu1 }
 0x9b3   :  { %11021 = vmatprep.subr.bf16.mxu0 %v11694_v21 }
 0x9b4   :  { %v13300_v43 = vpop.f32.mrf.mxu1 }
 0x9b5   :  { %11006 = vmatmul.mubr.bf16.gmra.mxu0 %v11695_v31 }
 0x9b6   :  { %11022 = vmatpush3.bf16.msra.mxu0 %v11694_v21 }
 0x9b7   :  { %11023 = vmatprep.subr.bf16.mxu0 %v11696_v10  ;;  %7813 = vmatmul.mubr.bf16.gmra.mxu1 %v11725_v8  ;;  %v10259_v8 = vadd.f32 %v13157_v50, %v13149_v17 }
 0x9b8   :  { %7820 = vmatprep.mubr.bf16.mxu1 %v11732_v4  ;;  %v10268_v4 = vadd.f32 %v13190_v30, %v13182_v27 }
 0x9b9   :  { %v7006_v50 = vadd.f32 %v10259_v8, %v13059_v16  ;;  %v10286_v8 = vadd.f32 %v13240_v53, %v13233_v13 }
 0x9ba   :  { %11024 = vmatpush3.bf16.msra.mxu0 %v11696_v10  ;;  %v7017_v27 = vadd.f32 %v10268_v4, %v13059_v16 }
 0x9bb   :  { %11041 = vmatprep.subr.bf16.mxu0 %v13134_v44  ;;  %v7041_v13 = vadd.f32 %v10286_v8, %v13059_v16  ;;  %v11741_v8 = vld [vmem:[%s13633_s4 + $0x18] sm:$0xff]  }
 0x9bf   :  { %7821 = vmatmul.mubr.bf16.gmra.mxu1 %v11730_v34 }
 0xa3d   :  { %v10963_v55 = vpop.f32.mrf.mxu0 }
 0xa3e   :  { %v6542_v9 = vadd.f32 %v10963_v55, %v13231_v22  ;;  %v10265_v55 = vadd.f32 %v13180_v38, %v13172_v20 }
 0xa3f   :  { %v6533_v63 = vpop.f32.mrf.mxu0 }
 0xa40   :  { %6598 = vst [vmem:[%s13635_s6 + $0x10] sm:$0xff] %v6542_v9  ;;  %v6534_v7 = vadd.f32 %v13231_v22, %v6533_v63  ;;  %v13316_v63 = vpop.f32.mrf.mxu1  ;;  %v7014_v30 = vadd.f32 %v10265_v55, %v13059_v16 }
 0xa41   :  { %v10964_v18 = vpop.f32.mrf.mxu0 }
 0xa42   :  { %6596 = vst [vmem:[%s13635_s6] sm:$0xff] %v6534_v7  ;;  %v6545_v61 = vadd.f32 %v10964_v18, %v13231_v22  ;;  %v10262_v7 = vadd.f32 %v13167_v47, %v13159_v40  ;;  %v10271_v47 = vadd.f32 %v13200_v6, %v13192_v33 }
 0xa43   :  { %v6536_v46 = vpop.f32.mrf.mxu0 }
 0xa44   :  { %6599 = vst [vmem:[%s13635_s6 + $0x18] sm:$0xff] %v6545_v61  ;;  %v6537_v37 = vadd.f32 %v13231_v22, %v6536_v46  ;;  %v13326_v61 = vpop.f32.mrf.mxu1  ;;  %v7009_v46 = vadd.f32 %v10262_v7, %v13059_v16  ;;  %v7022_v33 = vadd.f32 %v10271_v47, %v13059_v16 }
 0xa45   :  { %v10967_v54 = vpop.f32.mrf.mxu0  ;;  %v10298_v47 = vadd.f32 %v13326_v61, %v13316_v63 }
 0xa46   :  { %6597 = vst [vmem:[%s13635_s6 + $0x8] sm:$0xff] %v6537_v37  ;;  %v6558_v52 = vadd.f32 %v10967_v54, %v13231_v22  ;;  %v10280_v54 = vadd.f32 %v13220_v11, %v13213_v39 }
 0xa47   :  { %v6549_v60 = vpop.f32.mrf.mxu0  ;;  %v7057_v63 = vadd.f32 %v10298_v47, %v13059_v16 }
 0xa48   :  { %6602 = vst [vmem:[%s13635_s6 + $0x30] sm:$0xff] %v6558_v52  ;;  %v6550_v62 = vadd.f32 %v13231_v22, %v6549_v60  ;;  %v10277_v60 = vadd.f32 %v13211_v32, %v13209_v0  ;;  %v7033_v6 = vadd.f32 %v10280_v54, %v13059_v16 }
 0xa49   :  { %v10968_v3 = vpop.f32.mrf.mxu0 }
 0xa4a   :  { %6600 = vst [vmem:[%s13635_s6 + $0x20] sm:$0xff] %v6550_v62  ;;  %v6561_v56 = vadd.f32 %v10968_v3, %v13231_v22  ;;  %v7030_v11 = vadd.f32 %v10277_v60, %v13059_v16 }
 0xa4b   :  { %v6552_v28 = vpop.f32.mrf.mxu0 }
 0xa4c   :  { %6603 = vst [vmem:[%s13635_s6 + $0x38] sm:$0xff] %v6561_v56  ;;  %v6553_v24 = vadd.f32 %v13231_v22, %v6552_v28  ;;  %v10299_v56 = vpop.f32.mrf.mxu1  ;;  %v10274_v28 = vadd.f32 %v13207_v58, %v13202_v49 }
 0xa4d   :  { %v10971_v51 = vpop.f32.mrf.mxu0 }
 0xa4e   :  { %6601 = vst [vmem:[%s13635_s6 + $0x28] sm:$0xff] %v6553_v24  ;;  %v6574_v42 = vadd.f32 %v10971_v51, %v13231_v22  ;;  %v10300_v0 = vpop.f32.mrf.mxu1 }
 0xa4f   :  { %v6565_v21 = vpop.f32.mrf.mxu0 }
 0xa50   :  { %6606 = vst [vmem:[%s13635_s6 + $0x50] sm:$0xff] %v6574_v42  ;;  %v6566_v31 = vadd.f32 %v13231_v22, %v6565_v21 }
 0xa51   :  { %v10972_v10 = vpop.f32.mrf.mxu0 }
 0xa52   :  { %6604 = vst [vmem:[%s13635_s6 + $0x40] sm:$0xff] %v6566_v31  ;;  %v6577_v45 = vadd.f32 %v10972_v10, %v13231_v22 }
 0xa53   :  { %v6568_v12 = vpop.f32.mrf.mxu0 }
 0xa54   :  { %6607 = vst [vmem:[%s13635_s6 + $0x58] sm:$0xff] %v6577_v45  ;;  %v6569_v26 = vadd.f32 %v13231_v22, %v6568_v12  ;;  %v7025_v12 = vadd.f32 %v10274_v28, %v13059_v16 }
 0xa55   :  { %v10975_v59 = vpop.f32.mrf.mxu0 }
 0xa56   :  { %6605 = vst [vmem:[%s13635_s6 + $0x48] sm:$0xff] %v6569_v26  ;;  %v6590_v41 = vadd.f32 %v10975_v59, %v13231_v22  ;;  %v11704_v26 = vld [vmem:[#allocation2 + $0xb0] sm:$0xff]   ;;  %v10283_v59 = vadd.f32 %v13226_v14, %v13224_v1  ;;  %v11705_v14 = vld [vmem:[#allocation2 + $0xa8] sm:$0xff]  }
 0xa57   :  { %v6581_v5 = vpop.f32.mrf.mxu0 }
 0xa58   :  { %6610 = vst [vmem:[%s13635_s6 + $0x70] sm:$0xff] %v6590_v41  ;;  %v6582_v48 = vadd.f32 %v13231_v22, %v6581_v5  ;;  %v10292_v41 = vadd.f32 %v13280_v23, %v13270_v57  ;;  %v7038_v57 = vadd.f32 %v10283_v59, %v13059_v16  ;;  %v11729_v59 = vld [vmem:[%s13631_s0 + $0x1d0] ss:$12 sps:$4 sm:$0xff]  }
 0xa59   :  { %v10976_v19 = vpop.f32.mrf.mxu0 }
 0xa5a   :  { %6608 = vst [vmem:[%s13635_s6 + $0x60] sm:$0xff] %v6582_v48  ;;  %v6593_v35 = vadd.f32 %v10976_v19, %v13231_v22  ;;  %v10289_v48 = vadd.f32 %v13260_v25, %v13250_v36 }
 0xa5b   :  { %v6584_v15 = vpop.f32.mrf.mxu0 }
 0xa5c   :  { %6611 = vst [vmem:[%s13635_s6 + $0x78] sm:$0xff] %v6593_v35  ;;  %v6585_v34 = vadd.f32 %v13231_v22, %v6584_v15  ;;  %v10302_v15 = vpop.f32.mrf.mxu1  ;;  %v7046_v36 = vadd.f32 %v10289_v48, %v13059_v16  ;;  %v11735_v48 = vld [vmem:[%s13631_s0 + $0x218] ss:$12 sps:$4 sm:$0xff]  }
 0xa5d   :  { %v10995_v9 = vpop.f32.mrf.mxu0 }
 0xa5e   :  { %6609 = vst [vmem:[%s13635_s6 + $0x68] sm:$0xff] %v6585_v34  ;;  %v7111_v37 = vadd.f32 %v10995_v9, %v7014_v30  ;;  %v10303_v7 = vpop.f32.mrf.mxu1 }
 0xa5f   :  { %v7102_v17 = vpop.f32.mrf.mxu0 }
 0xa60   :  { %v7103_v20 = vadd.f32 %v7102_v17, %v7006_v50  ;;  %v7167_v42 = vmax.f32 %v7111_v37, 0.0 }
 0xa61   :  { %v10996_v18 = vpop.f32.mrf.mxu0 }
 0xa62   :  { %v7114_v38 = vadd.f32 %v10996_v18, %v7017_v27  ;;  %v7165_v24 = vmax.f32 %v7103_v20, 0.0  ;;  %v10301_v27 = vadd.f32 %v10300_v0, %v10299_v56  ;;  %v11709_v18 = vld [vmem:[#allocation2 + $0xa0] sm:$0xff]   ;;  %v10295_v20 = vadd.f32 %v13300_v43, %v13290_v29  ;;  %v11710_v56 = vld [vmem:[#allocation2 + $0x98] sm:$0xff]  }
 0xa63   :  { %v7105_v40 = vpop.f32.mrf.mxu0 }
 0xa64   :  { %v7106_v52 = vadd.f32 %v7105_v40, %v7009_v46  ;;  %v7168_v62 = vmax.f32 %v7114_v38, 0.0  ;;  %v10304_v38 = vadd.f32 %v10303_v7, %v10302_v15  ;;  %v11740_v15 = vld [vmem:[%s13633_s4 + $0x20] sm:$0xff]  }
 0xa65   :  { %v10999_v3 = vpop.f32.mrf.mxu0 }
 0xa66   :  { %v7166_v51 = vmax.f32 %v7106_v52, 0.0  ;;  %v7182_v39 = vpack.c.bf16 %v7168_v62, %v7167_v42  ;;  %v7127_v49 = vadd.f32 %v10999_v3, %v7030_v11  ;;  %v7062_v62 = vadd.f32 %v10301_v27, %v13059_v16 }
 0xa67   :  { %v7118_v21 = vpop.f32.mrf.mxu0  ;;  %v7065_v29 = vadd.f32 %v10304_v38, %v13059_v16 }
 0xa68   :  { %v7181_v31 = vpack.c.bf16 %v7166_v51, %v7165_v24  ;;  %v7119_v32 = vadd.f32 %v7118_v21, %v7022_v33  ;;  %v7171_v55 = vmax.f32 %v7127_v49, 0.0  ;;  %v7054_v24 = vadd.f32 %v10295_v20, %v13059_v16  ;;  %v11714_v33 = vld [vmem:[#allocation2 + $0x90] sm:$0xff]  }
 0xa69   :  { %v11000_v10 = vpop.f32.mrf.mxu0 }
 0xa6a   :  { %v7130_v45 = vadd.f32 %v11000_v10, %v7033_v6  ;;  %11025 = vmatprep.mubr.bf16.mxu0 %v7181_v31  ;;  %v7169_v4 = vmax.f32 %v7119_v32, 0.0  ;;  %v11715_v32 = vld [vmem:[#allocation2 + $0x88] sm:$0xff]  }
 0xa6b   :  { %v7121_v58 = vpop.f32.mrf.mxu0  ;;  %11026 = vmatmul.mubr.bf16.vlgmr.msra.gmra.mxu0 %v7182_v39 }
 0xa6c   :  { %v7122_v5 = vadd.f32 %v7121_v58, %v7025_v12  ;;  %11042 = vmatpush3.bf16.msra.mxu0 %v13134_v44  ;;  %v7172_v19 = vmax.f32 %v7130_v45, 0.0  ;;  %v7049_v44 = vadd.f32 %v10292_v41, %v13059_v16  ;;  %v11723_v12 = vld [vmem:[%s13631_s0 + $0x188] ss:$12 sps:$4 sm:$0xff]   ;;  %v11719_v16 = vld [vmem:[#allocation2 + $0x80] sm:$0xff]  }
 0xa6d   :  { %11043 = vmatprep.subr.bf16.mxu0 %v11704_v26  ;;  %v11003_v35 = vpop.f32.mrf.mxu0  ;;  %v11724_v58 = vld [vmem:[%s13631_s0 + $0x1a0] ss:$12 sps:$4 sm:$0xff]   ;;  %v11733_v41 = vld [vmem:[%s13631_s0 + $0x1e8] ss:$12 sps:$4 sm:$0xff]  }
 0xa6e   :  { %v7170_v34 = vmax.f32 %v7122_v5, 0.0  ;;  %v7184_v23 = vpack.c.bf16 %v7172_v19, %v7171_v55  ;;  %v7143_v53 = vadd.f32 %v11003_v35, %v7046_v36  ;;  %v11734_v5 = vld [vmem:[%s13631_s0 + $0x200] ss:$12 sps:$4 sm:$0xff]   ;;  %v11738_v19 = vld [vmem:[%s13633_s4 + $0x30] sm:$0xff]  }
 0xa6f   :  { %v7134_v1 = vpop.f32.mrf.mxu0  ;;  %11106 = vmatprep.subr.bf16.mxu1 %v11738_v19  ;;  %v11739_v35 = vld [vmem:[%s13633_s4 + $0x28] sm:$0xff]   ;;  %v11744_v55 = vld [vmem:[%s13633_s4] sm:$0xff]  }
 0xa70   :  { %v7183_v9 = vpack.c.bf16 %v7170_v34, %v7169_v4  ;;  %11044 = vmatpush3.bf16.msra.mxu0 %v11704_v26  ;;  %v7135_v17 = vadd.f32 %v7134_v1, %v7038_v57  ;;  %v7175_v60 = vmax.f32 %v7143_v53, 0.0  ;;  %v11728_v26 = vld [vmem:[%s13631_s0 + $0x1b8] ss:$12 sps:$4 sm:$0xff]   ;;  %11114 = vmatpush3.bf16.msra.mxu1 %v11738_v19  ;;  %v11742_v4 = vld [vmem:[%s13633_s4 + $0x10] sm:$0xff]   ;;  %v11743_v34 = vld [vmem:[%s13633_s4 + $0x8] sm:$0xff]   ;;  %v13409_v1 = vpop.f32.mrf.mxu1 }
 0xa71   :  { %11045 = vmatprep.subr.bf16.mxu0 %v11705_v14  ;;  %v11004_v25 = vpop.f32.mrf.mxu0  ;;  %11107 = vmatprep.subr.bf16.mxu1 %v11739_v35 }
 0xa72   :  { %v7146_v50 = vadd.f32 %v11004_v25, %v7049_v44  ;;  %11029 = vmatprep.mubr.bf16.mxu0 %v7183_v9  ;;  %v7173_v54 = vmax.f32 %v7135_v17, 0.0 }
 0xa73   :  { %v7137_v30 = vpop.f32.mrf.mxu0  ;;  %11030 = vmatmul.mubr.bf16.gmra.mxu0 %v7184_v23 }
 0xa74   :  { %v7138_v46 = vadd.f32 %v7137_v30, %v7041_v13  ;;  %11046 = vmatpush3.bf16.msra.mxu0 %v11705_v14  ;;  %v7176_v37 = vmax.f32 %v7146_v50, 0.0  ;;  %11115 = vmatpush3.bf16.msra.mxu1 %v11739_v35  ;;  %v13411_v14 = vpop.f32.mrf.mxu1 }
 0xa75   :  { %11047 = vmatprep.subr.bf16.mxu0 %v11709_v18  ;;  %v11007_v40 = vpop.f32.mrf.mxu0  ;;  %11108 = vmatprep.subr.bf16.mxu1 %v11740_v15 }
 0xa76   :  { %v7174_v52 = vmax.f32 %v7138_v46, 0.0  ;;  %v7186_v43 = vpack.c.bf16 %v7176_v37, %v7175_v60  ;;  %v7159_v61 = vadd.f32 %v11007_v40, %v7062_v62  ;;  %v13413_v9 = vpop.f32.mrf.mxu1 }
 0xa77   :  { %v7150_v3 = vpop.f32.mrf.mxu0 }
 0xa78   :  { %v7185_v28 = vpack.c.bf16 %v7174_v52, %v7173_v54  ;;  %11048 = vmatpush3.bf16.msra.mxu0 %v11709_v18  ;;  %v7151_v42 = vadd.f32 %v7150_v3, %v7054_v24  ;;  %v7179_v0 = vmax.f32 %v7159_v61, 0.0  ;;  %11116 = vmatpush3.bf16.msra.mxu1 %v11740_v15  ;;  %v13415_v57 = vpop.f32.mrf.mxu1 }
 0xa79   :  { %11049 = vmatprep.subr.bf16.mxu0 %v11710_v56  ;;  %v11008_v51 = vpop.f32.mrf.mxu0  ;;  %11109 = vmatprep.subr.bf16.mxu1 %v11741_v8 }
 0xa7a   :  { %v7162_v21 = vadd.f32 %v11008_v51, %v7065_v29  ;;  %11033 = vmatprep.mubr.bf16.mxu0 %v7185_v28  ;;  %v7177_v11 = vmax.f32 %v7151_v42, 0.0  ;;  %v13417_v44 = vpop.f32.mrf.mxu1 }
 0xa7b   :  { %v7153_v31 = vpop.f32.mrf.mxu0  ;;  %11034 = vmatmul.mubr.bf16.gmra.mxu0 %v7186_v43 }
 0xa7c   :  { %v7154_v6 = vadd.f32 %v7153_v31, %v7057_v63  ;;  %11050 = vmatpush3.bf16.msra.mxu0 %v11710_v56  ;;  %v7180_v39 = vmax.f32 %v7162_v21, 0.0  ;;  %11117 = vmatpush3.bf16.msra.mxu1 %v11741_v8  ;;  %v13419_v23 = vpop.f32.mrf.mxu1 }
 0xa7d   :  { %11051 = vmatprep.subr.bf16.mxu0 %v11714_v33  ;;  %11110 = vmatprep.subr.bf16.mxu1 %v11742_v4 }
 0xa7e   :  { %v7178_v10 = vmax.f32 %v7154_v6, 0.0  ;;  %v7188_v49 = vpack.c.bf16 %v7180_v39, %v7179_v0  ;;  %v13421_v36 = vpop.f32.mrf.mxu1 }
 0xa80   :  { %v7187_v45 = vpack.c.bf16 %v7178_v10, %v7177_v11  ;;  %11052 = vmatpush3.bf16.msra.mxu0 %v11714_v33  ;;  %11118 = vmatpush3.bf16.msra.mxu1 %v11742_v4  ;;  %v13423_v25 = vpop.f32.mrf.mxu1 }
 0xa81   :  { %11053 = vmatprep.subr.bf16.mxu0 %v11715_v32  ;;  %11111 = vmatprep.subr.bf16.mxu1 %v11743_v34 }
 0xa82   :  { %11037 = vmatprep.mubr.bf16.mxu0 %v7187_v45  ;;  %v13425_v7 = vpop.f32.mrf.mxu1 }
 0xa83   :  { %11038 = vmatmul.mubr.bf16.gmra.mxu0 %v7188_v49 }
 0xa84   :  { %11054 = vmatpush3.bf16.msra.mxu0 %v11715_v32  ;;  %11057 = vmatprep.mubr.bf16.mxu0 %v11723_v12  ;;  %v13427_v17 = vpop.f32.mrf.mxu1 }
 0xa85   :  { %11055 = vmatprep.subr.bf16.mxu0 %v11719_v16  ;;  %11119 = vmatpush3.bf16.msra.mxu1 %v11743_v34 }
 0xa86   :  { %11112 = vmatprep.subr.bf16.mxu1 %v11744_v55  ;;  %v13429_v50 = vpop.f32.mrf.mxu1 }
 0xa88   :  { %11056 = vmatpush3.bf16.msra.mxu0 %v11719_v16  ;;  %v13431_v13 = vpop.f32.mrf.mxu1 }
 0xa89   :  { %11073 = vmatprep.subr.bf16.mxu0 %v13218_v2  ;;  %11120 = vmatpush3.bf16.msra.mxu1 %v11744_v55 }
 0xa8a   :  { %v13433_v53 = vpop.f32.mrf.mxu1 }
 0xa8b   :  { %11058 = vmatmul.mubr.bf16.vlgmr.msra.gmra.mxu0 %v11724_v58 }
 0xa8c   :  { %11061 = vmatprep.mubr.bf16.mxu0 %v11728_v26  ;;  %11074 = vmatpush3.bf16.msra.mxu0 %v13218_v2  ;;  %v11736_v2 = vld [vmem:[%s13631_s0 + $0x230] ss:$12 sps:$4 sm:$0xff]   ;;  %v13435_v27 = vpop.f32.mrf.mxu1 }
 0xa8d   :  { %11075 = vmatprep.subr.bf16.mxu0 %v11738_v19 }
 0xa8e   :  { %v13437_v30 = vpop.f32.mrf.mxu1 }
 0xa90   :  { %11076 = vmatpush3.bf16.msra.mxu0 %v11738_v19  ;;  %v13439_v18 = vpop.f32.mrf.mxu1 }
 0xa91   :  { %11077 = vmatprep.subr.bf16.mxu0 %v11739_v35 }
 0xa92   :  { %v13441_v20 = vpop.f32.mrf.mxu1 }
 0xa93   :  { %11062 = vmatmul.mubr.bf16.gmra.mxu0 %v11729_v59 }
 0xa94   :  { %11065 = vmatprep.mubr.bf16.mxu0 %v11733_v41  ;;  %11078 = vmatpush3.bf16.msra.mxu0 %v11739_v35  ;;  %v13443_v38 = vpop.f32.mrf.mxu1  ;;  %v10355_v35 = vadd.f32 %v13411_v14, %v13409_v1  ;;  %v10358_v1 = vadd.f32 %v13415_v57, %v13413_v9  ;;  %v10367_v57 = vadd.f32 %v13427_v17, %v13425_v7 }
 0xa95   :  { %11079 = vmatprep.subr.bf16.mxu0 %v11740_v15 }
 0xa96   :  { %v13445_v37 = vpop.f32.mrf.mxu1 }
 0xa98   :  { %11080 = vmatpush3.bf16.msra.mxu0 %v11740_v15  ;;  %v13452_v60 = vpop.f32.mrf.mxu1  ;;  %v10364_v15 = vadd.f32 %v13423_v25, %v13421_v36 }
 0xa99   :  { %11081 = vmatprep.subr.bf16.mxu0 %v11741_v8 }
 0xa9a   :  { %v13462_v24 = vpop.f32.mrf.mxu1 }
 0xa9b   :  { %11066 = vmatmul.mubr.bf16.gmra.mxu0 %v11734_v5 }
 0xa9c   :  { %11069 = vmatprep.mubr.bf16.mxu0 %v11735_v48  ;;  %11082 = vmatpush3.bf16.msra.mxu0 %v11741_v8  ;;  %v13472_v21 = vpop.f32.mrf.mxu1 }
 0xa9d   :  { %11083 = vmatprep.subr.bf16.mxu0 %v11742_v4 }
 0xa9e   :  { %v13482_v6 = vpop.f32.mrf.mxu1 }
 0xaa0   :  { %11084 = vmatpush3.bf16.msra.mxu0 %v11742_v4  ;;  %v13492_v32 = vpop.f32.mrf.mxu1  ;;  %v10361_v4 = vadd.f32 %v13419_v23, %v13417_v44 }
 0xaa1   :  { %11085 = vmatprep.subr.bf16.mxu0 %v11743_v34 }
 0xaa2   :  { %v13502_v58 = vpop.f32.mrf.mxu1 }
 0xaa3   :  { %11070 = vmatmul.mubr.bf16.gmra.mxu0 %v11736_v2 }
 0xaa4   :  { %11086 = vmatpush3.bf16.msra.mxu0 %v11743_v34  ;;  %v13512_v48 = vpop.f32.mrf.mxu1  ;;  %v13531_v34 = vld [vmem:[%s13632_s3 + $0x2] ss:$0 sm:$0xff] }
 0xaa5   :  { %11087 = vmatprep.subr.bf16.mxu0 %v11744_v55  ;;  %v7778_v44 = vadd.f32 %v10364_v15, %v13531_v34  ;;  %v7775_v23 = vadd.f32 %v10361_v4, %v13531_v34  ;;  %v7783_v7 = vadd.f32 %v10367_v57, %v13531_v34 }
 0xaa8   :  { %11088 = vmatpush3.bf16.msra.mxu0 %v11744_v55 }
 0xb2b   :  { %v11027_v46 = vpop.f32.mrf.mxu0 }
 0xb2c   :  { %v7303_v40 = vadd.f32 %v11027_v46, %v13231_v22  ;;  %v13533_v46 = vpop.f32.mrf.mxu1 }
 0xb2d   :  { %v7294_v47 = vpop.f32.mrf.mxu0 }
 0xb2e   :  { %7359 = vst [vmem:[%s13635_s6 + $0x90] sm:$0xff] %v7303_v40  ;;  %v7295_v54 = vadd.f32 %v13231_v22, %v7294_v47  ;;  %v13543_v25 = vpop.f32.mrf.mxu1 }
 0xb2f   :  { %v11028_v52 = vpop.f32.mrf.mxu0 }
 0xb30   :  { %7357 = vst [vmem:[%s13635_s6 + $0x80] sm:$0xff] %v7295_v54  ;;  %v7306_v62 = vadd.f32 %v11028_v52, %v13231_v22  ;;  %v7770_v54 = vadd.f32 %v10358_v1, %v13531_v34 }
 0xb31   :  { %v7297_v3 = vpop.f32.mrf.mxu0 }
 0xb32   :  { %7360 = vst [vmem:[%s13635_s6 + $0x98] sm:$0xff] %v7306_v62  ;;  %v7298_v56 = vadd.f32 %v13231_v22, %v7297_v3  ;;  %v10376_v62 = vadd.f32 %v13439_v18, %v13437_v30 }
 0xb33   :  { %v11031_v28 = vpop.f32.mrf.mxu0 }
 0xb34   :  { %7358 = vst [vmem:[%s13635_s6 + $0x88] sm:$0xff] %v7298_v56  ;;  %v7319_v29 = vadd.f32 %v11031_v28, %v13231_v22  ;;  %v10373_v56 = vadd.f32 %v13435_v27, %v13433_v53  ;;  %v7794_v17 = vadd.f32 %v10376_v62, %v13531_v34 }
 0xb35   :  { %v7310_v43 = vpop.f32.mrf.mxu0 }
 0xb36   :  { %7363 = vst [vmem:[%s13635_s6 + $0xb0] sm:$0xff] %v7319_v29  ;;  %v7311_v51 = vadd.f32 %v13231_v22, %v7310_v43  ;;  %v10395_v43 = vpop.f32.mrf.mxu1  ;;  %v7791_v18 = vadd.f32 %v10373_v56, %v13531_v34 }
 0xb37   :  { %v11032_v42 = vpop.f32.mrf.mxu0 }
 0xb38   :  { %7361 = vst [vmem:[%s13635_s6 + $0xa0] sm:$0xff] %v7311_v51  ;;  %v7322_v63 = vadd.f32 %v11032_v42, %v13231_v22  ;;  %v10370_v51 = vadd.f32 %v13431_v13, %v13429_v50  ;;  %v10396_v53 = vpop.f32.mrf.mxu1 }
 0xb39   :  { %v7313_v61 = vpop.f32.mrf.mxu0 }
 0xb3a   :  { %7364 = vst [vmem:[%s13635_s6 + $0xb8] sm:$0xff] %v7322_v63  ;;  %v7314_v31 = vadd.f32 %v13231_v22, %v7313_v61 }
 0xb3b   :  { %v11035_v33 = vpop.f32.mrf.mxu0 }
 0xb3c   :  { %7362 = vst [vmem:[%s13635_s6 + $0xa8] sm:$0xff] %v7314_v31  ;;  %v7335_v39 = vadd.f32 %v11035_v33, %v13231_v22 }
 0xb3d   :  { %v7326_v11 = vpop.f32.mrf.mxu0 }
 0xb3e   :  { %7367 = vst [vmem:[%s13635_s6 + $0xd0] sm:$0xff] %v7335_v39  ;;  %v7327_v10 = vadd.f32 %v13231_v22, %v7326_v11 }
 0xb3f   :  { %v11036_v0 = vpop.f32.mrf.mxu0 }
 0xb40   :  { %7365 = vst [vmem:[%s13635_s6 + $0xc0] sm:$0xff] %v7327_v10  ;;  %v7338_v45 = vadd.f32 %v11036_v0, %v13231_v22  ;;  %v7786_v10 = vadd.f32 %v10370_v51, %v13531_v34  ;;  %v10379_v0 = vadd.f32 %v13443_v38, %v13441_v20 }
 0xb41   :  { %v7329_v12 = vpop.f32.mrf.mxu0 }
 0xb42   :  { %7368 = vst [vmem:[%s13635_s6 + $0xd8] sm:$0xff] %v7338_v45  ;;  %v7330_v49 = vadd.f32 %v13231_v22, %v7329_v12  ;;  %v10388_v45 = vadd.f32 %v13492_v32, %v13482_v6  ;;  %v7799_v20 = vadd.f32 %v10379_v0, %v13531_v34 }
 0xb43   :  { %v11039_v16 = vpop.f32.mrf.mxu0 }
 0xb44   :  { %7366 = vst [vmem:[%s13635_s6 + $0xc8] sm:$0xff] %v7330_v49  ;;  %v7351_v26 = vadd.f32 %v11039_v16, %v13231_v22  ;;  %v10385_v49 = vadd.f32 %v13472_v21, %v13462_v24  ;;  %v7810_v38 = vadd.f32 %v10388_v45, %v13531_v34 }
 0xb45   :  { %v7342_v59 = vpop.f32.mrf.mxu0 }
 0xb46   :  { %7371 = vst [vmem:[%s13635_s6 + $0xf0] sm:$0xff] %v7351_v26  ;;  %v7343_v41 = vadd.f32 %v13231_v22, %v7342_v59  ;;  %v10398_v59 = vpop.f32.mrf.mxu1  ;;  %v7807_v32 = vadd.f32 %v10385_v49, %v13531_v34 }
 0xb47   :  { %v11040_v5 = vpop.f32.mrf.mxu0 }
 0xb48   :  { %7369 = vst [vmem:[%s13635_s6 + $0xe0] sm:$0xff] %v7343_v41  ;;  %v7354_v2 = vadd.f32 %v11040_v5, %v13231_v22  ;;  %v10382_v41 = vadd.f32 %v13452_v60, %v13445_v37  ;;  %v10399_v24 = vpop.f32.mrf.mxu1  ;;  %v10397_v60 = vadd.f32 %v10396_v53, %v10395_v43 }
 0xb49   :  { %v7345_v19 = vpop.f32.mrf.mxu0 }
 0xb4a   :  { %7372 = vst [vmem:[%s13635_s6 + $0xf8] sm:$0xff] %v7354_v2  ;;  %v7346_v8 = vadd.f32 %v13231_v22, %v7345_v19  ;;  %v7767_v22 = vadd.f32 %v10355_v35, %v13531_v34 }
 0xb4b   :  { %v11059_v55 = vpop.f32.mrf.mxu0 }
 0xb4c   :  { %7370 = vst [vmem:[%s13635_s6 + $0xe8] sm:$0xff] %v7346_v8  ;;  %v7872_v52 = vadd.f32 %v11059_v55, %v7775_v23  ;;  %v7802_v55 = vadd.f32 %v10382_v41, %v13531_v34 }
 0xb4d   :  { %v7863_v14 = vpop.f32.mrf.mxu0 }
 0xb4e   :  { %v7864_v40 = vadd.f32 %v7863_v14, %v7767_v22  ;;  %v7928_v61 = vmax.f32 %v7872_v52, 0.0  ;;  %v10391_v14 = vadd.f32 %v13512_v48, %v13502_v58  ;;  %v10400_v22 = vadd.f32 %v10399_v24, %v10398_v59 }
 0xb4f   :  { %v11060_v36 = vpop.f32.mrf.mxu0 }
 0xb50   :  { %v7875_v47 = vadd.f32 %v11060_v36, %v7778_v44  ;;  %v7926_v42 = vmax.f32 %v7864_v40, 0.0  ;;  %v10394_v40 = vadd.f32 %v13543_v25, %v13533_v46  ;;  %v7826_v56 = vadd.f32 %v10400_v22, %v13531_v34 }
 0xb51   :  { %v7866_v9 = vpop.f32.mrf.mxu0 }
 0xb52   :  { %v7867_v3 = vadd.f32 %v7866_v9, %v7770_v54  ;;  %v7929_v28 = vmax.f32 %v7875_v47, 0.0  ;;  %v7823_v9 = vadd.f32 %v10397_v60, %v13531_v34  ;;  %v7818_v43 = vadd.f32 %v10394_v40, %v13531_v34 }
 0xb53   :  { %v11063_v29 = vpop.f32.mrf.mxu0 }
 0xb54   :  { %v7927_v63 = vmax.f32 %v7867_v3, 0.0  ;;  %v7943_v30 = vpack.c.bf16 %v7929_v28, %v7928_v61  ;;  %v7888_v50 = vadd.f32 %v11063_v29, %v7791_v18  ;;  %v7815_v3 = vadd.f32 %v10391_v14, %v13531_v34 }
 0xb55   :  { %v7879_v31 = vpop.f32.mrf.mxu0 }
 0xb56   :  { %v7942_v33 = vpack.c.bf16 %v7927_v63, %v7926_v42  ;;  %v7880_v27 = vadd.f32 %v7879_v31, %v7783_v7  ;;  %v7932_v19 = vmax.f32 %v7888_v50, 0.0 }
 0xb57   :  { %v11064_v39 = vpop.f32.mrf.mxu0 }
 0xb58   :  { %v7891_v11 = vadd.f32 %v11064_v39, %v7794_v17  ;;  %11089 = vmatprep.mubr.bf16.mxu0 %v7942_v33  ;;  %v7930_v5 = vmax.f32 %v7880_v27, 0.0  ;;  %v8939_v17 = vld [vmem:[%s13634_s5] ss:$0 sm:$0xff] }
 0xb59   :  { %v7882_v13 = vpop.f32.mrf.mxu0  ;;  %11090 = vmatmul.mubr.bf16.vlgmr.msra.gmra.mxu0 %v7943_v30 }
 0xb5a   :  { %v7883_v12 = vadd.f32 %v7882_v13, %v7786_v10  ;;  %v7933_v16 = vmax.f32 %v7891_v11, 0.0 }
 0xb5b   :  { %v11067_v26 = vpop.f32.mrf.mxu0 }
 0xb5c   :  { %v7931_v2 = vmax.f32 %v7883_v12, 0.0  ;;  %v7945_v6 = vpack.c.bf16 %v7933_v16, %v7932_v19  ;;  %v7904_v37 = vadd.f32 %v11067_v26, %v7807_v32 }
 0xb5d   :  { %v7895_v35 = vpop.f32.mrf.mxu0 }
 0xb5e   :  { %v7944_v15 = vpack.c.bf16 %v7931_v2, %v7930_v5  ;;  %v7896_v21 = vadd.f32 %v7895_v35, %v7799_v20  ;;  %v7936_v52 = vmax.f32 %v7904_v37, 0.0 }
 0xb5f   :  { %v11068_v8 = vpop.f32.mrf.mxu0 }
 0xb60   :  { %v7907_v4 = vadd.f32 %v11068_v8, %v7810_v38  ;;  %11093 = vmatprep.mubr.bf16.mxu0 %v7944_v15  ;;  %v7934_v47 = vmax.f32 %v7896_v21, 0.0 }
 0xb61   :  { %v7898_v1 = vpop.f32.mrf.mxu0  ;;  %11094 = vmatmul.mubr.bf16.gmra.mxu0 %v7945_v6 }
 0xb62   :  { %v7899_v44 = vadd.f32 %v7898_v1, %v7802_v55  ;;  %v7937_v23 = vmax.f32 %v7907_v4, 0.0 }
 0xb63   :  { %v11071_v36 = vpop.f32.mrf.mxu0 }
 0xb64   :  { %v7935_v54 = vmax.f32 %v7899_v44, 0.0  ;;  %v7947_v28 = vpack.c.bf16 %v7937_v23, %v7936_v52  ;;  %v7920_v51 = vadd.f32 %v11071_v36, %v7823_v9 }
 0xb65   :  { %v7911_v57 = vpop.f32.mrf.mxu0 }
 0xb66   :  { %v7946_v62 = vpack.c.bf16 %v7935_v54, %v7934_v47  ;;  %v7912_v48 = vadd.f32 %v7911_v57, %v7815_v3  ;;  %v7940_v31 = vmax.f32 %v7920_v51, 0.0 }
 0xb67   :  { %v11072_v58 = vpop.f32.mrf.mxu0 }
 0xb68   :  { %v7923_v29 = vadd.f32 %v11072_v58, %v7826_v56  ;;  %11097 = vmatprep.mubr.bf16.mxu1 %v7946_v62  ;;  %v7938_v63 = vmax.f32 %v7912_v48, 0.0 }
 0xb69   :  { %v7914_v46 = vpop.f32.mrf.mxu0  ;;  %11098 = vmatmul.mubr.bf16.vlgmr.msra.gmra.mxu1 %v7947_v28 }
 0xb6a   :  { %v7915_v25 = vadd.f32 %v7914_v46, %v7818_v43  ;;  %v7941_v42 = vmax.f32 %v7923_v29, 0.0 }
 0xb6c   :  { %v7939_v61 = vmax.f32 %v7915_v25, 0.0  ;;  %v7949_v7 = vpack.c.bf16 %v7941_v42, %v7940_v31 }
 0xb6e   :  { %v7948_v33 = vpack.c.bf16 %v7939_v61, %v7938_v63 }
 0xb70   :  { %11101 = vmatprep.mubr.bf16.mxu1 %v7948_v33 }
 0xb71   :  { %11102 = vmatmul.mubr.bf16.gmra.mxu1 %v7949_v7 }
 0xc19   :  { %v11091_v30 = vpop.f32.mrf.mxu0 }
 0xc1a   :  { %v8064_v18 = vadd.f32 %v11091_v30, %v8939_v17 }
 0xc1b   :  { %v8055_v39 = vpop.f32.mrf.mxu0 }
 0xc1c   :  { %8120 = vst [vmem:[%s13635_s6 + $0x110] sm:$0xff] %v8064_v18  ;;  %v8056_v34 = vadd.f32 %v8939_v17, %v8055_v39 }
 0xc1d   :  { %v11092_v53 = vpop.f32.mrf.mxu0 }
 0xc1e   :  { %8118 = vst [vmem:[%s13635_s6 + $0x100] sm:$0xff] %v8056_v34  ;;  %v8067_v27 = vadd.f32 %v11092_v53, %v8939_v17 }
 0xc1f   :  { %v8058_v11 = vpop.f32.mrf.mxu0 }
 0xc20   :  { %8121 = vst [vmem:[%s13635_s6 + $0x118] sm:$0xff] %v8067_v27  ;;  %v8059_v10 = vadd.f32 %v8939_v17, %v8058_v11 }
 0xc21   :  { %v11095_v50 = vpop.f32.mrf.mxu0 }
 0xc22   :  { %8119 = vst [vmem:[%s13635_s6 + $0x108] sm:$0xff] %v8059_v10  ;;  %v8080_v13 = vadd.f32 %v11095_v50, %v8939_v17 }
 0xc23   :  { %v8071_v0 = vpop.f32.mrf.mxu0 }
 0xc24   :  { %8124 = vst [vmem:[%s13635_s6 + $0x130] sm:$0xff] %v8080_v13  ;;  %v8072_v45 = vadd.f32 %v8939_v17, %v8071_v0 }
 0xc25   :  { %v11096_v12 = vpop.f32.mrf.mxu0 }
 0xc26   :  { %8122 = vst [vmem:[%s13635_s6 + $0x120] sm:$0xff] %v8072_v45  ;;  %v8083_v49 = vadd.f32 %v11096_v12, %v8939_v17 }
 0xc27   :  { %v8074_v16 = vpop.f32.mrf.mxu0 }
 0xc28   :  { %8125 = vst [vmem:[%s13635_s6 + $0x138] sm:$0xff] %v8083_v49  ;;  %v8075_v26 = vadd.f32 %v8939_v17, %v8074_v16 }
 0xc29   :  { %v11099_v59 = vpop.f32.mrf.mxu1 }
 0xc2a   :  { %8123 = vst [vmem:[%s13635_s6 + $0x128] sm:$0xff] %v8075_v26  ;;  %v8096_v41 = vadd.f32 %v11099_v59, %v8939_v17 }
 0xc2b   :  { %v8087_v5 = vpop.f32.mrf.mxu1 }
 0xc2c   :  { %8128 = vst [vmem:[%s13635_s6 + $0x150] sm:$0xff] %v8096_v41  ;;  %v8088_v2 = vadd.f32 %v8939_v17, %v8087_v5 }
 0xc2d   :  { %v11100_v19 = vpop.f32.mrf.mxu1 }
 0xc2e   :  { %8126 = vst [vmem:[%s13635_s6 + $0x140] sm:$0xff] %v8088_v2  ;;  %v8099_v35 = vadd.f32 %v11100_v19, %v8939_v17 }
 0xc2f   :  { %v8090_v15 = vpop.f32.mrf.mxu1 }
 0xc30   :  { %8129 = vst [vmem:[%s13635_s6 + $0x158] sm:$0xff] %v8099_v35  ;;  %v8091_v20 = vadd.f32 %v8939_v17, %v8090_v15 }
 0xc31   :  { %v11103_v38 = vpop.f32.mrf.mxu1 }
 0xc32   :  { %8127 = vst [vmem:[%s13635_s6 + $0x148] sm:$0xff] %v8091_v20  ;;  %v8112_v6 = vadd.f32 %v11103_v38, %v8939_v17 }
 0xc33   :  { %v8103_v32 = vpop.f32.mrf.mxu1 }
 0xc34   :  { %8132 = vst [vmem:[%s13635_s6 + $0x170] sm:$0xff] %v8112_v6  ;;  %v8104_v8 = vadd.f32 %v8939_v17, %v8103_v32 }
 0xc35   :  { %v11104_v24 = vpop.f32.mrf.mxu1 }
 0xc36   :  { %8130 = vst [vmem:[%s13635_s6 + $0x160] sm:$0xff] %v8104_v8  ;;  %v8115_v21 = vadd.f32 %v11104_v24, %v8939_v17 }
 0xc37   :  { %v8106_v4 = vpop.f32.mrf.mxu1 }
 0xc38   :  { %8133 = vst [vmem:[%s13635_s6 + $0x178] sm:$0xff] %v8115_v21  ;;  %v8107_v55 = vadd.f32 %v8939_v17, %v8106_v4 }
 0xc3a   :  { %8131 = vst [vmem:[%s13635_s6 + $0x168] sm:$0xff] %v8107_v55 }

</bundles_post_ra>
